<compile_context>
chip_gen: v6e
topology: v6e:2x2x1
jax: 0.10.0
libtpu: 0.0.40
codegen_flags: <defaults>
</compile_context>

<pallas_src>
import math
import functools

import jax
import jax.numpy as jnp
import numpy as np
from jax.experimental import pallas as pl
from jax.experimental.pallas import tpu as pltpu

# ---------------- model hyper-parameters (small, TPU-tile friendly) ----------
VOCAB = 256        # vocab_size
EMBED = 128        # embedding_dim
FFN = 256          # ffn_dim
HEADS = 4          # num_heads
HEAD_DIM = EMBED // HEADS
N_LAYERS = 2       # N
T_MAX = 64         # T (max positions)
EPS = 1e-5         # layer_eps
BATCH = 2
SEQ = 8

# ------------------------------ fused Pallas kernel ---------------------------


def gpt_kernel(tok_ref, emb_ref, pos_ref,
               ln1w_ref, ln1b_ref, inw_ref, inb_ref, outw_ref, outb_ref,
               ln2w_ref, ln2b_ref, w1_ref, b1_ref, w2_ref, b2_ref,
               lmw_ref, o_ref, *, B, S):
    """Entire GPT forward for the whole (tiny) batch in one kernel invocation.

    tok_ref : (B*S, 1) int32 token ids.
    emb_ref : (V, E) bf16, pos_ref : (S, E) f32.
    Layer weights are stacked along a leading layer axis; big matrices are
    pre-transposed to (in_features, out_features) and pre-cast to bf16.
    o_ref   : (B*S, V) f32 logits.
    """
    BS = B * S
    f32 = jnp.float32
    bf16 = jnp.bfloat16

    # ---- embedding gather as an exact one-hot matmul (stays on the MXU) ----
    tok = tok_ref[...]                                           # (BS, 1) i32
    iota = jax.lax.broadcasted_iota(jnp.int32, (BS, VOCAB), 1)   # (BS, V)
    onehot = (iota == tok).astype(bf16)                          # exact 0/1
    x = jnp.dot(onehot, emb_ref[...], preferred_element_type=f32)  # (BS, E)
    x = x + jnp.tile(pos_ref[...], (B, 1))                       # + positions

    def layernorm(v, w, b):                                      # f32 math
        mu = jnp.mean(v, axis=-1, keepdims=True)
        var = jnp.mean(jnp.square(v - mu), axis=-1, keepdims=True)
        return (v - mu) * jax.lax.rsqrt(var + EPS) * w + b

    scale = 1.0 / math.sqrt(HEAD_DIM)

    for l in range(N_LAYERS):                                    # static unroll
        # ---- pre-LN multi-head self-attention (no mask: defaults) ----
        a = layernorm(x, ln1w_ref[l], ln1b_ref[l])               # (BS, E) f32
        qkv = jnp.dot(a.astype(bf16), inw_ref[l],
                      preferred_element_type=f32) + inb_ref[l]   # (BS, 3E) f32
        q = qkv[:, :EMBED].reshape(B, S, EMBED)
        k = qkv[:, EMBED:2 * EMBED].reshape(B, S, EMBED)
        v = qkv[:, 2 * EMBED:].reshape(B, S, EMBED)

        outw = outw_ref[l]                                       # (E, E) bf16
        attn = jnp.zeros((BS, EMBED), f32)
        for h in range(HEADS):                                   # static unroll
            sl = slice(h * HEAD_DIM, (h + 1) * HEAD_DIM)
            qh = q[:, :, sl].astype(bf16)                        # (B, S, Dh)
            kh = k[:, :, sl].astype(bf16)
            vh = v[:, :, sl].astype(bf16)
            s = jnp.einsum('bqd,bkd->bqk', qh, kh,
                           preferred_element_type=f32) * scale   # (B, S, S)
            s = s - jnp.max(s, axis=-1, keepdims=True)
            p = jnp.exp(s)
            p = p * pl.reciprocal(jnp.sum(p, axis=-1, keepdims=True),
                                  approx=True)                   # softmax
            oh = jnp.einsum('bqk,bkd->bqd', p.astype(bf16), vh,
                            preferred_element_type=f32)          # (B, S, Dh)
            # accumulate straight into the output projection (no concat).
            attn = attn + jnp.dot(oh.reshape(BS, HEAD_DIM).astype(bf16),
                                  outw[sl, :], preferred_element_type=f32)
        x = x + attn + outb_ref[l]                               # residual (p=0)

        # ---- pre-LN FFN ----
        f = layernorm(x, ln2w_ref[l], ln2b_ref[l])
        h1 = jnp.dot(f.astype(bf16), w1_ref[l],
                     preferred_element_type=f32) + b1_ref[l]     # (BS, F)
        # exact (erf) GELU, matching nn.GELU() default
        h1 = 0.5 * h1 * (1.0 + jax.lax.erf(h1 * (1.0 / math.sqrt(2.0))))
        h2 = jnp.dot(h1.astype(bf16), w2_ref[l],
                     preferred_element_type=f32) + b2_ref[l]     # (BS, E)
        x = x + h2                                               # residual (p=0)

    # ---- LM head (bias-free) ----
    o_ref[...] = jnp.dot(x.astype(bf16), lmw_ref[...],
                         preferred_element_type=f32)


# ------------------------------ wrapper ---------------------------------------


def _full_spec(shape):
    nd = len(shape)
    return pl.BlockSpec(shape, lambda i, _nd=nd: (0,) * _nd)


def gpt_forward(tokens, params):
    """GPT.forward(x, y=None, pad_mask_self=None, mask_self=None)."""
    B, S = tokens.shape
    BS = B * S
    bf16 = jnp.bfloat16

    tok2d = tokens.reshape(BS, 1).astype(jnp.int32)
    pos = params["pos_emb"][:S]                    # (S, E) f32

    inputs = (
        tok2d,
        params["emb"].astype(bf16),
        pos,
        params["ln1_w"], params["ln1_b"],
        params["in_w_t"].astype(bf16), params["in_b"],
        params["out_w_t"].astype(bf16), params["out_b"],
        params["ln2_w"], params["ln2_b"],
        params["w1_t"].astype(bf16), params["b1"],
        params["w2_t"].astype(bf16), params["b2"],
        params["lm_w_t"].astype(bf16),
    )

    kernel = functools.partial(gpt_kernel, B=B, S=S)
    logits2d = pl.pallas_call(
        kernel,
        out_shape=jax.ShapeDtypeStruct((BS, VOCAB), jnp.float32),
        grid=(1,),
        in_specs=[_full_spec(a.shape) for a in inputs],
        out_specs=_full_spec((BS, VOCAB)),
        compiler_params=pltpu.CompilerParams(
            dimension_semantics=("arbitrary",)),
    )(*inputs)

    logits = logits2d.reshape(B, S, VOCAB)
    loss = None                                    # y is None
    pred = logits[:, -1:, :]                       # x[:, [-1], :]
    return loss, pred, logits


# --------------------------- parameter initialization -------------------------


def init_params(key):
    scale = 0.02
    L = N_LAYERS
    ks = jax.random.split(key, 11)
    params = dict(
        emb=jax.random.normal(ks[0], (VOCAB, EMBED), jnp.float32) * scale,
        pos_emb=jax.random.normal(ks[1], (T_MAX, EMBED), jnp.float32) * scale,
        lm_w_t=jax.random.normal(ks[2], (EMBED, VOCAB), jnp.float32) * scale,
        ln1_w=jnp.ones((L, 1, EMBED), jnp.float32),
        ln1_b=jnp.zeros((L, 1, EMBED), jnp.float32),
        in_w_t=jax.random.normal(ks[3], (L, EMBED, 3 * EMBED), jnp.float32) * scale,
        in_b=jax.random.normal(ks[4], (L, 1, 3 * EMBED), jnp.float32) * scale,
        out_w_t=jax.random.normal(ks[5], (L, EMBED, EMBED), jnp.float32) * scale,
        out_b=jax.random.normal(ks[6], (L, 1, EMBED), jnp.float32) * scale,
        ln2_w=jnp.ones((L, 1, EMBED), jnp.float32),
        ln2_b=jnp.zeros((L, 1, EMBED), jnp.float32),
        w1_t=jax.random.normal(ks[7], (L, EMBED, FFN), jnp.float32) * scale,
        b1=jax.random.normal(ks[8], (L, 1, FFN), jnp.float32) * scale,
        w2_t=jax.random.normal(ks[9], (L, FFN, EMBED), jnp.float32) * scale,
        b2=jax.random.normal(ks[10], (L, 1, EMBED), jnp.float32) * scale,
    )
    return params


# ------------------------------ pure-JAX reference ----------------------------


def _ln_ref(v, w, b):
    mu = v.mean(-1, keepdims=True)
    var = ((v - mu) ** 2).mean(-1, keepdims=True)
    return (v - mu) / jnp.sqrt(var + EPS) * w + b


def ref_forward(tokens, params):
    B, S = tokens.shape
    x = params["emb"][tokens] + params["pos_emb"][jnp.arange(S)][None]
    for l in range(N_LAYERS):
        a = _ln_ref(x, params["ln1_w"][l], params["ln1_b"][l])
        qkv = a @ params["in_w_t"][l] + params["in_b"][l]
        q, k, v = jnp.split(qkv, 3, axis=-1)
        q = q.reshape(B, S, HEADS, HEAD_DIM).transpose(0, 2, 1, 3)
        k = k.reshape(B, S, HEADS, HEAD_DIM).transpose(0, 2, 1, 3)
        v = v.reshape(B, S, HEADS, HEAD_DIM).transpose(0, 2, 1, 3)
        s = (q @ k.transpose(0, 1, 3, 2)) / math.sqrt(HEAD_DIM)
        pattn = jax.nn.softmax(s, axis=-1)
        o = (pattn @ v).transpose(0, 2, 1, 3).reshape(B, S, EMBED)
        x = x + (o @ params["out_w_t"][l] + params["out_b"][l])
        f = _ln_ref(x, params["ln2_w"][l], params["ln2_b"][l])
        h = jax.nn.gelu(f @ params["w1_t"][l] + params["b1"][l], approximate=False)
        x = x + (h @ params["w2_t"][l] + params["b2"][l])
    return x @ params["lm_w_t"]


# ----------------------------------- main --------------------------------------

if __name__ == "__main__":
    key = jax.random.PRNGKey(0)
    pk, tk = jax.random.split(key)
    params = init_params(pk)
    tokens = jax.random.randint(tk, (BATCH, SEQ), 0, VOCAB, dtype=jnp.int32)

    loss, pred, logits = gpt_forward(tokens, params)
    pred = jax.block_until_ready(pred)
    logits = jax.block_until_ready(logits)

    assert loss is None
    assert pred.shape == (BATCH, 1, VOCAB)

    ref_logits = ref_forward(tokens, params)
    np.testing.assert_allclose(np.asarray(logits), np.asarray(ref_logits),
                               rtol=2e-2, atol=2e-2)

    print("KERNEL_OK")
</pallas_src>

<mosaic_0001>
module attributes {stable_mosaic.version = 11 : i64} {
  func.func @gpt_kernel(%arg0: i32, %arg1: memref<16x1xi32, #tpu.memory_space<vmem>>, %arg2: memref<256x128xbf16, #tpu.memory_space<vmem>>, %arg3: memref<8x128xf32, #tpu.memory_space<vmem>>, %arg4: memref<2x1x128xf32, #tpu.memory_space<vmem>>, %arg5: memref<2x1x128xf32, #tpu.memory_space<vmem>>, %arg6: memref<2x128x384xbf16, #tpu.memory_space<vmem>>, %arg7: memref<2x1x384xf32, #tpu.memory_space<vmem>>, %arg8: memref<2x128x128xbf16, #tpu.memory_space<vmem>>, %arg9: memref<2x1x128xf32, #tpu.memory_space<vmem>>, %arg10: memref<2x1x128xf32, #tpu.memory_space<vmem>>, %arg11: memref<2x1x128xf32, #tpu.memory_space<vmem>>, %arg12: memref<2x128x256xbf16, #tpu.memory_space<vmem>>, %arg13: memref<2x1x256xf32, #tpu.memory_space<vmem>>, %arg14: memref<2x256x128xbf16, #tpu.memory_space<vmem>>, %arg15: memref<2x1x128xf32, #tpu.memory_space<vmem>>, %arg16: memref<128x256xbf16, #tpu.memory_space<vmem>>, %arg17: memref<16x256xf32, #tpu.memory_space<vmem>>) attributes {dimension_semantics = [#tpu.dimension_semantics<arbitrary>], iteration_bounds = array<i64: 1>, scalar_prefetch = 0 : i64, scratch_operands = 0 : i64, tpu.core_type = #tpu.core_type<tc>, window_params = [{pipeline_mode = #tpu.pipeline_mode<synchronous>, transform_indices = @transform_0, window_bounds = array<i64: 16, 1>}, {pipeline_mode = #tpu.pipeline_mode<synchronous>, transform_indices = @transform_1, window_bounds = array<i64: 256, 128>}, {pipeline_mode = #tpu.pipeline_mode<synchronous>, transform_indices = @transform_2, window_bounds = array<i64: 8, 128>}, {pipeline_mode = #tpu.pipeline_mode<synchronous>, transform_indices = @transform_3, window_bounds = array<i64: 2, 1, 128>}, {pipeline_mode = #tpu.pipeline_mode<synchronous>, transform_indices = @transform_4, window_bounds = array<i64: 2, 1, 128>}, {pipeline_mode = #tpu.pipeline_mode<synchronous>, transform_indices = @transform_5, window_bounds = array<i64: 2, 128, 384>}, {pipeline_mode = #tpu.pipeline_mode<synchronous>, transform_indices = @transform_6, window_bounds = array<i64: 2, 1, 384>}, {pipeline_mode = #tpu.pipeline_mode<synchronous>, transform_indices = @transform_7, window_bounds = array<i64: 2, 128, 128>}, {pipeline_mode = #tpu.pipeline_mode<synchronous>, transform_indices = @transform_8, window_bounds = array<i64: 2, 1, 128>}, {pipeline_mode = #tpu.pipeline_mode<synchronous>, transform_indices = @transform_9, window_bounds = array<i64: 2, 1, 128>}, {pipeline_mode = #tpu.pipeline_mode<synchronous>, transform_indices = @transform_10, window_bounds = array<i64: 2, 1, 128>}, {pipeline_mode = #tpu.pipeline_mode<synchronous>, transform_indices = @transform_11, window_bounds = array<i64: 2, 128, 256>}, {pipeline_mode = #tpu.pipeline_mode<synchronous>, transform_indices = @transform_12, window_bounds = array<i64: 2, 1, 256>}, {pipeline_mode = #tpu.pipeline_mode<synchronous>, transform_indices = @transform_13, window_bounds = array<i64: 2, 256, 128>}, {pipeline_mode = #tpu.pipeline_mode<synchronous>, transform_indices = @transform_14, window_bounds = array<i64: 2, 1, 128>}, {pipeline_mode = #tpu.pipeline_mode<synchronous>, transform_indices = @transform_15, window_bounds = array<i64: 128, 256>}, {pipeline_mode = #tpu.pipeline_mode<synchronous>, transform_indices = @transform_16, window_bounds = array<i64: 16, 256>}]} {
    %c0 = arith.constant 0 : index
    %c0_0 = arith.constant 0 : index
    %0 = vector.load %arg1[%c0, %c0_0] : memref<16x1xi32, #tpu.memory_space<vmem>>, vector<16x1xi32>
    %1 = tpu.iota {dimensions = array<i32: 1>} : vector<16x256xi32>
    %2 = vector.broadcast %0 : vector<16x1xi32> to vector<16x256xi32>
    %3 = arith.cmpi eq, %1, %2 : vector<16x256xi32>
    %4 = arith.extui %3 : vector<16x256xi1> to vector<16x256xi32>
    %5 = arith.sitofp %4 : vector<16x256xi32> to vector<16x256xf32>
    %6 = arith.truncf %5 : vector<16x256xf32> to vector<16x256xbf16>
    %c0_1 = arith.constant 0 : index
    %c0_2 = arith.constant 0 : index
    %7 = vector.load %arg2[%c0_1, %c0_2] : memref<256x128xbf16, #tpu.memory_space<vmem>>, vector<256x128xbf16>
    %cst = arith.constant dense<0.000000e+00> : vector<16x128xf32>
    %8 = tpu.matmul %6, %7, %cst {dimension_numbers = #tpu.dot_dimension_numbers<[1], [0], [0], [1], [0, 0, 1, 1], [], []>} : vector<16x256xbf16>, vector<256x128xbf16>, vector<16x128xf32> -> vector<16x128xf32>
    %c0_3 = arith.constant 0 : index
    %c0_4 = arith.constant 0 : index
    %9 = vector.load %arg3[%c0_3, %c0_4] : memref<8x128xf32, #tpu.memory_space<vmem>>, vector<8x128xf32>
    %10 = tpu.concatenate %9, %9 in 0 : vector<8x128xf32>, vector<8x128xf32> -> vector<16x128xf32>
    %11 = arith.addf %8, %10 : vector<16x128xf32>
    %c0_5 = arith.constant 0 : index
    %c0_6 = arith.constant 0 : index
    %c0_7 = arith.constant 0 : index
    %12 = vector.load %arg4[%c0_5, %c0_6, %c0_7] : memref<2x1x128xf32, #tpu.memory_space<vmem>>, vector<1x1x128xf32>
    %13 = vector.shape_cast %12 : vector<1x1x128xf32> to vector<1x128xf32>
    %c0_8 = arith.constant 0 : index
    %c0_9 = arith.constant 0 : index
    %c0_10 = arith.constant 0 : index
    %14 = vector.load %arg5[%c0_8, %c0_9, %c0_10] : memref<2x1x128xf32, #tpu.memory_space<vmem>>, vector<1x1x128xf32>
    %15 = vector.shape_cast %14 : vector<1x1x128xf32> to vector<1x128xf32>
    %cst_11 = arith.constant dense<0.000000e+00> : vector<16xf32>
    %16 = vector.multi_reduction <add>, %11, %cst_11 [1] : vector<16x128xf32> to vector<16xf32>
    %17 = vector.shape_cast %16 : vector<16xf32> to vector<16x1xf32>
    %cst_12 = arith.constant 1.280000e+02 : f32
    %18 = vector.broadcast %cst_12 : f32 to vector<16x1xf32>
    %19 = arith.divf %17, %18 : vector<16x1xf32>
    %20 = vector.broadcast %19 : vector<16x1xf32> to vector<16x128xf32>
    %21 = arith.subf %11, %20 : vector<16x128xf32>
    %22 = arith.mulf %21, %21 : vector<16x128xf32>
    %cst_13 = arith.constant dense<0.000000e+00> : vector<16xf32>
    %23 = vector.multi_reduction <add>, %22, %cst_13 [1] : vector<16x128xf32> to vector<16xf32>
    %24 = vector.shape_cast %23 : vector<16xf32> to vector<16x1xf32>
    %cst_14 = arith.constant 1.280000e+02 : f32
    %25 = vector.broadcast %cst_14 : f32 to vector<16x1xf32>
    %26 = arith.divf %24, %25 : vector<16x1xf32>
    %27 = vector.broadcast %19 : vector<16x1xf32> to vector<16x128xf32>
    %28 = arith.subf %11, %27 : vector<16x128xf32>
    %cst_15 = arith.constant 9.99999974E-6 : f32
    %29 = vector.broadcast %cst_15 : f32 to vector<16x1xf32>
    %30 = arith.addf %26, %29 : vector<16x1xf32>
    %31 = math.rsqrt %30 : vector<16x1xf32>
    %32 = vector.broadcast %31 : vector<16x1xf32> to vector<16x128xf32>
    %33 = arith.mulf %28, %32 : vector<16x128xf32>
    %34 = vector.broadcast %13 : vector<1x128xf32> to vector<16x128xf32>
    %35 = arith.mulf %33, %34 : vector<16x128xf32>
    %36 = vector.broadcast %15 : vector<1x128xf32> to vector<16x128xf32>
    %37 = arith.addf %35, %36 : vector<16x128xf32>
    %38 = arith.truncf %37 : vector<16x128xf32> to vector<16x128xbf16>
    %c0_16 = arith.constant 0 : index
    %c0_17 = arith.constant 0 : index
    %c0_18 = arith.constant 0 : index
    %39 = vector.load %arg6[%c0_16, %c0_17, %c0_18] : memref<2x128x384xbf16, #tpu.memory_space<vmem>>, vector<1x128x384xbf16>
    %40 = vector.shape_cast %39 : vector<1x128x384xbf16> to vector<128x384xbf16>
    %cst_19 = arith.constant dense<0.000000e+00> : vector<16x384xf32>
    %41 = tpu.matmul %38, %40, %cst_19 {dimension_numbers = #tpu.dot_dimension_numbers<[1], [0], [0], [1], [0, 0, 1, 1], [], []>} : vector<16x128xbf16>, vector<128x384xbf16>, vector<16x384xf32> -> vector<16x384xf32>
    %c0_20 = arith.constant 0 : index
    %c0_21 = arith.constant 0 : index
    %c0_22 = arith.constant 0 : index
    %42 = vector.load %arg7[%c0_20, %c0_21, %c0_22] : memref<2x1x384xf32, #tpu.memory_space<vmem>>, vector<1x1x384xf32>
    %43 = vector.shape_cast %42 : vector<1x1x384xf32> to vector<1x384xf32>
    %44 = vector.broadcast %43 : vector<1x384xf32> to vector<16x384xf32>
    %45 = arith.addf %41, %44 : vector<16x384xf32>
    %46 = vector.extract_strided_slice %45 {offsets = [0, 0], sizes = [16, 128], strides = [1, 1]} : vector<16x384xf32> to vector<16x128xf32>
    %47 = vector.shape_cast %46 : vector<16x128xf32> to vector<2x8x128xf32>
    %48 = vector.extract_strided_slice %45 {offsets = [0, 128], sizes = [16, 128], strides = [1, 1]} : vector<16x384xf32> to vector<16x128xf32>
    %49 = vector.shape_cast %48 : vector<16x128xf32> to vector<2x8x128xf32>
    %50 = vector.extract_strided_slice %45 {offsets = [0, 256], sizes = [16, 128], strides = [1, 1]} : vector<16x384xf32> to vector<16x128xf32>
    %51 = vector.shape_cast %50 : vector<16x128xf32> to vector<2x8x128xf32>
    %c0_23 = arith.constant 0 : index
    %c0_24 = arith.constant 0 : index
    %c0_25 = arith.constant 0 : index
    %52 = vector.load %arg8[%c0_23, %c0_24, %c0_25] : memref<2x128x128xbf16, #tpu.memory_space<vmem>>, vector<1x128x128xbf16>
    %53 = vector.shape_cast %52 : vector<1x128x128xbf16> to vector<128x128xbf16>
    %cst_26 = arith.constant 0.000000e+00 : f32
    %54 = vector.broadcast %cst_26 : f32 to vector<16x128xf32>
    %55 = vector.extract_strided_slice %47 {offsets = [0, 0, 0], sizes = [2, 8, 32], strides = [1, 1, 1]} : vector<2x8x128xf32> to vector<2x8x32xf32>
    %56 = arith.truncf %55 : vector<2x8x32xf32> to vector<2x8x32xbf16>
    %57 = vector.extract_strided_slice %49 {offsets = [0, 0, 0], sizes = [2, 8, 32], strides = [1, 1, 1]} : vector<2x8x128xf32> to vector<2x8x32xf32>
    %58 = arith.truncf %57 : vector<2x8x32xf32> to vector<2x8x32xbf16>
    %59 = vector.extract_strided_slice %51 {offsets = [0, 0, 0], sizes = [2, 8, 32], strides = [1, 1, 1]} : vector<2x8x128xf32> to vector<2x8x32xf32>
    %60 = arith.truncf %59 : vector<2x8x32xf32> to vector<2x8x32xbf16>
    "tpu.trace_start"() <{level = 10 : i32, message = "bqd,bkd->bqk"}> : () -> ()
    %cst_27 = arith.constant dense<0.000000e+00> : vector<2x8x8xf32>
    %61 = tpu.matmul %56, %58, %cst_27 {dimension_numbers = #tpu.dot_dimension_numbers<[2], [2], [1], [1], [0, 0, 0, 1, 1, 1], [0], [0]>} : vector<2x8x32xbf16>, vector<2x8x32xbf16>, vector<2x8x8xf32> -> vector<2x8x8xf32>
    "tpu.trace_stop"() : () -> ()
    %cst_28 = arith.constant 0.176776692 : f32
    %62 = vector.broadcast %cst_28 : f32 to vector<2x8x8xf32>
    %63 = arith.mulf %61, %62 : vector<2x8x8xf32>
    %cst_29 = arith.constant dense<0xFF800000> : vector<2x8xf32>
    %64 = vector.multi_reduction <maximumf>, %63, %cst_29 [2] : vector<2x8x8xf32> to vector<2x8xf32>
    %65 = vector.shape_cast %64 : vector<2x8xf32> to vector<2x8x1xf32>
    %66 = vector.broadcast %65 : vector<2x8x1xf32> to vector<2x8x8xf32>
    %67 = arith.subf %63, %66 : vector<2x8x8xf32>
    %68 = math.exp %67 : vector<2x8x8xf32>
    %cst_30 = arith.constant dense<0.000000e+00> : vector<2x8xf32>
    %69 = vector.multi_reduction <add>, %68, %cst_30 [2] : vector<2x8x8xf32> to vector<2x8xf32>
    %70 = vector.shape_cast %69 : vector<2x8xf32> to vector<2x8x1xf32>
    %71 = tpu.reciprocal %70 {approx = true} : vector<2x8x1xf32> -> vector<2x8x1xf32>
    %72 = vector.broadcast %71 : vector<2x8x1xf32> to vector<2x8x8xf32>
    %73 = arith.mulf %68, %72 : vector<2x8x8xf32>
    %74 = arith.truncf %73 : vector<2x8x8xf32> to vector<2x8x8xbf16>
    "tpu.trace_start"() <{level = 10 : i32, message = "bqk,bkd->bqd"}> : () -> ()
    %cst_31 = arith.constant dense<0.000000e+00> : vector<2x8x32xf32>
    %75 = tpu.matmul %74, %60, %cst_31 {dimension_numbers = #tpu.dot_dimension_numbers<[2], [1], [1], [2], [0, 0, 0, 1, 1, 2], [0], [0]>} : vector<2x8x8xbf16>, vector<2x8x32xbf16>, vector<2x8x32xf32> -> vector<2x8x32xf32>
    "tpu.trace_stop"() : () -> ()
    %76 = vector.shape_cast %75 : vector<2x8x32xf32> to vector<16x32xf32>
    %77 = arith.truncf %76 : vector<16x32xf32> to vector<16x32xbf16>
    %78 = vector.extract_strided_slice %53 {offsets = [0, 0], sizes = [32, 128], strides = [1, 1]} : vector<128x128xbf16> to vector<32x128xbf16>
    %cst_32 = arith.constant dense<0.000000e+00> : vector<16x128xf32>
    %79 = tpu.matmul %77, %78, %cst_32 {dimension_numbers = #tpu.dot_dimension_numbers<[1], [0], [0], [1], [0, 0, 1, 1], [], []>} : vector<16x32xbf16>, vector<32x128xbf16>, vector<16x128xf32> -> vector<16x128xf32>
    %80 = arith.addf %54, %79 : vector<16x128xf32>
    %81 = vector.extract_strided_slice %47 {offsets = [0, 0, 32], sizes = [2, 8, 32], strides = [1, 1, 1]} : vector<2x8x128xf32> to vector<2x8x32xf32>
    %82 = arith.truncf %81 : vector<2x8x32xf32> to vector<2x8x32xbf16>
    %83 = vector.extract_strided_slice %49 {offsets = [0, 0, 32], sizes = [2, 8, 32], strides = [1, 1, 1]} : vector<2x8x128xf32> to vector<2x8x32xf32>
    %84 = arith.truncf %83 : vector<2x8x32xf32> to vector<2x8x32xbf16>
    %85 = vector.extract_strided_slice %51 {offsets = [0, 0, 32], sizes = [2, 8, 32], strides = [1, 1, 1]} : vector<2x8x128xf32> to vector<2x8x32xf32>
    %86 = arith.truncf %85 : vector<2x8x32xf32> to vector<2x8x32xbf16>
    "tpu.trace_start"() <{level = 10 : i32, message = "bqd,bkd->bqk"}> : () -> ()
    %cst_33 = arith.constant dense<0.000000e+00> : vector<2x8x8xf32>
    %87 = tpu.matmul %82, %84, %cst_33 {dimension_numbers = #tpu.dot_dimension_numbers<[2], [2], [1], [1], [0, 0, 0, 1, 1, 1], [0], [0]>} : vector<2x8x32xbf16>, vector<2x8x32xbf16>, vector<2x8x8xf32> -> vector<2x8x8xf32>
    "tpu.trace_stop"() : () -> ()
    %cst_34 = arith.constant 0.176776692 : f32
    %88 = vector.broadcast %cst_34 : f32 to vector<2x8x8xf32>
    %89 = arith.mulf %87, %88 : vector<2x8x8xf32>
    %cst_35 = arith.constant dense<0xFF800000> : vector<2x8xf32>
    %90 = vector.multi_reduction <maximumf>, %89, %cst_35 [2] : vector<2x8x8xf32> to vector<2x8xf32>
    %91 = vector.shape_cast %90 : vector<2x8xf32> to vector<2x8x1xf32>
    %92 = vector.broadcast %91 : vector<2x8x1xf32> to vector<2x8x8xf32>
    %93 = arith.subf %89, %92 : vector<2x8x8xf32>
    %94 = math.exp %93 : vector<2x8x8xf32>
    %cst_36 = arith.constant dense<0.000000e+00> : vector<2x8xf32>
    %95 = vector.multi_reduction <add>, %94, %cst_36 [2] : vector<2x8x8xf32> to vector<2x8xf32>
    %96 = vector.shape_cast %95 : vector<2x8xf32> to vector<2x8x1xf32>
    %97 = tpu.reciprocal %96 {approx = true} : vector<2x8x1xf32> -> vector<2x8x1xf32>
    %98 = vector.broadcast %97 : vector<2x8x1xf32> to vector<2x8x8xf32>
    %99 = arith.mulf %94, %98 : vector<2x8x8xf32>
    %100 = arith.truncf %99 : vector<2x8x8xf32> to vector<2x8x8xbf16>
    "tpu.trace_start"() <{level = 10 : i32, message = "bqk,bkd->bqd"}> : () -> ()
    %cst_37 = arith.constant dense<0.000000e+00> : vector<2x8x32xf32>
    %101 = tpu.matmul %100, %86, %cst_37 {dimension_numbers = #tpu.dot_dimension_numbers<[2], [1], [1], [2], [0, 0, 0, 1, 1, 2], [0], [0]>} : vector<2x8x8xbf16>, vector<2x8x32xbf16>, vector<2x8x32xf32> -> vector<2x8x32xf32>
    "tpu.trace_stop"() : () -> ()
    %102 = vector.shape_cast %101 : vector<2x8x32xf32> to vector<16x32xf32>
    %103 = arith.truncf %102 : vector<16x32xf32> to vector<16x32xbf16>
    %104 = vector.extract_strided_slice %53 {offsets = [32, 0], sizes = [32, 128], strides = [1, 1]} : vector<128x128xbf16> to vector<32x128xbf16>
    %cst_38 = arith.constant dense<0.000000e+00> : vector<16x128xf32>
    %105 = tpu.matmul %103, %104, %cst_38 {dimension_numbers = #tpu.dot_dimension_numbers<[1], [0], [0], [1], [0, 0, 1, 1], [], []>} : vector<16x32xbf16>, vector<32x128xbf16>, vector<16x128xf32> -> vector<16x128xf32>
    %106 = arith.addf %80, %105 : vector<16x128xf32>
    %107 = vector.extract_strided_slice %47 {offsets = [0, 0, 64], sizes = [2, 8, 32], strides = [1, 1, 1]} : vector<2x8x128xf32> to vector<2x8x32xf32>
    %108 = arith.truncf %107 : vector<2x8x32xf32> to vector<2x8x32xbf16>
    %109 = vector.extract_strided_slice %49 {offsets = [0, 0, 64], sizes = [2, 8, 32], strides = [1, 1, 1]} : vector<2x8x128xf32> to vector<2x8x32xf32>
    %110 = arith.truncf %109 : vector<2x8x32xf32> to vector<2x8x32xbf16>
    %111 = vector.extract_strided_slice %51 {offsets = [0, 0, 64], sizes = [2, 8, 32], strides = [1, 1, 1]} : vector<2x8x128xf32> to vector<2x8x32xf32>
    %112 = arith.truncf %111 : vector<2x8x32xf32> to vector<2x8x32xbf16>
    "tpu.trace_start"() <{level = 10 : i32, message = "bqd,bkd->bqk"}> : () -> ()
    %cst_39 = arith.constant dense<0.000000e+00> : vector<2x8x8xf32>
    %113 = tpu.matmul %108, %110, %cst_39 {dimension_numbers = #tpu.dot_dimension_numbers<[2], [2], [1], [1], [0, 0, 0, 1, 1, 1], [0], [0]>} : vector<2x8x32xbf16>, vector<2x8x32xbf16>, vector<2x8x8xf32> -> vector<2x8x8xf32>
    "tpu.trace_stop"() : () -> ()
    %cst_40 = arith.constant 0.176776692 : f32
    %114 = vector.broadcast %cst_40 : f32 to vector<2x8x8xf32>
    %115 = arith.mulf %113, %114 : vector<2x8x8xf32>
    %cst_41 = arith.constant dense<0xFF800000> : vector<2x8xf32>
    %116 = vector.multi_reduction <maximumf>, %115, %cst_41 [2] : vector<2x8x8xf32> to vector<2x8xf32>
    %117 = vector.shape_cast %116 : vector<2x8xf32> to vector<2x8x1xf32>
    %118 = vector.broadcast %117 : vector<2x8x1xf32> to vector<2x8x8xf32>
    %119 = arith.subf %115, %118 : vector<2x8x8xf32>
    %120 = math.exp %119 : vector<2x8x8xf32>
    %cst_42 = arith.constant dense<0.000000e+00> : vector<2x8xf32>
    %121 = vector.multi_reduction <add>, %120, %cst_42 [2] : vector<2x8x8xf32> to vector<2x8xf32>
    %122 = vector.shape_cast %121 : vector<2x8xf32> to vector<2x8x1xf32>
    %123 = tpu.reciprocal %122 {approx = true} : vector<2x8x1xf32> -> vector<2x8x1xf32>
    %124 = vector.broadcast %123 : vector<2x8x1xf32> to vector<2x8x8xf32>
    %125 = arith.mulf %120, %124 : vector<2x8x8xf32>
    %126 = arith.truncf %125 : vector<2x8x8xf32> to vector<2x8x8xbf16>
    "tpu.trace_start"() <{level = 10 : i32, message = "bqk,bkd->bqd"}> : () -> ()
    %cst_43 = arith.constant dense<0.000000e+00> : vector<2x8x32xf32>
    %127 = tpu.matmul %126, %112, %cst_43 {dimension_numbers = #tpu.dot_dimension_numbers<[2], [1], [1], [2], [0, 0, 0, 1, 1, 2], [0], [0]>} : vector<2x8x8xbf16>, vector<2x8x32xbf16>, vector<2x8x32xf32> -> vector<2x8x32xf32>
    "tpu.trace_stop"() : () -> ()
    %128 = vector.shape_cast %127 : vector<2x8x32xf32> to vector<16x32xf32>
    %129 = arith.truncf %128 : vector<16x32xf32> to vector<16x32xbf16>
    %130 = vector.extract_strided_slice %53 {offsets = [64, 0], sizes = [32, 128], strides = [1, 1]} : vector<128x128xbf16> to vector<32x128xbf16>
    %cst_44 = arith.constant dense<0.000000e+00> : vector<16x128xf32>
    %131 = tpu.matmul %129, %130, %cst_44 {dimension_numbers = #tpu.dot_dimension_numbers<[1], [0], [0], [1], [0, 0, 1, 1], [], []>} : vector<16x32xbf16>, vector<32x128xbf16>, vector<16x128xf32> -> vector<16x128xf32>
    %132 = arith.addf %106, %131 : vector<16x128xf32>
    %133 = vector.extract_strided_slice %47 {offsets = [0, 0, 96], sizes = [2, 8, 32], strides = [1, 1, 1]} : vector<2x8x128xf32> to vector<2x8x32xf32>
    %134 = arith.truncf %133 : vector<2x8x32xf32> to vector<2x8x32xbf16>
    %135 = vector.extract_strided_slice %49 {offsets = [0, 0, 96], sizes = [2, 8, 32], strides = [1, 1, 1]} : vector<2x8x128xf32> to vector<2x8x32xf32>
    %136 = arith.truncf %135 : vector<2x8x32xf32> to vector<2x8x32xbf16>
    %137 = vector.extract_strided_slice %51 {offsets = [0, 0, 96], sizes = [2, 8, 32], strides = [1, 1, 1]} : vector<2x8x128xf32> to vector<2x8x32xf32>
    %138 = arith.truncf %137 : vector<2x8x32xf32> to vector<2x8x32xbf16>
    "tpu.trace_start"() <{level = 10 : i32, message = "bqd,bkd->bqk"}> : () -> ()
    %cst_45 = arith.constant dense<0.000000e+00> : vector<2x8x8xf32>
    %139 = tpu.matmul %134, %136, %cst_45 {dimension_numbers = #tpu.dot_dimension_numbers<[2], [2], [1], [1], [0, 0, 0, 1, 1, 1], [0], [0]>} : vector<2x8x32xbf16>, vector<2x8x32xbf16>, vector<2x8x8xf32> -> vector<2x8x8xf32>
    "tpu.trace_stop"() : () -> ()
    %cst_46 = arith.constant 0.176776692 : f32
    %140 = vector.broadcast %cst_46 : f32 to vector<2x8x8xf32>
    %141 = arith.mulf %139, %140 : vector<2x8x8xf32>
    %cst_47 = arith.constant dense<0xFF800000> : vector<2x8xf32>
    %142 = vector.multi_reduction <maximumf>, %141, %cst_47 [2] : vector<2x8x8xf32> to vector<2x8xf32>
    %143 = vector.shape_cast %142 : vector<2x8xf32> to vector<2x8x1xf32>
    %144 = vector.broadcast %143 : vector<2x8x1xf32> to vector<2x8x8xf32>
    %145 = arith.subf %141, %144 : vector<2x8x8xf32>
    %146 = math.exp %145 : vector<2x8x8xf32>
    %cst_48 = arith.constant dense<0.000000e+00> : vector<2x8xf32>
    %147 = vector.multi_reduction <add>, %146, %cst_48 [2] : vector<2x8x8xf32> to vector<2x8xf32>
    %148 = vector.shape_cast %147 : vector<2x8xf32> to vector<2x8x1xf32>
    %149 = tpu.reciprocal %148 {approx = true} : vector<2x8x1xf32> -> vector<2x8x1xf32>
    %150 = vector.broadcast %149 : vector<2x8x1xf32> to vector<2x8x8xf32>
    %151 = arith.mulf %146, %150 : vector<2x8x8xf32>
    %152 = arith.truncf %151 : vector<2x8x8xf32> to vector<2x8x8xbf16>
    "tpu.trace_start"() <{level = 10 : i32, message = "bqk,bkd->bqd"}> : () -> ()
    %cst_49 = arith.constant dense<0.000000e+00> : vector<2x8x32xf32>
    %153 = tpu.matmul %152, %138, %cst_49 {dimension_numbers = #tpu.dot_dimension_numbers<[2], [1], [1], [2], [0, 0, 0, 1, 1, 2], [0], [0]>} : vector<2x8x8xbf16>, vector<2x8x32xbf16>, vector<2x8x32xf32> -> vector<2x8x32xf32>
    "tpu.trace_stop"() : () -> ()
    %154 = vector.shape_cast %153 : vector<2x8x32xf32> to vector<16x32xf32>
    %155 = arith.truncf %154 : vector<16x32xf32> to vector<16x32xbf16>
    %156 = vector.extract_strided_slice %53 {offsets = [96, 0], sizes = [32, 128], strides = [1, 1]} : vector<128x128xbf16> to vector<32x128xbf16>
    %cst_50 = arith.constant dense<0.000000e+00> : vector<16x128xf32>
    %157 = tpu.matmul %155, %156, %cst_50 {dimension_numbers = #tpu.dot_dimension_numbers<[1], [0], [0], [1], [0, 0, 1, 1], [], []>} : vector<16x32xbf16>, vector<32x128xbf16>, vector<16x128xf32> -> vector<16x128xf32>
    %158 = arith.addf %132, %157 : vector<16x128xf32>
    %159 = arith.addf %11, %158 : vector<16x128xf32>
    %c0_51 = arith.constant 0 : index
    %c0_52 = arith.constant 0 : index
    %c0_53 = arith.constant 0 : index
    %160 = vector.load %arg9[%c0_51, %c0_52, %c0_53] : memref<2x1x128xf32, #tpu.memory_space<vmem>>, vector<1x1x128xf32>
    %161 = vector.shape_cast %160 : vector<1x1x128xf32> to vector<1x128xf32>
    %162 = vector.broadcast %161 : vector<1x128xf32> to vector<16x128xf32>
    %163 = arith.addf %159, %162 : vector<16x128xf32>
    %c0_54 = arith.constant 0 : index
    %c0_55 = arith.constant 0 : index
    %c0_56 = arith.constant 0 : index
    %164 = vector.load %arg10[%c0_54, %c0_55, %c0_56] : memref<2x1x128xf32, #tpu.memory_space<vmem>>, vector<1x1x128xf32>
    %165 = vector.shape_cast %164 : vector<1x1x128xf32> to vector<1x128xf32>
    %c0_57 = arith.constant 0 : index
    %c0_58 = arith.constant 0 : index
    %c0_59 = arith.constant 0 : index
    %166 = vector.load %arg11[%c0_57, %c0_58, %c0_59] : memref<2x1x128xf32, #tpu.memory_space<vmem>>, vector<1x1x128xf32>
    %167 = vector.shape_cast %166 : vector<1x1x128xf32> to vector<1x128xf32>
    %cst_60 = arith.constant dense<0.000000e+00> : vector<16xf32>
    %168 = vector.multi_reduction <add>, %163, %cst_60 [1] : vector<16x128xf32> to vector<16xf32>
    %169 = vector.shape_cast %168 : vector<16xf32> to vector<16x1xf32>
    %cst_61 = arith.constant 1.280000e+02 : f32
    %170 = vector.broadcast %cst_61 : f32 to vector<16x1xf32>
    %171 = arith.divf %169, %170 : vector<16x1xf32>
    %172 = vector.broadcast %171 : vector<16x1xf32> to vector<16x128xf32>
    %173 = arith.subf %163, %172 : vector<16x128xf32>
    %174 = arith.mulf %173, %173 : vector<16x128xf32>
    %cst_62 = arith.constant dense<0.000000e+00> : vector<16xf32>
    %175 = vector.multi_reduction <add>, %174, %cst_62 [1] : vector<16x128xf32> to vector<16xf32>
    %176 = vector.shape_cast %175 : vector<16xf32> to vector<16x1xf32>
    %cst_63 = arith.constant 1.280000e+02 : f32
    %177 = vector.broadcast %cst_63 : f32 to vector<16x1xf32>
    %178 = arith.divf %176, %177 : vector<16x1xf32>
    %179 = vector.broadcast %171 : vector<16x1xf32> to vector<16x128xf32>
    %180 = arith.subf %163, %179 : vector<16x128xf32>
    %cst_64 = arith.constant 9.99999974E-6 : f32
    %181 = vector.broadcast %cst_64 : f32 to vector<16x1xf32>
    %182 = arith.addf %178, %181 : vector<16x1xf32>
    %183 = math.rsqrt %182 : vector<16x1xf32>
    %184 = vector.broadcast %183 : vector<16x1xf32> to vector<16x128xf32>
    %185 = arith.mulf %180, %184 : vector<16x128xf32>
    %186 = vector.broadcast %165 : vector<1x128xf32> to vector<16x128xf32>
    %187 = arith.mulf %185, %186 : vector<16x128xf32>
    %188 = vector.broadcast %167 : vector<1x128xf32> to vector<16x128xf32>
    %189 = arith.addf %187, %188 : vector<16x128xf32>
    %190 = arith.truncf %189 : vector<16x128xf32> to vector<16x128xbf16>
    %c0_65 = arith.constant 0 : index
    %c0_66 = arith.constant 0 : index
    %c0_67 = arith.constant 0 : index
    %191 = vector.load %arg12[%c0_65, %c0_66, %c0_67] : memref<2x128x256xbf16, #tpu.memory_space<vmem>>, vector<1x128x256xbf16>
    %192 = vector.shape_cast %191 : vector<1x128x256xbf16> to vector<128x256xbf16>
    %cst_68 = arith.constant dense<0.000000e+00> : vector<16x256xf32>
    %193 = tpu.matmul %190, %192, %cst_68 {dimension_numbers = #tpu.dot_dimension_numbers<[1], [0], [0], [1], [0, 0, 1, 1], [], []>} : vector<16x128xbf16>, vector<128x256xbf16>, vector<16x256xf32> -> vector<16x256xf32>
    %c0_69 = arith.constant 0 : index
    %c0_70 = arith.constant 0 : index
    %c0_71 = arith.constant 0 : index
    %194 = vector.load %arg13[%c0_69, %c0_70, %c0_71] : memref<2x1x256xf32, #tpu.memory_space<vmem>>, vector<1x1x256xf32>
    %195 = vector.shape_cast %194 : vector<1x1x256xf32> to vector<1x256xf32>
    %196 = vector.broadcast %195 : vector<1x256xf32> to vector<16x256xf32>
    %197 = arith.addf %193, %196 : vector<16x256xf32>
    %cst_72 = arith.constant 5.000000e-01 : f32
    %198 = vector.broadcast %cst_72 : f32 to vector<16x256xf32>
    %199 = arith.mulf %198, %197 : vector<16x256xf32>
    %cst_73 = arith.constant 0.707106769 : f32
    %200 = vector.broadcast %cst_73 : f32 to vector<16x256xf32>
    %201 = arith.mulf %197, %200 : vector<16x256xf32>
    %202 = math.erf %201 : vector<16x256xf32>
    %cst_74 = arith.constant 1.000000e+00 : f32
    %203 = vector.broadcast %cst_74 : f32 to vector<16x256xf32>
    %204 = arith.addf %203, %202 : vector<16x256xf32>
    %205 = arith.mulf %199, %204 : vector<16x256xf32>
    %206 = arith.truncf %205 : vector<16x256xf32> to vector<16x256xbf16>
    %c0_75 = arith.constant 0 : index
    %c0_76 = arith.constant 0 : index
    %c0_77 = arith.constant 0 : index
    %207 = vector.load %arg14[%c0_75, %c0_76, %c0_77] : memref<2x256x128xbf16, #tpu.memory_space<vmem>>, vector<1x256x128xbf16>
    %208 = vector.shape_cast %207 : vector<1x256x128xbf16> to vector<256x128xbf16>
    %cst_78 = arith.constant dense<0.000000e+00> : vector<16x128xf32>
    %209 = tpu.matmul %206, %208, %cst_78 {dimension_numbers = #tpu.dot_dimension_numbers<[1], [0], [0], [1], [0, 0, 1, 1], [], []>} : vector<16x256xbf16>, vector<256x128xbf16>, vector<16x128xf32> -> vector<16x128xf32>
    %c0_79 = arith.constant 0 : index
    %c0_80 = arith.constant 0 : index
    %c0_81 = arith.constant 0 : index
    %210 = vector.load %arg15[%c0_79, %c0_80, %c0_81] : memref<2x1x128xf32, #tpu.memory_space<vmem>>, vector<1x1x128xf32>
    %211 = vector.shape_cast %210 : vector<1x1x128xf32> to vector<1x128xf32>
    %212 = vector.broadcast %211 : vector<1x128xf32> to vector<16x128xf32>
    %213 = arith.addf %209, %212 : vector<16x128xf32>
    %214 = arith.addf %163, %213 : vector<16x128xf32>
    %c1 = arith.constant 1 : index
    %c0_82 = arith.constant 0 : index
    %c0_83 = arith.constant 0 : index
    %215 = vector.load %arg4[%c1, %c0_82, %c0_83] : memref<2x1x128xf32, #tpu.memory_space<vmem>>, vector<1x1x128xf32>
    %216 = vector.shape_cast %215 : vector<1x1x128xf32> to vector<1x128xf32>
    %c1_84 = arith.constant 1 : index
    %c0_85 = arith.constant 0 : index
    %c0_86 = arith.constant 0 : index
    %217 = vector.load %arg5[%c1_84, %c0_85, %c0_86] : memref<2x1x128xf32, #tpu.memory_space<vmem>>, vector<1x1x128xf32>
    %218 = vector.shape_cast %217 : vector<1x1x128xf32> to vector<1x128xf32>
    %cst_87 = arith.constant dense<0.000000e+00> : vector<16xf32>
    %219 = vector.multi_reduction <add>, %214, %cst_87 [1] : vector<16x128xf32> to vector<16xf32>
    %220 = vector.shape_cast %219 : vector<16xf32> to vector<16x1xf32>
    %cst_88 = arith.constant 1.280000e+02 : f32
    %221 = vector.broadcast %cst_88 : f32 to vector<16x1xf32>
    %222 = arith.divf %220, %221 : vector<16x1xf32>
    %223 = vector.broadcast %222 : vector<16x1xf32> to vector<16x128xf32>
    %224 = arith.subf %214, %223 : vector<16x128xf32>
    %225 = arith.mulf %224, %224 : vector<16x128xf32>
    %cst_89 = arith.constant dense<0.000000e+00> : vector<16xf32>
    %226 = vector.multi_reduction <add>, %225, %cst_89 [1] : vector<16x128xf32> to vector<16xf32>
    %227 = vector.shape_cast %226 : vector<16xf32> to vector<16x1xf32>
    %cst_90 = arith.constant 1.280000e+02 : f32
    %228 = vector.broadcast %cst_90 : f32 to vector<16x1xf32>
    %229 = arith.divf %227, %228 : vector<16x1xf32>
    %230 = vector.broadcast %222 : vector<16x1xf32> to vector<16x128xf32>
    %231 = arith.subf %214, %230 : vector<16x128xf32>
    %cst_91 = arith.constant 9.99999974E-6 : f32
    %232 = vector.broadcast %cst_91 : f32 to vector<16x1xf32>
    %233 = arith.addf %229, %232 : vector<16x1xf32>
    %234 = math.rsqrt %233 : vector<16x1xf32>
    %235 = vector.broadcast %234 : vector<16x1xf32> to vector<16x128xf32>
    %236 = arith.mulf %231, %235 : vector<16x128xf32>
    %237 = vector.broadcast %216 : vector<1x128xf32> to vector<16x128xf32>
    %238 = arith.mulf %236, %237 : vector<16x128xf32>
    %239 = vector.broadcast %218 : vector<1x128xf32> to vector<16x128xf32>
    %240 = arith.addf %238, %239 : vector<16x128xf32>
    %241 = arith.truncf %240 : vector<16x128xf32> to vector<16x128xbf16>
    %c1_92 = arith.constant 1 : index
    %c0_93 = arith.constant 0 : index
    %c0_94 = arith.constant 0 : index
    %242 = vector.load %arg6[%c1_92, %c0_93, %c0_94] : memref<2x128x384xbf16, #tpu.memory_space<vmem>>, vector<1x128x384xbf16>
    %243 = vector.shape_cast %242 : vector<1x128x384xbf16> to vector<128x384xbf16>
    %cst_95 = arith.constant dense<0.000000e+00> : vector<16x384xf32>
    %244 = tpu.matmul %241, %243, %cst_95 {dimension_numbers = #tpu.dot_dimension_numbers<[1], [0], [0], [1], [0, 0, 1, 1], [], []>} : vector<16x128xbf16>, vector<128x384xbf16>, vector<16x384xf32> -> vector<16x384xf32>
    %c1_96 = arith.constant 1 : index
    %c0_97 = arith.constant 0 : index
    %c0_98 = arith.constant 0 : index
    %245 = vector.load %arg7[%c1_96, %c0_97, %c0_98] : memref<2x1x384xf32, #tpu.memory_space<vmem>>, vector<1x1x384xf32>
    %246 = vector.shape_cast %245 : vector<1x1x384xf32> to vector<1x384xf32>
    %247 = vector.broadcast %246 : vector<1x384xf32> to vector<16x384xf32>
    %248 = arith.addf %244, %247 : vector<16x384xf32>
    %249 = vector.extract_strided_slice %248 {offsets = [0, 0], sizes = [16, 128], strides = [1, 1]} : vector<16x384xf32> to vector<16x128xf32>
    %250 = vector.shape_cast %249 : vector<16x128xf32> to vector<2x8x128xf32>
    %251 = vector.extract_strided_slice %248 {offsets = [0, 128], sizes = [16, 128], strides = [1, 1]} : vector<16x384xf32> to vector<16x128xf32>
    %252 = vector.shape_cast %251 : vector<16x128xf32> to vector<2x8x128xf32>
    %253 = vector.extract_strided_slice %248 {offsets = [0, 256], sizes = [16, 128], strides = [1, 1]} : vector<16x384xf32> to vector<16x128xf32>
    %254 = vector.shape_cast %253 : vector<16x128xf32> to vector<2x8x128xf32>
    %c1_99 = arith.constant 1 : index
    %c0_100 = arith.constant 0 : index
    %c0_101 = arith.constant 0 : index
    %255 = vector.load %arg8[%c1_99, %c0_100, %c0_101] : memref<2x128x128xbf16, #tpu.memory_space<vmem>>, vector<1x128x128xbf16>
    %256 = vector.shape_cast %255 : vector<1x128x128xbf16> to vector<128x128xbf16>
    %cst_102 = arith.constant 0.000000e+00 : f32
    %257 = vector.broadcast %cst_102 : f32 to vector<16x128xf32>
    %258 = vector.extract_strided_slice %250 {offsets = [0, 0, 0], sizes = [2, 8, 32], strides = [1, 1, 1]} : vector<2x8x128xf32> to vector<2x8x32xf32>
    %259 = arith.truncf %258 : vector<2x8x32xf32> to vector<2x8x32xbf16>
    %260 = vector.extract_strided_slice %252 {offsets = [0, 0, 0], sizes = [2, 8, 32], strides = [1, 1, 1]} : vector<2x8x128xf32> to vector<2x8x32xf32>
    %261 = arith.truncf %260 : vector<2x8x32xf32> to vector<2x8x32xbf16>
    %262 = vector.extract_strided_slice %254 {offsets = [0, 0, 0], sizes = [2, 8, 32], strides = [1, 1, 1]} : vector<2x8x128xf32> to vector<2x8x32xf32>
    %263 = arith.truncf %262 : vector<2x8x32xf32> to vector<2x8x32xbf16>
    "tpu.trace_start"() <{level = 10 : i32, message = "bqd,bkd->bqk"}> : () -> ()
    %cst_103 = arith.constant dense<0.000000e+00> : vector<2x8x8xf32>
    %264 = tpu.matmul %259, %261, %cst_103 {dimension_numbers = #tpu.dot_dimension_numbers<[2], [2], [1], [1], [0, 0, 0, 1, 1, 1], [0], [0]>} : vector<2x8x32xbf16>, vector<2x8x32xbf16>, vector<2x8x8xf32> -> vector<2x8x8xf32>
    "tpu.trace_stop"() : () -> ()
    %cst_104 = arith.constant 0.176776692 : f32
    %265 = vector.broadcast %cst_104 : f32 to vector<2x8x8xf32>
    %266 = arith.mulf %264, %265 : vector<2x8x8xf32>
    %cst_105 = arith.constant dense<0xFF800000> : vector<2x8xf32>
    %267 = vector.multi_reduction <maximumf>, %266, %cst_105 [2] : vector<2x8x8xf32> to vector<2x8xf32>
    %268 = vector.shape_cast %267 : vector<2x8xf32> to vector<2x8x1xf32>
    %269 = vector.broadcast %268 : vector<2x8x1xf32> to vector<2x8x8xf32>
    %270 = arith.subf %266, %269 : vector<2x8x8xf32>
    %271 = math.exp %270 : vector<2x8x8xf32>
    %cst_106 = arith.constant dense<0.000000e+00> : vector<2x8xf32>
    %272 = vector.multi_reduction <add>, %271, %cst_106 [2] : vector<2x8x8xf32> to vector<2x8xf32>
    %273 = vector.shape_cast %272 : vector<2x8xf32> to vector<2x8x1xf32>
    %274 = tpu.reciprocal %273 {approx = true} : vector<2x8x1xf32> -> vector<2x8x1xf32>
    %275 = vector.broadcast %274 : vector<2x8x1xf32> to vector<2x8x8xf32>
    %276 = arith.mulf %271, %275 : vector<2x8x8xf32>
    %277 = arith.truncf %276 : vector<2x8x8xf32> to vector<2x8x8xbf16>
    "tpu.trace_start"() <{level = 10 : i32, message = "bqk,bkd->bqd"}> : () -> ()
    %cst_107 = arith.constant dense<0.000000e+00> : vector<2x8x32xf32>
    %278 = tpu.matmul %277, %263, %cst_107 {dimension_numbers = #tpu.dot_dimension_numbers<[2], [1], [1], [2], [0, 0, 0, 1, 1, 2], [0], [0]>} : vector<2x8x8xbf16>, vector<2x8x32xbf16>, vector<2x8x32xf32> -> vector<2x8x32xf32>
    "tpu.trace_stop"() : () -> ()
    %279 = vector.shape_cast %278 : vector<2x8x32xf32> to vector<16x32xf32>
    %280 = arith.truncf %279 : vector<16x32xf32> to vector<16x32xbf16>
    %281 = vector.extract_strided_slice %256 {offsets = [0, 0], sizes = [32, 128], strides = [1, 1]} : vector<128x128xbf16> to vector<32x128xbf16>
    %cst_108 = arith.constant dense<0.000000e+00> : vector<16x128xf32>
    %282 = tpu.matmul %280, %281, %cst_108 {dimension_numbers = #tpu.dot_dimension_numbers<[1], [0], [0], [1], [0, 0, 1, 1], [], []>} : vector<16x32xbf16>, vector<32x128xbf16>, vector<16x128xf32> -> vector<16x128xf32>
    %283 = arith.addf %257, %282 : vector<16x128xf32>
    %284 = vector.extract_strided_slice %250 {offsets = [0, 0, 32], sizes = [2, 8, 32], strides = [1, 1, 1]} : vector<2x8x128xf32> to vector<2x8x32xf32>
    %285 = arith.truncf %284 : vector<2x8x32xf32> to vector<2x8x32xbf16>
    %286 = vector.extract_strided_slice %252 {offsets = [0, 0, 32], sizes = [2, 8, 32], strides = [1, 1, 1]} : vector<2x8x128xf32> to vector<2x8x32xf32>
    %287 = arith.truncf %286 : vector<2x8x32xf32> to vector<2x8x32xbf16>
    %288 = vector.extract_strided_slice %254 {offsets = [0, 0, 32], sizes = [2, 8, 32], strides = [1, 1, 1]} : vector<2x8x128xf32> to vector<2x8x32xf32>
    %289 = arith.truncf %288 : vector<2x8x32xf32> to vector<2x8x32xbf16>
    "tpu.trace_start"() <{level = 10 : i32, message = "bqd,bkd->bqk"}> : () -> ()
    %cst_109 = arith.constant dense<0.000000e+00> : vector<2x8x8xf32>
    %290 = tpu.matmul %285, %287, %cst_109 {dimension_numbers = #tpu.dot_dimension_numbers<[2], [2], [1], [1], [0, 0, 0, 1, 1, 1], [0], [0]>} : vector<2x8x32xbf16>, vector<2x8x32xbf16>, vector<2x8x8xf32> -> vector<2x8x8xf32>
    "tpu.trace_stop"() : () -> ()
    %cst_110 = arith.constant 0.176776692 : f32
    %291 = vector.broadcast %cst_110 : f32 to vector<2x8x8xf32>
    %292 = arith.mulf %290, %291 : vector<2x8x8xf32>
    %cst_111 = arith.constant dense<0xFF800000> : vector<2x8xf32>
    %293 = vector.multi_reduction <maximumf>, %292, %cst_111 [2] : vector<2x8x8xf32> to vector<2x8xf32>
    %294 = vector.shape_cast %293 : vector<2x8xf32> to vector<2x8x1xf32>
    %295 = vector.broadcast %294 : vector<2x8x1xf32> to vector<2x8x8xf32>
    %296 = arith.subf %292, %295 : vector<2x8x8xf32>
    %297 = math.exp %296 : vector<2x8x8xf32>
    %cst_112 = arith.constant dense<0.000000e+00> : vector<2x8xf32>
    %298 = vector.multi_reduction <add>, %297, %cst_112 [2] : vector<2x8x8xf32> to vector<2x8xf32>
    %299 = vector.shape_cast %298 : vector<2x8xf32> to vector<2x8x1xf32>
    %300 = tpu.reciprocal %299 {approx = true} : vector<2x8x1xf32> -> vector<2x8x1xf32>
    %301 = vector.broadcast %300 : vector<2x8x1xf32> to vector<2x8x8xf32>
    %302 = arith.mulf %297, %301 : vector<2x8x8xf32>
    %303 = arith.truncf %302 : vector<2x8x8xf32> to vector<2x8x8xbf16>
    "tpu.trace_start"() <{level = 10 : i32, message = "bqk,bkd->bqd"}> : () -> ()
    %cst_113 = arith.constant dense<0.000000e+00> : vector<2x8x32xf32>
    %304 = tpu.matmul %303, %289, %cst_113 {dimension_numbers = #tpu.dot_dimension_numbers<[2], [1], [1], [2], [0, 0, 0, 1, 1, 2], [0], [0]>} : vector<2x8x8xbf16>, vector<2x8x32xbf16>, vector<2x8x32xf32> -> vector<2x8x32xf32>
    "tpu.trace_stop"() : () -> ()
    %305 = vector.shape_cast %304 : vector<2x8x32xf32> to vector<16x32xf32>
    %306 = arith.truncf %305 : vector<16x32xf32> to vector<16x32xbf16>
    %307 = vector.extract_strided_slice %256 {offsets = [32, 0], sizes = [32, 128], strides = [1, 1]} : vector<128x128xbf16> to vector<32x128xbf16>
    %cst_114 = arith.constant dense<0.000000e+00> : vector<16x128xf32>
    %308 = tpu.matmul %306, %307, %cst_114 {dimension_numbers = #tpu.dot_dimension_numbers<[1], [0], [0], [1], [0, 0, 1, 1], [], []>} : vector<16x32xbf16>, vector<32x128xbf16>, vector<16x128xf32> -> vector<16x128xf32>
    %309 = arith.addf %283, %308 : vector<16x128xf32>
    %310 = vector.extract_strided_slice %250 {offsets = [0, 0, 64], sizes = [2, 8, 32], strides = [1, 1, 1]} : vector<2x8x128xf32> to vector<2x8x32xf32>
    %311 = arith.truncf %310 : vector<2x8x32xf32> to vector<2x8x32xbf16>
    %312 = vector.extract_strided_slice %252 {offsets = [0, 0, 64], sizes = [2, 8, 32], strides = [1, 1, 1]} : vector<2x8x128xf32> to vector<2x8x32xf32>
    %313 = arith.truncf %312 : vector<2x8x32xf32> to vector<2x8x32xbf16>
    %314 = vector.extract_strided_slice %254 {offsets = [0, 0, 64], sizes = [2, 8, 32], strides = [1, 1, 1]} : vector<2x8x128xf32> to vector<2x8x32xf32>
    %315 = arith.truncf %314 : vector<2x8x32xf32> to vector<2x8x32xbf16>
    "tpu.trace_start"() <{level = 10 : i32, message = "bqd,bkd->bqk"}> : () -> ()
    %cst_115 = arith.constant dense<0.000000e+00> : vector<2x8x8xf32>
    %316 = tpu.matmul %311, %313, %cst_115 {dimension_numbers = #tpu.dot_dimension_numbers<[2], [2], [1], [1], [0, 0, 0, 1, 1, 1], [0], [0]>} : vector<2x8x32xbf16>, vector<2x8x32xbf16>, vector<2x8x8xf32> -> vector<2x8x8xf32>
    "tpu.trace_stop"() : () -> ()
    %cst_116 = arith.constant 0.176776692 : f32
    %317 = vector.broadcast %cst_116 : f32 to vector<2x8x8xf32>
    %318 = arith.mulf %316, %317 : vector<2x8x8xf32>
    %cst_117 = arith.constant dense<0xFF800000> : vector<2x8xf32>
    %319 = vector.multi_reduction <maximumf>, %318, %cst_117 [2] : vector<2x8x8xf32> to vector<2x8xf32>
    %320 = vector.shape_cast %319 : vector<2x8xf32> to vector<2x8x1xf32>
    %321 = vector.broadcast %320 : vector<2x8x1xf32> to vector<2x8x8xf32>
    %322 = arith.subf %318, %321 : vector<2x8x8xf32>
    %323 = math.exp %322 : vector<2x8x8xf32>
    %cst_118 = arith.constant dense<0.000000e+00> : vector<2x8xf32>
    %324 = vector.multi_reduction <add>, %323, %cst_118 [2] : vector<2x8x8xf32> to vector<2x8xf32>
    %325 = vector.shape_cast %324 : vector<2x8xf32> to vector<2x8x1xf32>
    %326 = tpu.reciprocal %325 {approx = true} : vector<2x8x1xf32> -> vector<2x8x1xf32>
    %327 = vector.broadcast %326 : vector<2x8x1xf32> to vector<2x8x8xf32>
    %328 = arith.mulf %323, %327 : vector<2x8x8xf32>
    %329 = arith.truncf %328 : vector<2x8x8xf32> to vector<2x8x8xbf16>
    "tpu.trace_start"() <{level = 10 : i32, message = "bqk,bkd->bqd"}> : () -> ()
    %cst_119 = arith.constant dense<0.000000e+00> : vector<2x8x32xf32>
    %330 = tpu.matmul %329, %315, %cst_119 {dimension_numbers = #tpu.dot_dimension_numbers<[2], [1], [1], [2], [0, 0, 0, 1, 1, 2], [0], [0]>} : vector<2x8x8xbf16>, vector<2x8x32xbf16>, vector<2x8x32xf32> -> vector<2x8x32xf32>
    "tpu.trace_stop"() : () -> ()
    %331 = vector.shape_cast %330 : vector<2x8x32xf32> to vector<16x32xf32>
    %332 = arith.truncf %331 : vector<16x32xf32> to vector<16x32xbf16>
    %333 = vector.extract_strided_slice %256 {offsets = [64, 0], sizes = [32, 128], strides = [1, 1]} : vector<128x128xbf16> to vector<32x128xbf16>
    %cst_120 = arith.constant dense<0.000000e+00> : vector<16x128xf32>
    %334 = tpu.matmul %332, %333, %cst_120 {dimension_numbers = #tpu.dot_dimension_numbers<[1], [0], [0], [1], [0, 0, 1, 1], [], []>} : vector<16x32xbf16>, vector<32x128xbf16>, vector<16x128xf32> -> vector<16x128xf32>
    %335 = arith.addf %309, %334 : vector<16x128xf32>
    %336 = vector.extract_strided_slice %250 {offsets = [0, 0, 96], sizes = [2, 8, 32], strides = [1, 1, 1]} : vector<2x8x128xf32> to vector<2x8x32xf32>
    %337 = arith.truncf %336 : vector<2x8x32xf32> to vector<2x8x32xbf16>
    %338 = vector.extract_strided_slice %252 {offsets = [0, 0, 96], sizes = [2, 8, 32], strides = [1, 1, 1]} : vector<2x8x128xf32> to vector<2x8x32xf32>
    %339 = arith.truncf %338 : vector<2x8x32xf32> to vector<2x8x32xbf16>
    %340 = vector.extract_strided_slice %254 {offsets = [0, 0, 96], sizes = [2, 8, 32], strides = [1, 1, 1]} : vector<2x8x128xf32> to vector<2x8x32xf32>
    %341 = arith.truncf %340 : vector<2x8x32xf32> to vector<2x8x32xbf16>
    "tpu.trace_start"() <{level = 10 : i32, message = "bqd,bkd->bqk"}> : () -> ()
    %cst_121 = arith.constant dense<0.000000e+00> : vector<2x8x8xf32>
    %342 = tpu.matmul %337, %339, %cst_121 {dimension_numbers = #tpu.dot_dimension_numbers<[2], [2], [1], [1], [0, 0, 0, 1, 1, 1], [0], [0]>} : vector<2x8x32xbf16>, vector<2x8x32xbf16>, vector<2x8x8xf32> -> vector<2x8x8xf32>
    "tpu.trace_stop"() : () -> ()
    %cst_122 = arith.constant 0.176776692 : f32
    %343 = vector.broadcast %cst_122 : f32 to vector<2x8x8xf32>
    %344 = arith.mulf %342, %343 : vector<2x8x8xf32>
    %cst_123 = arith.constant dense<0xFF800000> : vector<2x8xf32>
    %345 = vector.multi_reduction <maximumf>, %344, %cst_123 [2] : vector<2x8x8xf32> to vector<2x8xf32>
    %346 = vector.shape_cast %345 : vector<2x8xf32> to vector<2x8x1xf32>
    %347 = vector.broadcast %346 : vector<2x8x1xf32> to vector<2x8x8xf32>
    %348 = arith.subf %344, %347 : vector<2x8x8xf32>
    %349 = math.exp %348 : vector<2x8x8xf32>
    %cst_124 = arith.constant dense<0.000000e+00> : vector<2x8xf32>
    %350 = vector.multi_reduction <add>, %349, %cst_124 [2] : vector<2x8x8xf32> to vector<2x8xf32>
    %351 = vector.shape_cast %350 : vector<2x8xf32> to vector<2x8x1xf32>
    %352 = tpu.reciprocal %351 {approx = true} : vector<2x8x1xf32> -> vector<2x8x1xf32>
    %353 = vector.broadcast %352 : vector<2x8x1xf32> to vector<2x8x8xf32>
    %354 = arith.mulf %349, %353 : vector<2x8x8xf32>
    %355 = arith.truncf %354 : vector<2x8x8xf32> to vector<2x8x8xbf16>
    "tpu.trace_start"() <{level = 10 : i32, message = "bqk,bkd->bqd"}> : () -> ()
    %cst_125 = arith.constant dense<0.000000e+00> : vector<2x8x32xf32>
    %356 = tpu.matmul %355, %341, %cst_125 {dimension_numbers = #tpu.dot_dimension_numbers<[2], [1], [1], [2], [0, 0, 0, 1, 1, 2], [0], [0]>} : vector<2x8x8xbf16>, vector<2x8x32xbf16>, vector<2x8x32xf32> -> vector<2x8x32xf32>
    "tpu.trace_stop"() : () -> ()
    %357 = vector.shape_cast %356 : vector<2x8x32xf32> to vector<16x32xf32>
    %358 = arith.truncf %357 : vector<16x32xf32> to vector<16x32xbf16>
    %359 = vector.extract_strided_slice %256 {offsets = [96, 0], sizes = [32, 128], strides = [1, 1]} : vector<128x128xbf16> to vector<32x128xbf16>
    %cst_126 = arith.constant dense<0.000000e+00> : vector<16x128xf32>
    %360 = tpu.matmul %358, %359, %cst_126 {dimension_numbers = #tpu.dot_dimension_numbers<[1], [0], [0], [1], [0, 0, 1, 1], [], []>} : vector<16x32xbf16>, vector<32x128xbf16>, vector<16x128xf32> -> vector<16x128xf32>
    %361 = arith.addf %335, %360 : vector<16x128xf32>
    %362 = arith.addf %214, %361 : vector<16x128xf32>
    %c1_127 = arith.constant 1 : index
    %c0_128 = arith.constant 0 : index
    %c0_129 = arith.constant 0 : index
    %363 = vector.load %arg9[%c1_127, %c0_128, %c0_129] : memref<2x1x128xf32, #tpu.memory_space<vmem>>, vector<1x1x128xf32>
    %364 = vector.shape_cast %363 : vector<1x1x128xf32> to vector<1x128xf32>
    %365 = vector.broadcast %364 : vector<1x128xf32> to vector<16x128xf32>
    %366 = arith.addf %362, %365 : vector<16x128xf32>
    %c1_130 = arith.constant 1 : index
    %c0_131 = arith.constant 0 : index
    %c0_132 = arith.constant 0 : index
    %367 = vector.load %arg10[%c1_130, %c0_131, %c0_132] : memref<2x1x128xf32, #tpu.memory_space<vmem>>, vector<1x1x128xf32>
    %368 = vector.shape_cast %367 : vector<1x1x128xf32> to vector<1x128xf32>
    %c1_133 = arith.constant 1 : index
    %c0_134 = arith.constant 0 : index
    %c0_135 = arith.constant 0 : index
    %369 = vector.load %arg11[%c1_133, %c0_134, %c0_135] : memref<2x1x128xf32, #tpu.memory_space<vmem>>, vector<1x1x128xf32>
    %370 = vector.shape_cast %369 : vector<1x1x128xf32> to vector<1x128xf32>
    %cst_136 = arith.constant dense<0.000000e+00> : vector<16xf32>
    %371 = vector.multi_reduction <add>, %366, %cst_136 [1] : vector<16x128xf32> to vector<16xf32>
    %372 = vector.shape_cast %371 : vector<16xf32> to vector<16x1xf32>
    %cst_137 = arith.constant 1.280000e+02 : f32
    %373 = vector.broadcast %cst_137 : f32 to vector<16x1xf32>
    %374 = arith.divf %372, %373 : vector<16x1xf32>
    %375 = vector.broadcast %374 : vector<16x1xf32> to vector<16x128xf32>
    %376 = arith.subf %366, %375 : vector<16x128xf32>
    %377 = arith.mulf %376, %376 : vector<16x128xf32>
    %cst_138 = arith.constant dense<0.000000e+00> : vector<16xf32>
    %378 = vector.multi_reduction <add>, %377, %cst_138 [1] : vector<16x128xf32> to vector<16xf32>
    %379 = vector.shape_cast %378 : vector<16xf32> to vector<16x1xf32>
    %cst_139 = arith.constant 1.280000e+02 : f32
    %380 = vector.broadcast %cst_139 : f32 to vector<16x1xf32>
    %381 = arith.divf %379, %380 : vector<16x1xf32>
    %382 = vector.broadcast %374 : vector<16x1xf32> to vector<16x128xf32>
    %383 = arith.subf %366, %382 : vector<16x128xf32>
    %cst_140 = arith.constant 9.99999974E-6 : f32
    %384 = vector.broadcast %cst_140 : f32 to vector<16x1xf32>
    %385 = arith.addf %381, %384 : vector<16x1xf32>
    %386 = math.rsqrt %385 : vector<16x1xf32>
    %387 = vector.broadcast %386 : vector<16x1xf32> to vector<16x128xf32>
    %388 = arith.mulf %383, %387 : vector<16x128xf32>
    %389 = vector.broadcast %368 : vector<1x128xf32> to vector<16x128xf32>
    %390 = arith.mulf %388, %389 : vector<16x128xf32>
    %391 = vector.broadcast %370 : vector<1x128xf32> to vector<16x128xf32>
    %392 = arith.addf %390, %391 : vector<16x128xf32>
    %393 = arith.truncf %392 : vector<16x128xf32> to vector<16x128xbf16>
    %c1_141 = arith.constant 1 : index
    %c0_142 = arith.constant 0 : index
    %c0_143 = arith.constant 0 : index
    %394 = vector.load %arg12[%c1_141, %c0_142, %c0_143] : memref<2x128x256xbf16, #tpu.memory_space<vmem>>, vector<1x128x256xbf16>
    %395 = vector.shape_cast %394 : vector<1x128x256xbf16> to vector<128x256xbf16>
    %cst_144 = arith.constant dense<0.000000e+00> : vector<16x256xf32>
    %396 = tpu.matmul %393, %395, %cst_144 {dimension_numbers = #tpu.dot_dimension_numbers<[1], [0], [0], [1], [0, 0, 1, 1], [], []>} : vector<16x128xbf16>, vector<128x256xbf16>, vector<16x256xf32> -> vector<16x256xf32>
    %c1_145 = arith.constant 1 : index
    %c0_146 = arith.constant 0 : index
    %c0_147 = arith.constant 0 : index
    %397 = vector.load %arg13[%c1_145, %c0_146, %c0_147] : memref<2x1x256xf32, #tpu.memory_space<vmem>>, vector<1x1x256xf32>
    %398 = vector.shape_cast %397 : vector<1x1x256xf32> to vector<1x256xf32>
    %399 = vector.broadcast %398 : vector<1x256xf32> to vector<16x256xf32>
    %400 = arith.addf %396, %399 : vector<16x256xf32>
    %cst_148 = arith.constant 5.000000e-01 : f32
    %401 = vector.broadcast %cst_148 : f32 to vector<16x256xf32>
    %402 = arith.mulf %401, %400 : vector<16x256xf32>
    %cst_149 = arith.constant 0.707106769 : f32
    %403 = vector.broadcast %cst_149 : f32 to vector<16x256xf32>
    %404 = arith.mulf %400, %403 : vector<16x256xf32>
    %405 = math.erf %404 : vector<16x256xf32>
    %cst_150 = arith.constant 1.000000e+00 : f32
    %406 = vector.broadcast %cst_150 : f32 to vector<16x256xf32>
    %407 = arith.addf %406, %405 : vector<16x256xf32>
    %408 = arith.mulf %402, %407 : vector<16x256xf32>
    %409 = arith.truncf %408 : vector<16x256xf32> to vector<16x256xbf16>
    %c1_151 = arith.constant 1 : index
    %c0_152 = arith.constant 0 : index
    %c0_153 = arith.constant 0 : index
    %410 = vector.load %arg14[%c1_151, %c0_152, %c0_153] : memref<2x256x128xbf16, #tpu.memory_space<vmem>>, vector<1x256x128xbf16>
    %411 = vector.shape_cast %410 : vector<1x256x128xbf16> to vector<256x128xbf16>
    %cst_154 = arith.constant dense<0.000000e+00> : vector<16x128xf32>
    %412 = tpu.matmul %409, %411, %cst_154 {dimension_numbers = #tpu.dot_dimension_numbers<[1], [0], [0], [1], [0, 0, 1, 1], [], []>} : vector<16x256xbf16>, vector<256x128xbf16>, vector<16x128xf32> -> vector<16x128xf32>
    %c1_155 = arith.constant 1 : index
    %c0_156 = arith.constant 0 : index
    %c0_157 = arith.constant 0 : index
    %413 = vector.load %arg15[%c1_155, %c0_156, %c0_157] : memref<2x1x128xf32, #tpu.memory_space<vmem>>, vector<1x1x128xf32>
    %414 = vector.shape_cast %413 : vector<1x1x128xf32> to vector<1x128xf32>
    %415 = vector.broadcast %414 : vector<1x128xf32> to vector<16x128xf32>
    %416 = arith.addf %412, %415 : vector<16x128xf32>
    %417 = arith.addf %366, %416 : vector<16x128xf32>
    %418 = arith.truncf %417 : vector<16x128xf32> to vector<16x128xbf16>
    %c0_158 = arith.constant 0 : index
    %c0_159 = arith.constant 0 : index
    %419 = vector.load %arg16[%c0_158, %c0_159] : memref<128x256xbf16, #tpu.memory_space<vmem>>, vector<128x256xbf16>
    %cst_160 = arith.constant dense<0.000000e+00> : vector<16x256xf32>
    %420 = tpu.matmul %418, %419, %cst_160 {dimension_numbers = #tpu.dot_dimension_numbers<[1], [0], [0], [1], [0, 0, 1, 1], [], []>} : vector<16x128xbf16>, vector<128x256xbf16>, vector<16x256xf32> -> vector<16x256xf32>
    %c0_161 = arith.constant 0 : index
    %c0_162 = arith.constant 0 : index
    %421 = vector.load %arg17[%c0_161, %c0_162] : memref<16x256xf32, #tpu.memory_space<vmem>>, vector<16x256xf32>
    tpu.vector_store %arg17[%c0_161, %c0_162], %420 {strides = array<i32>} : memref<16x256xf32, #tpu.memory_space<vmem>>, vector<16x256xf32>,
    return
  }
  func.func @transform_0(%arg0: i32) -> (i32, i32) {
    %c0_i32 = arith.constant 0 : i32
    %c0_i32_0 = arith.constant 0 : i32
    %c0_i32_1 = arith.constant 0 : i32
    return %c0_i32, %c0_i32_0 : i32, i32
  }
  func.func @transform_1(%arg0: i32) -> (i32, i32) {
    %c0_i32 = arith.constant 0 : i32
    %c0_i32_0 = arith.constant 0 : i32
    %c0_i32_1 = arith.constant 0 : i32
    return %c0_i32, %c0_i32_0 : i32, i32
  }
  func.func @transform_2(%arg0: i32) -> (i32, i32) {
    %c0_i32 = arith.constant 0 : i32
    %c0_i32_0 = arith.constant 0 : i32
    %c0_i32_1 = arith.constant 0 : i32
    return %c0_i32, %c0_i32_0 : i32, i32
  }
  func.func @transform_3(%arg0: i32) -> (i32, i32, i32) {
    %c0_i32 = arith.constant 0 : i32
    %c0_i32_0 = arith.constant 0 : i32
    %c0_i32_1 = arith.constant 0 : i32
    %c0_i32_2 = arith.constant 0 : i32
    return %c0_i32, %c0_i32_0, %c0_i32_1 : i32, i32, i32
  }
  func.func @transform_4(%arg0: i32) -> (i32, i32, i32) {
    %c0_i32 = arith.constant 0 : i32
    %c0_i32_0 = arith.constant 0 : i32
    %c0_i32_1 = arith.constant 0 : i32
    %c0_i32_2 = arith.constant 0 : i32
    return %c0_i32, %c0_i32_0, %c0_i32_1 : i32, i32, i32
  }
  func.func @transform_5(%arg0: i32) -> (i32, i32, i32) {
    %c0_i32 = arith.constant 0 : i32
    %c0_i32_0 = arith.constant 0 : i32
    %c0_i32_1 = arith.constant 0 : i32
    %c0_i32_2 = arith.constant 0 : i32
    return %c0_i32, %c0_i32_0, %c0_i32_1 : i32, i32, i32
  }
  func.func @transform_6(%arg0: i32) -> (i32, i32, i32) {
    %c0_i32 = arith.constant 0 : i32
    %c0_i32_0 = arith.constant 0 : i32
    %c0_i32_1 = arith.constant 0 : i32
    %c0_i32_2 = arith.constant 0 : i32
    return %c0_i32, %c0_i32_0, %c0_i32_1 : i32, i32, i32
  }
  func.func @transform_7(%arg0: i32) -> (i32, i32, i32) {
    %c0_i32 = arith.constant 0 : i32
    %c0_i32_0 = arith.constant 0 : i32
    %c0_i32_1 = arith.constant 0 : i32
    %c0_i32_2 = arith.constant 0 : i32
    return %c0_i32, %c0_i32_0, %c0_i32_1 : i32, i32, i32
  }
  func.func @transform_8(%arg0: i32) -> (i32, i32, i32) {
    %c0_i32 = arith.constant 0 : i32
    %c0_i32_0 = arith.constant 0 : i32
    %c0_i32_1 = arith.constant 0 : i32
    %c0_i32_2 = arith.constant 0 : i32
    return %c0_i32, %c0_i32_0, %c0_i32_1 : i32, i32, i32
  }
  func.func @transform_9(%arg0: i32) -> (i32, i32, i32) {
    %c0_i32 = arith.constant 0 : i32
    %c0_i32_0 = arith.constant 0 : i32
    %c0_i32_1 = arith.constant 0 : i32
    %c0_i32_2 = arith.constant 0 : i32
    return %c0_i32, %c0_i32_0, %c0_i32_1 : i32, i32, i32
  }
  func.func @transform_10(%arg0: i32) -> (i32, i32, i32) {
    %c0_i32 = arith.constant 0 : i32
    %c0_i32_0 = arith.constant 0 : i32
    %c0_i32_1 = arith.constant 0 : i32
    %c0_i32_2 = arith.constant 0 : i32
    return %c0_i32, %c0_i32_0, %c0_i32_1 : i32, i32, i32
  }
  func.func @transform_11(%arg0: i32) -> (i32, i32, i32) {
    %c0_i32 = arith.constant 0 : i32
    %c0_i32_0 = arith.constant 0 : i32
    %c0_i32_1 = arith.constant 0 : i32
    %c0_i32_2 = arith.constant 0 : i32
    return %c0_i32, %c0_i32_0, %c0_i32_1 : i32, i32, i32
  }
  func.func @transform_12(%arg0: i32) -> (i32, i32, i32) {
    %c0_i32 = arith.constant 0 : i32
    %c0_i32_0 = arith.constant 0 : i32
    %c0_i32_1 = arith.constant 0 : i32
    %c0_i32_2 = arith.constant 0 : i32
    return %c0_i32, %c0_i32_0, %c0_i32_1 : i32, i32, i32
  }
  func.func @transform_13(%arg0: i32) -> (i32, i32, i32) {
    %c0_i32 = arith.constant 0 : i32
    %c0_i32_0 = arith.constant 0 : i32
    %c0_i32_1 = arith.constant 0 : i32
    %c0_i32_2 = arith.constant 0 : i32
    return %c0_i32, %c0_i32_0, %c0_i32_1 : i32, i32, i32
  }
  func.func @transform_14(%arg0: i32) -> (i32, i32, i32) {
    %c0_i32 = arith.constant 0 : i32
    %c0_i32_0 = arith.constant 0 : i32
    %c0_i32_1 = arith.constant 0 : i32
    %c0_i32_2 = arith.constant 0 : i32
    return %c0_i32, %c0_i32_0, %c0_i32_1 : i32, i32, i32
  }
  func.func @transform_15(%arg0: i32) -> (i32, i32) {
    %c0_i32 = arith.constant 0 : i32
    %c0_i32_0 = arith.constant 0 : i32
    %c0_i32_1 = arith.constant 0 : i32
    return %c0_i32, %c0_i32_0 : i32, i32
  }
  func.func @transform_16(%arg0: i32) -> (i32, i32) {
    %c0_i32 = arith.constant 0 : i32
    %c0_i32_0 = arith.constant 0 : i32
    %c0_i32_1 = arith.constant 0 : i32
    return %c0_i32, %c0_i32_0 : i32, i32
  }
}

</mosaic_0001>

<bundles_post_ra>
// kernel: tpu_custom_call.1
= control target key start
LH: loop header
LB: loop body
LE: loop exit
PB: predicated region body
PF: predicated region fallthrough
CT: control target
= control target key end

     0   :  { %s6045_s0 = inlined_call_operand.vmem [shape: s32[16,1], index: 0, kind: input, shape index: {}]   ;;  %s6046_s1 = inlined_call_operand.hbm [shape: bf16[256,128], index: 1, kind: input, shape index: {}]   ;;  %s6047_s2 = inlined_call_operand.vmem [shape: f32[8,128], index: 2, kind: input, shape index: {}]   ;;  %s6048_s3 = inlined_call_operand.vmem [shape: f32[2,1,128], index: 3, kind: input, shape index: {}]   ;;  %s6049_s4 = inlined_call_operand.vmem [shape: f32[2,1,128], index: 4, kind: input, shape index: {}]   ;;  %s6050_s5 = inlined_call_operand.hbm [shape: bf16[2,128,384], index: 5, kind: input, shape index: {}]   ;;  %s6051_s6 = inlined_call_operand.vmem [shape: f32[2,1,384], index: 6, kind: input, shape index: {}]   ;;  %s6052_s7 = inlined_call_operand.hbm [shape: bf16[2,128,128], index: 7, kind: input, shape index: {}]   ;;  %s6053_s8 = inlined_call_operand.vmem [shape: f32[2,1,128], index: 8, kind: input, shape index: {}]   ;;  %s6054_s9 = inlined_call_operand.vmem [shape: f32[2,1,128], index: 9, kind: input, shape index: {}]   ;;  %s6055_s10 = inlined_call_operand.vmem [shape: f32[2,1,128], index: 10, kind: input, shape index: {}]   ;;  %s6056_s11 = inlined_call_operand.hbm [shape: bf16[2,128,256], index: 11, kind: input, shape index: {}]   ;;  %s6057_s12 = inlined_call_operand.vmem [shape: f32[2,1,256], index: 12, kind: input, shape index: {}]   ;;  %s6058_s13 = inlined_call_operand.hbm [shape: bf16[2,256,128], index: 13, kind: input, shape index: {}]   ;;  %s6059_s14 = inlined_call_operand.vmem [shape: f32[2,1,128], index: 14, kind: input, shape index: {}]   ;;  %s6060_s15 = inlined_call_operand.hbm [shape: bf16[128,256], index: 15, kind: input, shape index: {}]   ;;  %s6061_s16 = inlined_call_operand.hbm [shape: f32[16,256], index: 16, kind: output, shape index: {}]  }
   0x1   :  { %6063 = sst [smem:[#allocation19_spill]] %s6045_s0 }
   0x2   :  { %21 = vsyncpa [#allocation3], 0 }
   0x3   :  { %22 = vsyncpa [#allocation6], 0 }
   0x4   :  { %23 = vsyncpa [#allocation9], 0 }
   0x5   :  { %24 = vsyncpa [#allocation12], 0 }
   0x6   :  { %25 = vsyncpa [#allocation4], 0  ;;  %s5358_s21 = smov [#allocation5]  }
   0x7   :  { %s51_s22 = sshll.u32 %s5358_s21, 4  ;;  %s52_s22 = int_to_ptr.vmem [resolvable:$true] %s51_s22 }
   0x8   :  { %s5216_s23 = scalar_lea.vmem %s52_s22, 6144  ;;  %p5221_p1 = scmp.lt.s32.totalorder %s52_s22, %s52_s22 }
   0x9   :  { %p5217_p0 = scmp.ne.s32.totalorder %s52_s22, %s5216_s23  ;;  %p5222_p2 = scmp.lt.s32.totalorder %s5216_s23, %s5216_s23 }
   0xb   :  { %p5223_p3 = por %p5222_p2, %p5221_p1 }
   0xd   :  { %p5224_p4 = pnand %p5223_p3, %p5217_p0 }
   0xf   :  { %5227 = shalt.err (!%p5224_p4)
}
  0x10   :  { %s5359_s24 = smov 192   ;;  %s5360_s25 = smov 12  }
  0x11   :  { %57 = dma.hbm_to_vmem [thread:$0]  %s6050_s5, 6144, %s52_s22, [#allocation6], %s5359_s24, %s5359_s24, %s5360_s25  }
  0x12   :  { %s5361_s28 = smov [#allocation8]  }
  0x13   :  { %s83_s29 = sshll.u32 %s5361_s28, 4  ;;  %s84_s29 = int_to_ptr.vmem [resolvable:$true] %s83_s29 }
  0x14   :  { %s5236_s30 = scalar_lea.vmem %s84_s29, 4096  ;;  %p5241_p6 = scmp.lt.s32.totalorder %s84_s29, %s84_s29 }
  0x15   :  { %p5237_p5 = scmp.ne.s32.totalorder %s84_s29, %s5236_s30  ;;  %p5242_p7 = scmp.lt.s32.totalorder %s5236_s30, %s5236_s30 }
  0x17   :  { %p5243_p8 = por %p5242_p7, %p5241_p6 }
  0x19   :  { %p5244_p9 = pnand %p5243_p8, %p5237_p5 }
  0x1b   :  { %5247 = shalt.err (!%p5244_p9)
}
  0x1c   :  { %s5362_s0 = smov 128   ;;  %s5363_s17 = smov 8  }
  0x1d   :  { %89 = dma.hbm_to_vmem [thread:$0]  %s6056_s11, 4096, %s84_s29, [#allocation9], %s5362_s0, %s5362_s0, %s5363_s17  }
  0x1e   :  { %s5364_s5 = smov [#allocation2]  }
  0x1f   :  { %s33_s20 = sshll.u32 %s5364_s5, 4  ;;  %s34_s20 = int_to_ptr.vmem [resolvable:$true] %s33_s20 }
  0x20   :  { %s5256_s21 = scalar_lea.vmem %s34_s20, 2048  ;;  %p5261_p11 = scmp.lt.s32.totalorder %s34_s20, %s34_s20 }
  0x21   :  { %p5257_p10 = scmp.ne.s32.totalorder %s34_s20, %s5256_s21  ;;  %p5262_p12 = scmp.lt.s32.totalorder %s5256_s21, %s5256_s21 }
  0x23   :  { %p5263_p13 = por %p5262_p12, %p5261_p11 }
  0x25   :  { %p5264_p0 = pnand %p5263_p13, %p5257_p10 }
  0x27   :  { %5267 = shalt.err (!%p5264_p0)
}
  0x28   :  { %s5365_s22 = smov 64   ;;  %s5366_s23 = smov 4  }
  0x29   :  { %39 = dma.hbm_to_vmem [thread:$0]  %s6046_s1, 2048, %s34_s20, [#allocation3], %s5365_s22, %s5365_s22, %s5366_s23  }
  0x2a   :  { %s5367_s26 = smov [#allocation7]   ;;  %s5368_s27 = smov [#allocation10]  }
  0x2b   :  { %s65_s11 = sshll.u32 %s5367_s26, 4  ;;  %s97_s28 = sshll.u32 %s5368_s27, 4  ;;  %s66_s11 = int_to_ptr.vmem [resolvable:$true] %s65_s11  ;;  %s98_s28 = int_to_ptr.vmem [resolvable:$true] %s97_s28 }
  0x2c   :  { %s5276_s29 = scalar_lea.vmem %s66_s11, 2048  ;;  %p5281_p2 = scmp.lt.s32.totalorder %s66_s11, %s66_s11 }
  0x2d   :  { %p5277_p1 = scmp.ne.s32.totalorder %s66_s11, %s5276_s29  ;;  %p5282_p3 = scmp.lt.s32.totalorder %s5276_s29, %s5276_s29 }
  0x2f   :  { %p5283_p4 = por %p5282_p3, %p5281_p2 }
  0x31   :  { %p5284_p5 = pnand %p5283_p4, %p5277_p1 }
  0x33   :  { %5287 = shalt.err (!%p5284_p5)
}
  0x34   :  { %71 = dma.hbm_to_vmem [thread:$0]  %s6052_s7, 2048, %s66_s11, [#allocation6], %s5365_s22, %s5365_s22, %s5366_s23  }
  0x35   :  { %s5296_s1 = scalar_lea.vmem %s98_s28, 4096  ;;  %p5301_p7 = scmp.lt.s32.totalorder %s98_s28, %s98_s28 }
  0x36   :  { %p5297_p6 = scmp.ne.s32.totalorder %s98_s28, %s5296_s1  ;;  %p5302_p8 = scmp.lt.s32.totalorder %s5296_s1, %s5296_s1 }
  0x38   :  { %p5303_p9 = por %p5302_p8, %p5301_p7 }
  0x3a   :  { %p5304_p10 = pnand %p5303_p9, %p5297_p6 }
  0x3c   :  { %5307 = shalt.err (!%p5304_p10)
}
  0x3d   :  { %103 = dma.hbm_to_vmem [thread:$0]  %s6058_s13, 4096, %s98_s28, [#allocation9], %s5365_s22, %s5365_s22, %s5366_s23  }
  0x3e   :  { %s5369_s20 = smov [#allocation11]  }
  0x3f   :  { %s111_s21 = sshll.u32 %s5369_s20, 4  ;;  %s112_s21 = int_to_ptr.vmem [resolvable:$true] %s111_s21 }
  0x40   :  { %s5316_s24 = scalar_lea.vmem %s112_s21, 2048  ;;  %p5321_p12 = scmp.lt.s32.totalorder %s112_s21, %s112_s21 }
  0x41   :  { %p5317_p11 = scmp.ne.s32.totalorder %s112_s21, %s5316_s24  ;;  %p5322_p13 = scmp.lt.s32.totalorder %s5316_s24, %s5316_s24 }
  0x43   :  { %p5323_p0 = por %p5322_p13, %p5321_p12 }
  0x45   :  { %p5324_p1 = pnand %p5323_p0, %p5317_p11 }
  0x47   :  { %5327 = shalt.err (!%p5324_p1)
}
  0x48   :  { %117 = dma.hbm_to_vmem [thread:$0]  %s6060_s15, 2048, %s112_s21, [#allocation12], %s5362_s0, %s5362_s0, %s5363_s17  }
  0x49   :  { %5348 = dma.done.wait [#allocation3], 2048  }
  0x4a   :  { %5349 = vsyncadd [#allocation3], 4294965248 }
  0x4b   :  { %5350 = dma.done.wait [#allocation6], 8192  }
  0x4c   :  { %5351 = vsyncadd [#allocation6], 4294959104 }
  0x4d   :  { %5352 = dma.done.wait [#allocation9], 8192  }
  0x4e   :  { %5353 = vsyncadd [#allocation9], 4294959104 }
  0x4f   :  { %5354 = dma.done.wait [#allocation12], 2048  }
  0x50   :  { %5355 = vsyncadd [#allocation12], 4294965248  ;;  %v5370_v0 = vmov 0   ;;  %s6064_s26 = sld [smem:[#allocation19_spill]]  ;;  %v4912_v3 = vld [vmem:[#allocation2 + $0x78] sm:$0xff]   ;;  %v4914_v5 = vld [vmem:[#allocation2 + $0x70] sm:$0xff]   ;;  %v139_v19 = vlaneseq }
  0x51   :  { %4911 = vset.pattern.permute.xlu0 %v5370_v0  ;;  %583 = vmatprep.mubr.bf16.mxu1 %v5370_v0  ;;  %v4913_v4 = vld [vmem:[#allocation2 + $0x38] sm:$0xff]   ;;  %v4915_v6 = vld [vmem:[#allocation2 + $0x30] sm:$0xff]   ;;  %v4916_v7 = vld [vmem:[#allocation2 + $0x68] sm:$0xff]   ;;  %v5371_v24 = vmov 1.0|1.0   ;;  %v5372_v36 = vmov 0.0  }
  0x52   :  { %4422 = vmatprep.subr.bf16.mxu0 %v4912_v3  ;;  %v4917_v8 = vld [vmem:[#allocation2 + $0x28] sm:$0xff]   ;;  %v4918_v9 = vld [vmem:[#allocation2 + $0x60] sm:$0xff]   ;;  %v4920_v11 = vld [vmem:[#allocation2 + $0x58] sm:$0xff]   ;;  %v140_v20 = vand.u32 127, %v139_v19  ;;  %vm5373_vm6 = vmmov 0   ;;  %vm657_vm7 = vcmask 261120  }
  0x53   :  { %4423 = vmatpush3.bf16.msra.mxu0 %v4913_v4  ;;  %v4919_v10 = vld [vmem:[#allocation2 + $0x20] sm:$0xff]   ;;  %v4921_v12 = vld [vmem:[#allocation2 + $0x18] sm:$0xff]   ;;  %v4922_v13 = vld [vmem:[#allocation2 + $0x50] sm:$0xff]   ;;  %s5374_s1 = smov 96   ;;  %vm780_vm8 = vcmask 1043456   ;;  %vm752_vm9 = vcmask 64512  }
  0x54   :  { %4424 = vmatprep.subr.bf16.mxu0 %v4914_v5  ;;  %v4923_v14 = vld [vmem:[#allocation2 + $0x10] sm:$0xff]   ;;  %v4924_v15 = vld [vmem:[#allocation2 + $0x48] sm:$0xff]   ;;  %v4926_v17 = vld [vmem:[#allocation2 + $0x40] sm:$0xff]   ;;  %v141_v22 = vadd.s32 128, %v140_v20  ;;  %s5375_s19 = smov 32   ;;  %s5376_s18 = smov [#allocation13]  }
  0x55   :  { %v4925_v16 = vld [vmem:[#allocation2 + $0x8] sm:$0xff]   ;;  %v4927_v18 = vld [vmem:[#allocation2] sm:$0xff]   ;;  %v4931_v37 = vld [vmem:[#allocation5 + $0xb0] ss:$12 sps:$4 sm:$0xff]  }
  0x56   :  { %v137_v1 = vld [vmem:[%s6064_s26] sm:$0xff]  ;;  %v138_v2 = vld [vmem:[%s6064_s26 + $0x8] sm:$0xff]  ;;  %v4934_v47 = vld [vmem:[#allocation5 + $0x90] ss:$12 sps:$4 sm:$0xff]  }
  0x57   :  { %143 = vperm.xlu0 %4911, %v137_v1   ;;  %4425 = vmatpush3.bf16.msra.mxu0 %v4915_v6  ;;  %v194_v26 = vld [vmem:[%s6047_s2] sm:$0xff]  ;;  %v4928_v34 = vld [vmem:[#allocation5 + $0xac] ss:$12 sps:$4 sm:$0xff]   ;;  %v4930_v35 = vld [vmem:[#allocation5 + $0xa8] ss:$12 sps:$4 sm:$0xff]  }
  0x58   :  { %4426 = vmatprep.subr.bf16.mxu0 %v4916_v7  ;;  %551 = vmatprep.subr.bf16.mxu1 %v4928_v34  ;;  %v4932_v46 = vld [vmem:[#allocation5 + $0x94] ss:$12 sps:$4 sm:$0xff]   ;;  %v4935_v48 = vld [vmem:[#allocation5 + $0x98] ss:$12 sps:$4 sm:$0xff]   ;;  %v4936_v49 = vld [vmem:[#allocation5 + $0x7c] ss:$12 sps:$4 sm:$0xff]  }
  0x59   :  { %552 = vmatpush1.bf16.msra.mxu1 %v4930_v35  ;;  %v4938_v50 = vld [vmem:[#allocation5 + $0x78] ss:$12 sps:$4 sm:$0xff]   ;;  %v4939_v51 = vld [vmem:[#allocation5 + $0x80] ss:$12 sps:$4 sm:$0xff]   ;;  %v4943_v54 = vld [vmem:[#allocation5 + $0x68] ss:$12 sps:$4 sm:$0xff]  }
  0x5a   :  { %553 = vmatprep.subr.bf16.mxu1 %v4932_v46  ;;  %v4940_v52 = vld [vmem:[#allocation5 + $0x64] ss:$12 sps:$4 sm:$0xff]   ;;  %v4942_v53 = vld [vmem:[#allocation5 + $0x60] ss:$12 sps:$4 sm:$0xff]   ;;  %v4946_v56 = vld [vmem:[#allocation5 + $0x48] ss:$12 sps:$4 sm:$0xff]  }
  0x5b   :  { %146 = vperm.xlu0 %4911, %v138_v2   ;;  %4427 = vmatpush3.bf16.msra.mxu0 %v4917_v8  ;;  %v4944_v55 = vld [vmem:[#allocation5 + $0x4c] ss:$12 sps:$4 sm:$0xff]   ;;  %v4947_v57 = vld [vmem:[#allocation5 + $0x50] ss:$12 sps:$4 sm:$0xff]   ;;  %v4948_v58 = vld [vmem:[#allocation5 + $0x34] ss:$12 sps:$4 sm:$0xff]  }
  0x5c   :  { %4428 = vmatprep.subr.bf16.mxu0 %v4918_v9  ;;  %v4950_v59 = vld [vmem:[#allocation5 + $0x30] ss:$12 sps:$4 sm:$0xff]   ;;  %v4951_v60 = vld [vmem:[#allocation5 + $0x38] ss:$12 sps:$4 sm:$0xff]   ;;  %v4955_v63 = vld [vmem:[#allocation5 + $0x20] ss:$12 sps:$4 sm:$0xff]  }
  0x5d   :  { %554 = vmatpush1.bf16.msra.mxu1 %v4934_v47  ;;  %v4952_v61 = vld [vmem:[#allocation5 + $0x1c] ss:$12 sps:$4 sm:$0xff]   ;;  %v4954_v62 = vld [vmem:[#allocation5 + $0x18] ss:$12 sps:$4 sm:$0xff]   ;;  %v4958_v2 = vld [vmem:[#allocation5] ss:$12 sps:$4 sm:$0xff]  }
  0x5e   :  { %555 = vmatprep.subr.bf16.mxu1 %v4936_v49  ;;  %v4956_v1 = vld [vmem:[#allocation5 + $0x4] ss:$12 sps:$4 sm:$0xff]   ;;  %v4959_v3 = vld [vmem:[#allocation5 + $0x8] ss:$12 sps:$4 sm:$0xff]  }
  0x5f   :  { %4429 = vmatpush3.bf16.msra.mxu0 %v4919_v10 }
  0x60   :  { %4430 = vmatprep.subr.bf16.mxu0 %v4920_v11 }
  0x61   :  { %556 = vmatpush1.bf16.msra.mxu1 %v4938_v50 }
  0x62   :  { %557 = vmatprep.subr.bf16.mxu1 %v4940_v52 }
  0x63   :  { %4431 = vmatpush3.bf16.msra.mxu0 %v4921_v12  ;;  %v4218_v12 = vld [vmem:[%s6048_s3] ss:$0 sm:$0xff] }
  0x64   :  { %4432 = vmatprep.subr.bf16.mxu0 %v4922_v13 }
  0x65   :  { %558 = vmatpush1.bf16.msra.mxu1 %v4942_v53 }
  0x66   :  { %559 = vmatprep.subr.bf16.mxu1 %v4944_v55 }
  0x67   :  { %4433 = vmatpush3.bf16.msra.mxu0 %v4923_v14 }
  0x68   :  { %4434 = vmatprep.subr.bf16.mxu0 %v4924_v15 }
  0x69   :  { %560 = vmatpush1.bf16.msra.mxu1 %v4946_v56 }
  0x6a   :  { %561 = vmatprep.subr.bf16.mxu1 %v4948_v58 }
  0x6b   :  { %4435 = vmatpush3.bf16.msra.mxu0 %v4925_v16  ;;  %v4219_v16 = vld [vmem:[%s6049_s4] ss:$0 sm:$0xff] }
  0x6c   :  { %4436 = vmatprep.subr.bf16.mxu0 %v4926_v17 }
  0x6d   :  { %562 = vmatpush1.bf16.msra.mxu1 %v4950_v59 }
  0x6e   :  { %563 = vmatprep.subr.bf16.mxu1 %v4952_v61 }
  0x6f   :  { %4437 = vmatpush3.bf16.msra.mxu0 %v4927_v18 }
  0x70   :  { %4594 = vmatprep.subr.bf16.mxu0 %v5372_v36 }
  0x71   :  { %564 = vmatpush1.bf16.msra.mxu1 %v4954_v62 }
  0x72   :  { %565 = vmatprep.subr.bf16.mxu1 %v4956_v1 }
  0x75   :  { %566 = vmatpush1.bf16.msra.mxu1 %v4958_v2 }
  0x76   :  { %4614 = vmatprep.subr.bf16.mxu1 %v5372_v36 }
  0xd2   :  { %v144_v21 = vpop.permute.xlu0 %143 }
  0xd3   :  { %vm148_vm0 = vcmp.eq.s32.totalorder %v140_v20, %v144_v21  ;;  %vm149_vm4 = vcmp.eq.s32.totalorder %v141_v22, %v144_v21 }
  0xd6   :  { %v147_v23 = vpop.permute.xlu0 %146 }
  0xd7   :  { %vm150_vm1 = vcmp.eq.s32.totalorder %v140_v20, %v147_v23  ;;  %vm151_vm2 = vcmp.eq.s32.totalorder %v141_v22, %v147_v23  ;;  %v5547_v22 = vshrl.u32 %v139_v19, 7 }
  0xd8   :  { %vm4216_vm3 = vmpackc.low %vm150_vm1, %vm148_vm0 }
  0xd9   :  { %vm4214_vm5 = vmpackc.low %vm151_vm2, %vm149_vm4  ;;  %v5550_v23 = vsub.s32 0, %v5547_v22 }
  0xda   :  { %4215 = vmatprep.mubr.msk.bf16.mxu0 %vm4214_vm5, %v5371_v24 }
  0xdb   :  { %4217 = vmatmul.mubr.msk.bf16.vlgmr.msra.gmra.mxu0 %vm4216_vm3, %v5371_v24  ;;  %v406_v24 = vld [vmem:[%s6051_s6] sm:$0x7] }
  0xdc   :  { %4595 = vmatpush3.bf16.msra.mxu0 %v4931_v37  ;;  %4610 = vmatprep.mubr.msk.bf16.mxu0 %vm5373_vm6, %v5372_v36 }
  0xdd   :  { %4596 = vmatprep.subr.bf16.mxu0 %v5372_v36 }
  0xe0   :  { %4597 = vmatpush3.bf16.msra.mxu0 %v4935_v48 }
  0xe1   :  { %4598 = vmatprep.subr.bf16.mxu0 %v5372_v36 }
  0xe4   :  { %4599 = vmatpush3.bf16.msra.mxu0 %v4939_v51 }
  0xe5   :  { %4600 = vmatprep.subr.bf16.mxu0 %v5372_v36 }
  0xe8   :  { %4601 = vmatpush3.bf16.msra.mxu0 %v4943_v54 }
  0xe9   :  { %4602 = vmatprep.subr.bf16.mxu0 %v5372_v36 }
  0xec   :  { %4603 = vmatpush3.bf16.msra.mxu0 %v4947_v57 }
  0xed   :  { %4604 = vmatprep.subr.bf16.mxu0 %v5372_v36 }
  0xf0   :  { %4605 = vmatpush3.bf16.msra.mxu0 %v4951_v60 }
  0xf1   :  { %4606 = vmatprep.subr.bf16.mxu0 %v5372_v36 }
  0xf4   :  { %4607 = vmatpush3.bf16.msra.mxu0 %v4955_v63 }
  0xf5   :  { %4608 = vmatprep.subr.bf16.mxu0 %v5372_v36 }
  0xf8   :  { %4609 = vmatpush3.bf16.msra.mxu0 %v4959_v3 }
  0xf9   :  { %4662 = vmatprep.subr.bf16.mxu0 %v5372_v36 }
 0x19b   :  { %v4438_v25 = vpop.f32.mrf.mxu0 }
 0x19d   :  { %v4439_v27 = vpop.f32.mrf.mxu0 }
 0x19e   :  { %v4440_v28 = vadd.f32 %v4439_v27, %v4438_v25  ;;  %v5556_v25 = vsub.s32 1, %v5547_v22  ;;  %v418_v27 = vsub.s32 2, %v5547_v22 }
 0x19f   :  { %v4441_v29 = vpop.f32.mrf.mxu0 }
 0x1a0   :  { %v5506_v30 = vadd.f32 %v4440_v28, %v194_v26  ;;  %v415_v28 = vrot.slane %v406_v24, %v5556_v25  ;;  %v419_v37 = vrot.slane %v406_v24, %v418_v27 }
 0x1a1   :  { %v4442_v31 = vpop.f32.mrf.mxu0 }
 0x1a2   :  { %v4443_v32 = vadd.f32 %v4442_v31, %v4441_v29  ;;  %334 = vadd.xlane.f32.xlu1 %v5506_v30 }
 0x1a4   :  { %v5509_v33 = vadd.f32 %v4443_v32, %v194_v26  ;;  %v411_v26 = vrot.slane %v406_v24, %v5550_v23 }
 0x1a6   :  { %336 = vadd.xlane.f32.xlu1 %v5509_v33 }
 0x22b   :  { %v335_v38 = vpop.xlane.xlu1 %334 }
 0x22c   :  { %v339_v39 = vmul.f32 0.0078125, %v335_v38 }
 0x22e   :  { %v5515_v40 = vsub.f32 %v5506_v30, %v339_v39 }
 0x22f   :  { %v337_v41 = vpop.xlane.xlu1 %336 }
 0x230   :  { %v340_v42 = vmul.f32 0.0078125, %v337_v41  ;;  %v343_v43 = vmul.f32 %v5515_v40, %v5515_v40 }
 0x232   :  { %v5520_v44 = vsub.f32 %v5509_v33, %v340_v42  ;;  %345 = vadd.xlane.f32.xlu0 %v343_v43 }
 0x234   :  { %v344_v45 = vmul.f32 %v5520_v44, %v5520_v44 }
 0x236   :  { %347 = vadd.xlane.f32.xlu1 %v344_v45 }
 0x2bb   :  { %v346_v4 = vpop.xlane.xlu0 %345 }
 0x2bc   :  { %v349_v5 = vmul.f32 0.0078125, %v346_v4 }
 0x2be   :  { %v351_v6 = vadd.f32 1e-05, %v349_v5 }
 0x2bf   :  { %v348_v7 = vpop.xlane.xlu1 %347 }
 0x2c0   :  { %5112 = vrsqrt.f32 %v351_v6  ;;  %v350_v8 = vmul.f32 0.0078125, %v348_v7 }
 0x2c2   :  { %v352_v9 = vadd.f32 1e-05, %v350_v8 }
 0x2c4   :  { %5114 = vrsqrt.f32 %v352_v9 }
 0x2cd   :  { %v5113_v10 = vpop.eup %5112 }
 0x2ce   :  { %v355_v11 = vmul.f32 %v5113_v10, %v5515_v40 }
 0x2d0   :  { %v363_v15 = vmul.f32 %v4218_v12, %v355_v11 }
 0x2d1   :  { %v5115_v13 = vpop.eup %5114 }
 0x2d2   :  { %v356_v14 = vmul.f32 %v5115_v13, %v5520_v44  ;;  %v371_v18 = vadd.f32 %v4219_v16, %v363_v15 }
 0x2d4   :  { %v364_v17 = vmul.f32 %v4218_v12, %v356_v14 }
 0x2d6   :  { %v372_v20 = vadd.f32 %v4219_v16, %v364_v17 }
 0x2d8   :  { %v373_v21 = vpack.c.bf16 %v372_v20, %v371_v18 }
 0x2da   :  { %584 = vmatmul.mubr.bf16.vlgmr.msra.gmra.mxu1 %v373_v21  ;;  %4611 = vmatmul.mubr.bf16.vlgmr.msra.gmra.mxu0 %v373_v21 }
 0x2db   :  { %4616 = vmatprep.mubr.msk.bf16.mxu1 %vm5373_vm6, %v5372_v36  ;;  %4666 = vmatprep.mubr.msk.bf16.mxu0 %vm5373_vm6, %v5372_v36 }
 0x39a   :  { %v585_v29 = vpop.f32.mrf.mxu1  ;;  %v628_v31 = vpop.f32.mrf.mxu0 }
 0x39b   :  { %v586_v19 = vadd.f32 %v585_v29, %v411_v26  ;;  %v629_v48 = vadd.f32 %v628_v31, %v419_v37 }
 0x39c   :  { %v587_v32 = vpop.f32.mrf.mxu1  ;;  %v4612_v34 = vpop.f32.mrf.mxu0 }
 0x39d   :  { %v5561_v35 = vpack.c.bf16 %v586_v19, %v586_v19  ;;  %v588_v38 = vadd.f32 %v587_v32, %v415_v28  ;;  %v5581_v51 = vpack.c.bf16 %v629_v48, %v629_v48 }
 0x39e   :  { %v589_v39 = vpop.f32.mrf.mxu1  ;;  %v631_v40 = vpop.f32.mrf.mxu0 }
 0x39f   :  { %v5565_v41 = vpack.c.bf16 %v588_v38, %v588_v38  ;;  %v632_v42 = vadd.f32 %v631_v40, %v419_v37  ;;  %872 = vrot.lane.b32.xlu0 %v5561_v35, %s5374_s1  ;;  %v590_v50 = vadd.f32 %v589_v39, %v411_v26  ;;  %v782_v53 = vsel %vm780_vm8, %v5581_v51, 0 }
 0x3a0   :  { %v591_v43 = vpop.f32.mrf.mxu1  ;;  %v4613_v44 = vpop.f32.mrf.mxu0 }
 0x3a1   :  { %v592_v45 = vadd.f32 %v591_v43, %v415_v28  ;;  %v662_v46 = vsel %vm657_vm7, %v5565_v41, 0  ;;  %v5583_v52 = vpack.c.bf16 %v590_v50, %v590_v50  ;;  %v5602_v16 = vpack.c.bf16 %v632_v42, %v632_v42 }
 0x3a2   :  { %4615 = vmatpush3.bf16.xpose.msra.mxu1 %v662_v46 }
 0x3a3   :  { %4620 = vmatprep.subr.bf16.mxu1 %v5372_v36  ;;  %v5572_v47 = vpack.c.bf16 %v592_v45, %v592_v45  ;;  %v828_v20 = vsel %vm780_vm8, %v5602_v16, 0 }
 0x3a5   :  { %v708_v49 = vsel %vm657_vm7, %v5572_v47, 0 }
 0x3a9   :  { %4617 = vmatmul.mubr.msk.bf16.vlgmr.msra.gmra.mxu1 %vm657_vm7, %v5561_v35 }
 0x3aa   :  { %4621 = vmatpush3.bf16.xpose.msra.mxu1 %v708_v49  ;;  %4622 = vmatprep.mubr.msk.bf16.mxu1 %vm5373_vm6, %v5372_v36 }
 0x3ab   :  { %4626 = vmatprep.subr.bf16.mxu1 %v5372_v36 }
 0x3b1   :  { %4623 = vmatmul.mubr.msk.bf16.vlgmr.msra.gmra.mxu1 %vm657_vm7, %v5583_v52 }
 0x3b2   :  { %4627 = vmatpush3.bf16.msra.mxu1 %v782_v53  ;;  %4628 = vmatprep.mubr.msk.bf16.mxu1 %vm5373_vm6, %v5372_v36 }
 0x3b3   :  { %4632 = vmatprep.subr.bf16.mxu1 %v5372_v36 }
 0x411   :  { %v873_v19 = vpop.permute.xlu0 %872 }
 0x469   :  { %v698_v54 = vpop.f32.mrf.mxu1 }
 0x46a   :  { %v750_v55 = vmul.f32 0.17677669, %v698_v54 }
 0x46b   :  { %v4618_v56 = vpop.f32.mrf.mxu1 }
 0x46c   :  { %v753_v57 = vsel %vm752_vm9, %v750_v55, -inf }
 0x46d   :  { %754 = vmax.xlane.f32.xlu1 %v753_v57  ;;  %v701_v58 = vpop.f32.mrf.mxu1 }
 0x46f   :  { %v4619_v59 = vpop.f32.mrf.mxu1 }
 0x471   :  { %v744_v60 = vpop.f32.mrf.mxu1 }
 0x472   :  { %v751_v61 = vmul.f32 0.17677669, %v744_v60 }
 0x473   :  { %v4624_v62 = vpop.f32.mrf.mxu1 }
 0x474   :  { %v756_v63 = vsel %vm752_vm9, %v751_v61, -inf }
 0x475   :  { %757 = vmax.xlane.f32.xlu1 %v756_v63  ;;  %v747_v1 = vpop.f32.mrf.mxu1 }
 0x477   :  { %v4625_v2 = vpop.f32.mrf.mxu1 }
 0x4f6   :  { %v755_v3 = vpop.xlane.xlu1 %754 }
 0x4f7   :  { %v759_v4 = vsub.f32 %v750_v55, %v755_v3 }
 0x4f9   :  { %v761_v5 = vmul.f32 1.442695, %v759_v4 }
 0x4fb   :  { %5116 = vpow2.f32 %v761_v5 }
 0x4fe   :  { %v758_v6 = vpop.xlane.xlu1 %757 }
 0x4ff   :  { %v760_v7 = vsub.f32 %v751_v61, %v758_v6 }
 0x501   :  { %v763_v8 = vmul.f32 1.442695, %v760_v7 }
 0x503   :  { %5118 = vpow2.f32 %v763_v8 }
 0x508   :  { %v5117_v9 = vpop.eup %5116 }
 0x509   :  { %v765_v10 = vsel %vm752_vm9, %v5117_v9, 0.0 }
 0x50a   :  { %766 = vadd.xlane.f32.xlu1 %v765_v10 }
 0x510   :  { %v5119_v11 = vpop.eup %5118 }
 0x511   :  { %v768_v12 = vsel %vm752_vm9, %v5119_v11, 0.0 }
 0x512   :  { %769 = vadd.xlane.f32.xlu1 %v768_v12 }
 0x523   :  { %875 = vrot.lane.b32.xlu1 %v5565_v41, %s5374_s1 }
 0x527   :  { %927 = vrot.lane.b32.xlu1 %v5572_v47, %s5374_s1 }
 0x52b   :  { %924 = vrot.lane.b32.xlu1 %v5583_v52, %s5374_s1 }
 0x593   :  { %v767_v13 = vpop.xlane.xlu1 %766 }
 0x594   :  { %5120 = vrcp.f32 %v767_v13 }
 0x59b   :  { %v770_v14 = vpop.xlane.xlu1 %769 }
 0x59c   :  { %5122 = vrcp.f32 %v770_v14 }
 0x59f   :  { %v876_v26 = vpop.permute.xlu1 %875 }
 0x5a0   :  { %v881_v29 = vsel %vm657_vm7, %v876_v26, 0 }
 0x5a1   :  { %v5121_v15 = vpop.eup %5120 }
 0x5a2   :  { %v773_v17 = vmul.f32 %v5121_v15, %v5117_v9 }
 0x5a3   :  { %v928_v31 = vpop.permute.xlu1 %927 }
 0x5a4   :  { %v775_v18 = vpack.c.bf16 %v773_v17, %v773_v17  ;;  %v933_v32 = vsel %vm657_vm7, %v928_v31, 0 }
 0x5a6   :  { %4629 = vmatmul.mubr.msk.bf16.vlgmr.msra.gmra.mxu1 %vm752_vm9, %v775_v18 }
 0x5a7   :  { %4633 = vmatpush3.bf16.msra.mxu1 %v828_v20  ;;  %4634 = vmatprep.mubr.msk.bf16.mxu1 %vm5373_vm6, %v5372_v36  ;;  %v925_v34 = vpop.permute.xlu1 %924 }
 0x5a8   :  { %4638 = vmatprep.subr.bf16.mxu1 %v5372_v36 }
 0x5a9   :  { %v5123_v21 = vpop.eup %5122 }
 0x5aa   :  { %v774_v24 = vmul.f32 %v5123_v21, %v5119_v11 }
 0x5ac   :  { %v776_v28 = vpack.c.bf16 %v774_v24, %v774_v24  ;;  %v4960_v24 = vld [vmem:[#allocation7 + $0x8] sm:$0xff]  }
 0x5ae   :  { %4635 = vmatmul.mubr.msk.bf16.vlgmr.msra.gmra.mxu1 %vm752_vm9, %v776_v28 }
 0x5af   :  { %4639 = vmatpush3.bf16.xpose.msra.mxu1 %v881_v29  ;;  %4640 = vmatprep.mubr.msk.bf16.mxu1 %vm5373_vm6, %v5372_v36  ;;  %v4961_v29 = vld [vmem:[#allocation7] sm:$0xff]  }
 0x5b0   :  { %4644 = vmatprep.subr.bf16.mxu1 %v5372_v36 }
 0x5b6   :  { %4641 = vmatmul.mubr.msk.bf16.vlgmr.msra.gmra.mxu1 %vm657_vm7, %v873_v19 }
 0x5b7   :  { %4645 = vmatpush3.bf16.xpose.msra.mxu1 %v933_v32  ;;  %4646 = vmatprep.mubr.msk.bf16.mxu1 %vm5373_vm6, %v5372_v36 }
 0x5b8   :  { %4650 = vmatprep.subr.bf16.mxu1 %v5372_v36 }
 0x5be   :  { %4647 = vmatmul.mubr.msk.bf16.vlgmr.msra.gmra.mxu1 %vm657_vm7, %v925_v34  ;;  %v4962_v34 = vld [vmem:[#allocation7 + $0x18] sm:$0xff]  }
 0x5bf   :  { %4652 = vmatprep.mubr.msk.bf16.mxu1 %vm5373_vm6, %v5372_v36  ;;  %4663 = vmatpush3.bf16.msra.mxu0 %v4962_v34 }
 0x5c0   :  { %4664 = vmatprep.subr.bf16.mxu0 %v5372_v36 }
 0x666   :  { %v5623_v37 = vpop.f32.mrf.mxu1 }
 0x668   :  { %v4630_v38 = vpop.f32.mrf.mxu1 }
 0x669   :  { %v4963_v38 = vld [vmem:[#allocation7 + $0x10] sm:$0xff]  }
 0x66a   :  { %v821_v39 = vpop.f32.mrf.mxu1  ;;  %4665 = vmatpush3.bf16.msra.mxu0 %v4963_v38 }
 0x66b   :  { %4678 = vmatprep.subr.bf16.mxu0 %v5372_v36 }
 0x66c   :  { %v4631_v40 = vpop.f32.mrf.mxu1 }
 0x66e   :  { %v5625_v42 = vpop.f32.mrf.mxu1 }
 0x66f   :  { %v870_v43 = vpack.c.bf16 %v5625_v42, %v5623_v37 }
 0x670   :  { %v4636_v44 = vpop.f32.mrf.mxu1 }
 0x672   :  { %v867_v45 = vpop.f32.mrf.mxu1 }
 0x674   :  { %v4637_v46 = vpop.f32.mrf.mxu1 }
 0x676   :  { %v917_v48 = vpop.f32.mrf.mxu1 }
 0x677   :  { %v975_v49 = vmul.f32 0.17677669, %v917_v48 }
 0x678   :  { %v4642_v50 = vpop.f32.mrf.mxu1 }
 0x679   :  { %v977_v53 = vsel %vm752_vm9, %v975_v49, -inf }
 0x67a   :  { %978 = vmax.xlane.f32.xlu1 %v977_v53  ;;  %v920_v54 = vpop.f32.mrf.mxu1 }
 0x67c   :  { %v4643_v55 = vpop.f32.mrf.mxu1 }
 0x67e   :  { %v969_v56 = vpop.f32.mrf.mxu1 }
 0x67f   :  { %v976_v57 = vmul.f32 0.17677669, %v969_v56 }
 0x680   :  { %v4648_v58 = vpop.f32.mrf.mxu1 }
 0x681   :  { %v980_v59 = vsel %vm752_vm9, %v976_v57, -inf }
 0x682   :  { %981 = vmax.xlane.f32.xlu0 %v980_v59  ;;  %v972_v60 = vpop.f32.mrf.mxu1 }
 0x684   :  { %v4649_v61 = vpop.f32.mrf.mxu1 }
 0x703   :  { %v979_v62 = vpop.xlane.xlu1 %978 }
 0x704   :  { %v983_v63 = vsub.f32 %v975_v49, %v979_v62 }
 0x706   :  { %v985_v1 = vmul.f32 1.442695, %v983_v63 }
 0x708   :  { %5124 = vpow2.f32 %v985_v1 }
 0x70b   :  { %v982_v2 = vpop.xlane.xlu0 %981 }
 0x70c   :  { %v984_v3 = vsub.f32 %v976_v57, %v982_v2 }
 0x70e   :  { %v987_v4 = vmul.f32 1.442695, %v984_v3 }
 0x710   :  { %5126 = vpow2.f32 %v987_v4 }
 0x715   :  { %v5125_v5 = vpop.eup %5124 }
 0x716   :  { %v989_v6 = vsel %vm752_vm9, %v5125_v5, 0.0 }
 0x717   :  { %990 = vadd.xlane.f32.xlu1 %v989_v6 }
 0x71d   :  { %v5127_v7 = vpop.eup %5126 }
 0x71e   :  { %v992_v8 = vsel %vm752_vm9, %v5127_v7, 0.0 }
 0x71f   :  { %993 = vadd.xlane.f32.xlu0 %v992_v8 }
 0x728   :  { %1002 = vrot.lane.b32.xlu1 %v5581_v51, %s5374_s1 }
 0x72c   :  { %1214 = vrot.lane.b32.xlu1 %v5565_v41, %s5365_s22 }
 0x730   :  { %1264 = vrot.lane.b32.xlu1 %v5572_v47, %s5365_s22 }
 0x734   :  { %1262 = vrot.lane.b32.xlu1 %v5583_v52, %s5365_s22 }
 0x735   :  { %1051 = vrot.lane.b32.xlu0 %v5602_v16, %s5374_s1 }
 0x739   :  { %1212 = vrot.lane.b32.xlu0 %v5561_v35, %s5365_s22 }
 0x7a0   :  { %v991_v9 = vpop.xlane.xlu1 %990 }
 0x7a1   :  { %5128 = vrcp.f32 %v991_v9 }
 0x7a4   :  { %v1003_v10 = vpop.permute.xlu1 %1002 }
 0x7a5   :  { %v1008_v11 = vsel %vm780_vm8, %v1003_v10, 0 }
 0x7a6   :  { %4651 = vmatpush3.bf16.msra.mxu1 %v1008_v11 }
 0x7a7   :  { %4656 = vmatprep.subr.bf16.mxu1 %v5372_v36 }
 0x7a8   :  { %v994_v12 = vpop.xlane.xlu0 %993  ;;  %v1215_v28 = vpop.permute.xlu1 %1214 }
 0x7a9   :  { %5130 = vrcp.f32 %v994_v12  ;;  %v1220_v46 = vsel %vm657_vm7, %v1215_v28, 0 }
 0x7ac   :  { %v1052_v15 = vpop.permute.xlu0 %1051  ;;  %v1265_v31 = vpop.permute.xlu1 %1264 }
 0x7ad   :  { %v1057_v18 = vsel %vm780_vm8, %v1052_v15, 0  ;;  %v1270_v19 = vsel %vm657_vm7, %v1265_v31, 0 }
 0x7ae   :  { %v5129_v13 = vpop.eup %5128 }
 0x7af   :  { %v997_v14 = vmul.f32 %v5129_v13, %v5125_v5 }
 0x7b0   :  { %v1263_v32 = vpop.permute.xlu1 %1262  ;;  %v1213_v53 = vpop.permute.xlu0 %1212 }
 0x7b1   :  { %v999_v17 = vpack.c.bf16 %v997_v14, %v997_v14 }
 0x7b3   :  { %4653 = vmatmul.mubr.msk.bf16.vlgmr.msra.gmra.mxu1 %vm752_vm9, %v999_v17 }
 0x7b4   :  { %4657 = vmatpush3.bf16.msra.mxu1 %v1057_v18  ;;  %4658 = vmatprep.mubr.msk.bf16.mxu1 %vm5373_vm6, %v5372_v36 }
 0x7b5   :  { %4670 = vmatprep.subr.bf16.mxu1 %v5372_v36 }
 0x7b6   :  { %v5131_v20 = vpop.eup %5130 }
 0x7b7   :  { %v998_v21 = vmul.f32 %v5131_v20, %v5127_v7 }
 0x7b9   :  { %v1000_v26 = vpack.c.bf16 %v998_v21, %v998_v21 }
 0x7bb   :  { %4659 = vmatmul.mubr.msk.bf16.vlgmr.msra.gmra.mxu1 %vm752_vm9, %v1000_v26 }
 0x7bc   :  { %4671 = vmatpush3.bf16.msra.mxu1 %v4960_v24  ;;  %4674 = vmatprep.mubr.msk.bf16.mxu1 %vm5373_vm6, %v5372_v36 }
 0x7bd   :  { %4672 = vmatprep.subr.bf16.mxu1 %v5372_v36 }
 0x7c0   :  { %4673 = vmatpush3.bf16.msra.mxu1 %v4961_v29 }
 0x7c1   :  { %4684 = vmatprep.subr.bf16.mxu1 %v5372_v36 }
 0x7c3   :  { %4675 = vmatmul.mubr.msk.bf16.vlgmr.msra.gmra.mxu1 %vm657_vm7, %v870_v43 }
 0x7c4   :  { %4685 = vmatpush3.bf16.xpose.msra.mxu1 %v1270_v19  ;;  %4686 = vmatprep.mubr.msk.bf16.mxu1 %vm5373_vm6, %v5372_v36 }
 0x7c5   :  { %4696 = vmatprep.subr.bf16.mxu1 %v5372_v36 }
 0x7cb   :  { %4687 = vmatmul.mubr.msk.bf16.vlgmr.msra.gmra.mxu1 %vm657_vm7, %v1263_v32 }
 0x7cc   :  { %4698 = vmatprep.mubr.msk.bf16.mxu1 %vm5373_vm6, %v5372_v36 }
 0x873   :  { %v1044_v37 = vpop.f32.mrf.mxu1 }
 0x875   :  { %v4654_v39 = vpop.f32.mrf.mxu1 }
 0x877   :  { %v1047_v40 = vpop.f32.mrf.mxu1 }
 0x878   :  { %v4964_v40 = vld [vmem:[#allocation7 + $0x28] sm:$0xff]  }
 0x879   :  { %v4655_v42 = vpop.f32.mrf.mxu1 }
 0x87a   :  { %v4965_v42 = vld [vmem:[#allocation7 + $0x20] sm:$0xff]  }
 0x87b   :  { %v1093_v43 = vpop.f32.mrf.mxu1 }
 0x87c   :  { %v1099_v44 = vpack.c.bf16 %v1093_v43, %v1044_v37 }
 0x87d   :  { %v4660_v45 = vpop.f32.mrf.mxu1 }
 0x87e   :  { %4667 = vmatmul.mubr.msk.bf16.vlgmr.msra.gmra.mxu0 %vm657_vm7, %v1099_v44 }
 0x87f   :  { %4679 = vmatpush3.bf16.xpose.msra.mxu0 %v1220_v46  ;;  %v1096_v48 = vpop.f32.mrf.mxu1  ;;  %4680 = vmatprep.mubr.msk.bf16.mxu0 %vm5373_vm6, %v5372_v36 }
 0x880   :  { %4690 = vmatprep.subr.bf16.mxu0 %v5372_v36 }
 0x881   :  { %v4661_v49 = vpop.f32.mrf.mxu1 }
 0x883   :  { %v5675_v50 = vpop.f32.mrf.mxu1 }
 0x885   :  { %v4676_v54 = vpop.f32.mrf.mxu1 }
 0x886   :  { %4681 = vmatmul.mubr.msk.bf16.vlgmr.msra.gmra.mxu0 %vm657_vm7, %v1213_v53 }
 0x887   :  { %v5678_v55 = vpop.f32.mrf.mxu1  ;;  %4692 = vmatprep.mubr.msk.bf16.mxu0 %vm5373_vm6, %v5372_v36 }
 0x889   :  { %v4677_v56 = vpop.f32.mrf.mxu1 }
 0x88b   :  { %v1306_v57 = vpop.f32.mrf.mxu1 }
 0x88c   :  { %v1313_v58 = vmul.f32 0.17677669, %v1306_v57 }
 0x88d   :  { %v4688_v59 = vpop.f32.mrf.mxu1 }
 0x88e   :  { %v1317_v60 = vsel %vm752_vm9, %v1313_v58, -inf }
 0x88f   :  { %1318 = vmax.xlane.f32.xlu1 %v1317_v60  ;;  %v1309_v61 = vpop.f32.mrf.mxu1 }
 0x891   :  { %v4689_v62 = vpop.f32.mrf.mxu1 }
 0x8a0   :  { %1338 = vrot.lane.b32.xlu1 %v5581_v51, %s5365_s22 }
 0x8a4   :  { %1495 = vrot.lane.b32.xlu1 %v5565_v41, %s5375_s19 }
 0x8a8   :  { %1545 = vrot.lane.b32.xlu1 %v5572_v47, %s5375_s19 }
 0x8ac   :  { %1543 = vrot.lane.b32.xlu1 %v5583_v52, %s5375_s19 }
 0x918   :  { %v1319_v63 = vpop.xlane.xlu1 %1318 }
 0x919   :  { %v1321_v3 = vsub.f32 %v1313_v58, %v1319_v63 }
 0x91b   :  { %v1324_v4 = vmul.f32 1.442695, %v1321_v3 }
 0x91c   :  { %v1339_v1 = vpop.permute.xlu1 %1338 }
 0x91d   :  { %v1344_v2 = vsel %vm780_vm8, %v1339_v1, 0  ;;  %5132 = vpow2.f32 %v1324_v4 }
 0x91e   :  { %4691 = vmatpush3.bf16.msra.mxu0 %v1344_v2 }
 0x91f   :  { %4702 = vmatprep.subr.bf16.mxu0 %v5372_v36 }
 0x920   :  { %v1496_v19 = vpop.permute.xlu1 %1495 }
 0x921   :  { %v1501_v34 = vsel %vm657_vm7, %v1496_v19, 0 }
 0x924   :  { %v1546_v49 = vpop.permute.xlu1 %1545 }
 0x925   :  { %v1551_v61 = vsel %vm657_vm7, %v1546_v49, 0 }
 0x928   :  { %v1544_v2 = vpop.permute.xlu1 %1543 }
 0x92a   :  { %v5133_v10 = vpop.eup %5132 }
 0x92b   :  { %v1329_v13 = vsel %vm752_vm9, %v5133_v10, 0.0 }
 0x93e   :  { %v5693_v5 = vpop.f32.mrf.mxu0 }
 0x940   :  { %v4668_v6 = vpop.f32.mrf.mxu0 }
 0x942   :  { %v5695_v41 = vpop.f32.mrf.mxu0 }
 0x944   :  { %v4669_v7 = vpop.f32.mrf.mxu0 }
 0x946   :  { %v1256_v47 = vpop.f32.mrf.mxu0 }
 0x947   :  { %v1312_v8 = vmul.f32 0.17677669, %v1256_v47 }
 0x948   :  { %v4682_v9 = vpop.f32.mrf.mxu0 }
 0x949   :  { %v1314_v52 = vsel %vm752_vm9, %v1312_v8, -inf }
 0x94a   :  { %1315 = vmax.xlane.f32.xlu0 %v1314_v52  ;;  %v1259_v11 = vpop.f32.mrf.mxu0 }
 0x94b   :  { %v1209_v11 = vadd.f32 %v5678_v55, %v5695_v41 }
 0x94c   :  { %v4683_v12 = vpop.f32.mrf.mxu0 }
 0x94e   :  { %1330 = vadd.xlane.f32.xlu0 %v1329_v13 }
 0x9d3   :  { %v1316_v14 = vpop.xlane.xlu0 %1315 }
 0x9d4   :  { %v1320_v15 = vsub.f32 %v1312_v8, %v1316_v14  ;;  %v1206_v8 = vadd.f32 %v5675_v50, %v5693_v5 }
 0x9d6   :  { %v1322_v17 = vmul.f32 1.442695, %v1320_v15 }
 0x9d7   :  { %v1331_v21 = vpop.xlane.xlu0 %1330 }
 0x9d8   :  { %5134 = vpow2.f32 %v1322_v17 }
 0x9d9   :  { %5136 = vrcp.f32 %v1331_v21 }
 0x9e5   :  { %v5135_v18 = vpop.eup %5134 }
 0x9e6   :  { %v1326_v20 = vsel %vm752_vm9, %v5135_v18, 0.0  ;;  %v5137_v24 = vpop.eup %5136 }
 0x9e7   :  { %1327 = vadd.xlane.f32.xlu0 %v1326_v20  ;;  %v1335_v28 = vmul.f32 %v5137_v24, %v5133_v10 }
 0x9e9   :  { %v1337_v32 = vpack.c.bf16 %v1335_v28, %v1335_v28 }
 0x9fd   :  { %1386 = vrot.lane.b32.xlu0 %v5602_v16, %s5365_s22 }
 0xa01   :  { %1493 = vrot.lane.b32.xlu0 %v5561_v35, %s5375_s19 }
 0xa70   :  { %v1328_v26 = vpop.xlane.xlu0 %1327 }
 0xa71   :  { %5138 = vrcp.f32 %v1328_v26 }
 0xa74   :  { %v1387_v29 = vpop.permute.xlu0 %1386 }
 0xa75   :  { %v1392_v31 = vsel %vm780_vm8, %v1387_v29, 0 }
 0xa76   :  { %4697 = vmatpush3.bf16.msra.mxu1 %v1392_v31 }
 0xa77   :  { %4710 = vmatprep.subr.bf16.mxu1 %v5372_v36 }
 0xa78   :  { %v1494_v37 = vpop.permute.xlu0 %1493 }
 0xa79   :  { %4699 = vmatmul.mubr.msk.bf16.vlgmr.msra.gmra.mxu1 %vm752_vm9, %v1337_v32 }
 0xa7a   :  { %4711 = vmatpush3.bf16.xpose.msra.mxu1 %v1501_v34  ;;  %4712 = vmatprep.mubr.msk.bf16.mxu1 %vm5373_vm6, %v5372_v36  ;;  %v4966_v34 = vld [vmem:[#allocation7 + $0x38] sm:$0xff]  }
 0xa7b   :  { %4722 = vmatprep.subr.bf16.mxu1 %v5372_v36 }
 0xa7e   :  { %v5139_v35 = vpop.eup %5138 }
 0xa7f   :  { %v1334_v38 = vmul.f32 %v5139_v35, %v5135_v18 }
 0xa81   :  { %4713 = vmatmul.mubr.msk.bf16.vlgmr.msra.gmra.mxu1 %vm657_vm7, %v1494_v37  ;;  %v1336_v39 = vpack.c.bf16 %v1334_v38, %v1334_v38 }
 0xa82   :  { %4724 = vmatprep.mubr.msk.bf16.mxu1 %vm5373_vm6, %v5372_v36 }
 0xa83   :  { %4693 = vmatmul.mubr.msk.bf16.vlgmr.msra.gmra.mxu0 %vm752_vm9, %v1336_v39 }
 0xa84   :  { %4706 = vmatprep.mubr.msk.bf16.mxu0 %vm5373_vm6, %v5372_v36  ;;  %4703 = vmatpush3.bf16.msra.mxu0 %v4964_v40 }
 0xa85   :  { %4704 = vmatprep.subr.bf16.mxu0 %v5372_v36 }
 0xa88   :  { %4705 = vmatpush3.bf16.msra.mxu0 %v4965_v42 }
 0xa89   :  { %4716 = vmatprep.subr.bf16.mxu0 %v5372_v36 }
 0xb39   :  { %v1428_v43 = vpop.f32.mrf.mxu1 }
 0xb3b   :  { %v4700_v44 = vpop.f32.mrf.mxu1 }
 0xb3d   :  { %v1431_v45 = vpop.f32.mrf.mxu1 }
 0xb3f   :  { %v4701_v46 = vpop.f32.mrf.mxu1 }
 0xb40   :  { %v4967_v46 = vld [vmem:[#allocation7 + $0x30] sm:$0xff]  }
 0xb41   :  { %v1537_v48 = vpop.f32.mrf.mxu1 }
 0xb42   :  { %v1593_v53 = vmul.f32 0.17677669, %v1537_v48 }
 0xb43   :  { %v1380_v54 = vpop.f32.mrf.mxu0  ;;  %v4714_v56 = vpop.f32.mrf.mxu1 }
 0xb44   :  { %v1434_v57 = vpack.c.bf16 %v1428_v43, %v1380_v54  ;;  %v1595_v58 = vsel %vm752_vm9, %v1593_v53, -inf }
 0xb45   :  { %v4694_v59 = vpop.f32.mrf.mxu0  ;;  %1596 = vmax.xlane.f32.xlu0 %v1595_v58  ;;  %v1540_v60 = vpop.f32.mrf.mxu1 }
 0xb46   :  { %4707 = vmatmul.mubr.msk.bf16.vlgmr.msra.gmra.mxu0 %vm657_vm7, %v1434_v57  ;;  %v4272_v60 = vld [vmem:[%s6053_s8] ss:$0 sm:$0xff] }
 0xb47   :  { %4717 = vmatpush3.bf16.xpose.msra.mxu0 %v1551_v61  ;;  %v1383_v62 = vpop.f32.mrf.mxu0  ;;  %v4715_v63 = vpop.f32.mrf.mxu1  ;;  %4718 = vmatprep.mubr.msk.bf16.mxu0 %vm5373_vm6, %v5372_v36 }
 0xb48   :  { %4728 = vmatprep.subr.bf16.mxu0 %v5372_v36 }
 0xb49   :  { %v4695_v1 = vpop.f32.mrf.mxu0 }
 0xb4e   :  { %4719 = vmatmul.mubr.msk.bf16.vlgmr.msra.gmra.mxu0 %vm657_vm7, %v1544_v2 }
 0xb4f   :  { %4730 = vmatprep.mubr.msk.bf16.mxu0 %vm5373_vm6, %v5372_v36 }
 0xbce   :  { %v1597_v3 = vpop.xlane.xlu0 %1596 }
 0xbcf   :  { %v1601_v4 = vsub.f32 %v1593_v53, %v1597_v3 }
 0xbd1   :  { %v1603_v6 = vmul.f32 1.442695, %v1601_v4 }
 0xbd3   :  { %5140 = vpow2.f32 %v1603_v6  ;;  %v4968_v6 = vld [vmem:[#allocation8 + $0x70] ss:$8 sps:$4 sm:$0xff]  }
 0xbe0   :  { %v5141_v7 = vpop.eup %5140 }
 0xbe1   :  { %v1607_v47 = vsel %vm752_vm9, %v5141_v7, 0.0 }
 0xbe2   :  { %1608 = vadd.xlane.f32.xlu0 %v1607_v47 }
 0xc06   :  { %v1484_v9 = vpop.f32.mrf.mxu0 }
 0xc07   :  { %v1491_v52 = vadd.f32 %v1484_v9, %v1206_v8 }
 0xc08   :  { %v4708_v10 = vpop.f32.mrf.mxu0 }
 0xc0a   :  { %v1487_v12 = vpop.f32.mrf.mxu0 }
 0xc0b   :  { %v1492_v13 = vadd.f32 %v1487_v12, %v1209_v11  ;;  %v4973_v12 = vld [vmem:[#allocation8 + $0x64] ss:$8 sps:$4 sm:$0xff]  }
 0xc0c   :  { %v4709_v14 = vpop.f32.mrf.mxu0 }
 0xc0d   :  { %v4976_v14 = vld [vmem:[#allocation8 + $0x54] ss:$8 sps:$4 sm:$0xff]  }
 0xc0e   :  { %v1587_v15 = vpop.f32.mrf.mxu0 }
 0xc0f   :  { %v1594_v17 = vmul.f32 0.17677669, %v1587_v15  ;;  %v4974_v15 = vld [vmem:[#allocation8 + $0x50] ss:$8 sps:$4 sm:$0xff]  }
 0xc10   :  { %v4720_v18 = vpop.f32.mrf.mxu0 }
 0xc11   :  { %v1598_v20 = vsel %vm752_vm9, %v1594_v17, -inf  ;;  %v4979_v18 = vld [vmem:[#allocation8 + $0x44] ss:$8 sps:$4 sm:$0xff]  }
 0xc12   :  { %1599 = vmax.xlane.f32.xlu1 %v1598_v20  ;;  %v1590_v21 = vpop.f32.mrf.mxu0  ;;  %v4982_v20 = vld [vmem:[#allocation8 + $0x34] ss:$8 sps:$4 sm:$0xff]  }
 0xc13   :  { %v4980_v21 = vld [vmem:[#allocation8 + $0x30] ss:$8 sps:$4 sm:$0xff]  }
 0xc14   :  { %v4721_v24 = vpop.f32.mrf.mxu0 }
 0xc15   :  { %v4985_v24 = vld [vmem:[#allocation8 + $0x24] ss:$8 sps:$4 sm:$0xff]  }
 0xc23   :  { %1619 = vrot.lane.b32.xlu1 %v5581_v51, %s5375_s19 }
 0xc6b   :  { %v1609_v50 = vpop.xlane.xlu0 %1608 }
 0xc6c   :  { %5142 = vrcp.f32 %v1609_v50  ;;  %v4983_v50 = vld [vmem:[#allocation8 + $0x20] ss:$8 sps:$4 sm:$0xff]  }
 0xc79   :  { %v5143_v5 = vpop.eup %5142 }
 0xc7a   :  { %v1615_v41 = vmul.f32 %v5143_v5, %v5141_v7  ;;  %v4970_v7 = vld [vmem:[#allocation8 + $0x74] ss:$8 sps:$4 sm:$0xff]  }
 0xc7b   :  { %v4988_v5 = vld [vmem:[#allocation8 + $0x14] ss:$8 sps:$4 sm:$0xff]  }
 0xc7c   :  { %v1617_v19 = vpack.c.bf16 %v1615_v41, %v1615_v41 }
 0xc9b   :  { %v1600_v26 = vpop.xlane.xlu1 %1599 }
 0xc9c   :  { %v1602_v28 = vsub.f32 %v1594_v17, %v1600_v26  ;;  %v4977_v17 = vld [vmem:[#allocation8 + $0x40] ss:$8 sps:$4 sm:$0xff]   ;;  %v4986_v26 = vld [vmem:[#allocation8 + $0x10] ss:$8 sps:$4 sm:$0xff]  }
 0xc9e   :  { %v1605_v55 = vmul.f32 1.442695, %v1602_v28  ;;  %v4991_v28 = vld [vmem:[#allocation8 + $0x4] ss:$8 sps:$4 sm:$0xff]  }
 0xc9f   :  { %v1620_v29 = vpop.permute.xlu1 %1619 }
 0xca0   :  { %5144 = vpow2.f32 %v1605_v55  ;;  %v1625_v31 = vsel %vm780_vm8, %v1620_v29, 0  ;;  %v4989_v55 = vld [vmem:[#allocation8] ss:$8 sps:$4 sm:$0xff]  }
 0xca1   :  { %4723 = vmatpush3.bf16.msra.mxu1 %v1625_v31 }
 0xca2   :  { %4734 = vmatprep.subr.bf16.mxu1 %v5372_v36 }
 0xca4   :  { %4725 = vmatmul.mubr.msk.bf16.vlgmr.msra.gmra.mxu1 %vm752_vm9, %v1617_v19 }
 0xca5   :  { %4738 = vmatprep.mubr.msk.bf16.mxu1 %vm5373_vm6, %v5372_v36  ;;  %4735 = vmatpush3.bf16.msra.mxu1 %v4966_v34 }
 0xca6   :  { %4736 = vmatprep.subr.bf16.mxu1 %v5372_v36 }
 0xca9   :  { %4737 = vmatpush3.bf16.msra.mxu1 %v4967_v46  ;;  %v4992_v46 = vld [vmem:[#allocation10 + $0x78] sm:$0xff]  }
 0xcaa   :  { %4497 = vmatprep.subr.bf16.mxu1 %v4992_v46 }
 0xcad   :  { %v5145_v51 = vpop.eup %5144 }
 0xcae   :  { %v1610_v32 = vsel %vm752_vm9, %v5145_v51, 0.0 }
 0xcaf   :  { %1611 = vadd.xlane.f32.xlu0 %v1610_v32 }
 0xcc5   :  { %1667 = vrot.lane.b32.xlu0 %v5602_v16, %s5375_s19 }
 0xd38   :  { %v1612_v35 = vpop.xlane.xlu0 %1611 }
 0xd39   :  { %5146 = vrcp.f32 %v1612_v35 }
 0xd3c   :  { %v1668_v38 = vpop.permute.xlu0 %1667 }
 0xd3d   :  { %v1673_v37 = vsel %vm780_vm8, %v1668_v38, 0  ;;  %v4273_v38 = vld [vmem:[%s6054_s9] ss:$0 sm:$0xff] }
 0xd3e   :  { %4729 = vmatpush3.bf16.msra.mxu0 %v1673_v37 }
 0xd3f   :  { %1934 = vmatprep.subr.bf16.mxu0 %v4970_v7  ;;  %v1842_v7 = vld [vmem:[%s6057_s12] sm:$0x3] }
 0xd46   :  { %v5147_v39 = vpop.eup %5146 }
 0xd47   :  { %v1616_v40 = vmul.f32 %v5147_v39, %v5145_v51 }
 0xd49   :  { %v1618_v42 = vpack.c.bf16 %v1616_v40, %v1616_v40 }
 0xd4b   :  { %4731 = vmatmul.mubr.msk.bf16.vlgmr.msra.gmra.mxu0 %vm752_vm9, %v1618_v42  ;;  %v4274_v42 = vld [vmem:[%s6055_s10] ss:$0 sm:$0xff] }
 0xd4c   :  { %1966 = vmatprep.mubr.bf16.mxu0 %v5370_v0  ;;  %1935 = vmatpush1.bf16.msra.mxu0 %v4968_v6  ;;  %v5007_v6 = vld [vmem:[#allocation10] sm:$0xff]  }
 0xd4d   :  { %1936 = vmatprep.subr.bf16.mxu0 %v4973_v12 }
 0xd64   :  { %v1661_v43 = vpop.f32.mrf.mxu1 }
 0xd66   :  { %v4726_v44 = vpop.f32.mrf.mxu1 }
 0xd68   :  { %v1664_v16 = vpop.f32.mrf.mxu1 }
 0xd6a   :  { %v4727_v45 = vpop.f32.mrf.mxu1 }
 0xe0b   :  { %v1709_v48 = vpop.f32.mrf.mxu0 }
 0xe0c   :  { %v1715_v49 = vpack.c.bf16 %v1709_v48, %v1661_v43  ;;  %v4993_v48 = vld [vmem:[#allocation10 + $0x38] sm:$0xff]  }
 0xe0d   :  { %v4732_v53 = vpop.f32.mrf.mxu0 }
 0xe0e   :  { %4739 = vmatmul.mubr.msk.bf16.vlgmr.msra.gmra.mxu1 %vm657_vm7, %v1715_v49  ;;  %v4994_v49 = vld [vmem:[#allocation10 + $0x70] sm:$0xff]  }
 0xe0f   :  { %v1712_v54 = vpop.f32.mrf.mxu0  ;;  %4498 = vmatpush3.bf16.msra.mxu1 %v4993_v48  ;;  %v4995_v53 = vld [vmem:[#allocation10 + $0x30] sm:$0xff]  }
 0xe10   :  { %4499 = vmatprep.subr.bf16.mxu1 %v4994_v49  ;;  %v4996_v54 = vld [vmem:[#allocation10 + $0x68] sm:$0xff]  }
 0xe11   :  { %v4733_v56 = vpop.f32.mrf.mxu0 }
 0xe12   :  { %v4997_v56 = vld [vmem:[#allocation10 + $0x28] sm:$0xff]  }
 0xe13   :  { %4500 = vmatpush3.bf16.msra.mxu1 %v4995_v53 }
 0xe14   :  { %4501 = vmatprep.subr.bf16.mxu1 %v4996_v54  ;;  %v5008_v54 = vld [vmem:[#allocation5 + $0x168] ss:$12 sps:$4 sm:$0xff]  }
 0xe17   :  { %4502 = vmatpush3.bf16.msra.mxu1 %v4997_v56  ;;  %v5010_v56 = vld [vmem:[#allocation5 + $0x16c] ss:$12 sps:$4 sm:$0xff]  }
 0xece   :  { %v1765_v57 = vpop.f32.mrf.mxu1 }
 0xecf   :  { %v1772_v58 = vadd.f32 %v1765_v57, %v1491_v52  ;;  %v4998_v57 = vld [vmem:[#allocation10 + $0x60] sm:$0xff]  }
 0xed0   :  { %v4740_v59 = vpop.f32.mrf.mxu1  ;;  %4503 = vmatprep.subr.bf16.mxu1 %v4998_v57  ;;  %v5011_v57 = vld [vmem:[#allocation5 + $0x170] ss:$12 sps:$4 sm:$0xff]  }
 0xed1   :  { %v1774_v61 = vadd.f32 %v1772_v58, %v5506_v30  ;;  %v4999_v58 = vld [vmem:[#allocation10 + $0x20] sm:$0xff]   ;;  %v5000_v59 = vld [vmem:[#allocation10 + $0x58] sm:$0xff]  }
 0xed2   :  { %v1768_v62 = vpop.f32.mrf.mxu1  ;;  %4504 = vmatpush3.bf16.msra.mxu1 %v4999_v58 }
 0xed3   :  { %v1773_v63 = vadd.f32 %v1768_v62, %v1492_v13  ;;  %v5753_v1 = vadd.f32 %v4272_v60, %v1774_v61  ;;  %v4971_v13 = vld [vmem:[#allocation8 + $0x60] ss:$8 sps:$4 sm:$0xff]   ;;  %4505 = vmatprep.subr.bf16.mxu1 %v5000_v59  ;;  %v5002_v61 = vld [vmem:[#allocation10 + $0x50] sm:$0xff]  }
 0xed4   :  { %v4741_v2 = vpop.f32.mrf.mxu1  ;;  %1937 = vmatpush1.bf16.msra.mxu0 %v4971_v13  ;;  %v5003_v62 = vld [vmem:[#allocation10 + $0x10] sm:$0xff]  }
 0xed5   :  { %v1775_v3 = vadd.f32 %v1773_v63, %v5509_v33  ;;  %1787 = vadd.xlane.f32.xlu1 %v5753_v1  ;;  %1938 = vmatprep.subr.bf16.mxu0 %v4976_v14  ;;  %v5004_v63 = vld [vmem:[#allocation10 + $0x48] sm:$0xff]  }
 0xed6   :  { %v5005_v2 = vld [vmem:[#allocation10 + $0x8] sm:$0xff]  }
 0xed7   :  { %v5757_v4 = vadd.f32 %v4272_v60, %v1775_v3  ;;  %v5001_v60 = vld [vmem:[#allocation10 + $0x18] sm:$0xff]   ;;  %v5006_v3 = vld [vmem:[#allocation10 + $0x40] sm:$0xff]  }
 0xed8   :  { %1939 = vmatpush1.bf16.msra.mxu0 %v4974_v15  ;;  %4506 = vmatpush3.bf16.msra.mxu1 %v5001_v60 }
 0xed9   :  { %1789 = vadd.xlane.f32.xlu0 %v5757_v4  ;;  %1940 = vmatprep.subr.bf16.mxu0 %v4979_v18 }
 0xeda   :  { %4507 = vmatprep.subr.bf16.mxu1 %v5002_v61 }
 0xedc   :  { %1941 = vmatpush1.bf16.msra.mxu0 %v4977_v17  ;;  %4508 = vmatpush3.bf16.msra.mxu1 %v5003_v62 }
 0xedd   :  { %1942 = vmatprep.subr.bf16.mxu0 %v4982_v20  ;;  %4509 = vmatprep.subr.bf16.mxu1 %v5004_v63 }
 0xee0   :  { %1943 = vmatpush1.bf16.msra.mxu0 %v4980_v21  ;;  %4510 = vmatpush3.bf16.msra.mxu1 %v5005_v2  ;;  %v5014_v2 = vld [vmem:[#allocation5 + $0x154] ss:$12 sps:$4 sm:$0xff]  }
 0xee1   :  { %1944 = vmatprep.subr.bf16.mxu0 %v4985_v24  ;;  %4511 = vmatprep.subr.bf16.mxu1 %v5006_v3  ;;  %v5012_v3 = vld [vmem:[#allocation5 + $0x150] ss:$12 sps:$4 sm:$0xff]  }
 0xee4   :  { %1945 = vmatpush1.bf16.msra.mxu0 %v4983_v50  ;;  %4512 = vmatpush3.bf16.msra.mxu1 %v5007_v6  ;;  %v5015_v6 = vld [vmem:[#allocation5 + $0x158] ss:$12 sps:$4 sm:$0xff]  }
 0xee5   :  { %1946 = vmatprep.subr.bf16.mxu0 %v4988_v5  ;;  %4742 = vmatprep.subr.bf16.mxu1 %v5372_v36 }
 0xee8   :  { %1947 = vmatpush1.bf16.msra.mxu0 %v4986_v26 }
 0xee9   :  { %1948 = vmatprep.subr.bf16.mxu0 %v4991_v28 }
 0xeec   :  { %1949 = vmatpush1.bf16.msra.mxu0 %v4989_v55 }
 0xeed   :  { %2399 = vmatprep.subr.bf16.mxu0 %v5010_v56 }
 0xf5e   :  { %v1788_v47 = vpop.xlane.xlu1 %1787 }
 0xf5f   :  { %v1791_v8 = vmul.f32 0.0078125, %v1788_v47  ;;  %v1847_v47 = vrot.slane %v1842_v7, %v5550_v23 }
 0xf61   :  { %v1793_v30 = vsub.f32 %v5753_v1, %v1791_v8  ;;  %v1851_v8 = vrot.slane %v1842_v7, %v5556_v25  ;;  %v5018_v7 = vld [vmem:[#allocation5 + $0x13c] ss:$12 sps:$4 sm:$0xff]  }
 0xf62   :  { %v1790_v9 = vpop.xlane.xlu0 %1789 }
 0xf63   :  { %v1792_v52 = vmul.f32 0.0078125, %v1790_v9  ;;  %v1795_v10 = vmul.f32 %v1793_v30, %v1793_v30 }
 0xf65   :  { %v1794_v11 = vsub.f32 %v5757_v4, %v1792_v52  ;;  %1797 = vadd.xlane.f32.xlu1 %v1795_v10 }
 0xf67   :  { %v1796_v33 = vmul.f32 %v1794_v11, %v1794_v11 }
 0xf69   :  { %1799 = vadd.xlane.f32.xlu0 %v1796_v33 }
 0xfee   :  { %v1798_v41 = vpop.xlane.xlu1 %1797 }
 0xfef   :  { %v1801_v29 = vmul.f32 0.0078125, %v1798_v41 }
 0xff1   :  { %v1803_v31 = vadd.f32 1e-05, %v1801_v29 }
 0xff2   :  { %v1800_v19 = vpop.xlane.xlu0 %1799 }
 0xff3   :  { %5148 = vrsqrt.f32 %v1803_v31  ;;  %v1802_v51 = vmul.f32 0.0078125, %v1800_v19 }
 0xff5   :  { %v1804_v32 = vadd.f32 1e-05, %v1802_v51 }
 0xff7   :  { %5150 = vrsqrt.f32 %v1804_v32 }
0x1000   :  { %v5149_v34 = vpop.eup %5148 }
0x1001   :  { %v1807_v35 = vmul.f32 %v5149_v34, %v1793_v30 }
0x1003   :  { %v1815_v40 = vmul.f32 %v4273_v38, %v1807_v35 }
0x1004   :  { %v5151_v37 = vpop.eup %5150 }
0x1005   :  { %v1808_v39 = vmul.f32 %v5151_v37, %v1794_v11  ;;  %v1823_v44 = vadd.f32 %v4274_v42, %v1815_v40  ;;  %v4291_v40 = vld [vmem:[%s6059_s14] ss:$0 sm:$0xff] }
0x1007   :  { %v1816_v43 = vmul.f32 %v4273_v38, %v1808_v39 }
0x1009   :  { %v1824_v16 = vadd.f32 %v4274_v42, %v1816_v43 }
0x100b   :  { %v1825_v45 = vpack.c.bf16 %v1824_v16, %v1823_v44 }
0x100d   :  { %1967 = vmatmul.mubr.bf16.vlgmr.msra.gmra.mxu0 %v1825_v45 }
0x100e   :  { %2431 = vmatprep.mubr.bf16.mxu0 %v5370_v0  ;;  %2400 = vmatpush1.bf16.msra.mxu0 %v5008_v54 }
0x100f   :  { %2401 = vmatprep.subr.bf16.mxu0 %v5014_v2 }
0x1012   :  { %2402 = vmatpush1.bf16.msra.mxu0 %v5012_v3 }
0x1013   :  { %2403 = vmatprep.subr.bf16.mxu0 %v5018_v7 }
0x10cd   :  { %v1968_v30 = vpop.f32.mrf.mxu0 }
0x10ce   :  { %v1969_v9 = vadd.f32 %v1968_v30, %v1847_v47  ;;  %v5020_v30 = vld [vmem:[#allocation5 + $0x120] ss:$12 sps:$4 sm:$0xff]  }
0x10cf   :  { %v1970_v52 = vpop.f32.mrf.mxu0 }
0x10d0   :  { %v1971_v10 = vadd.f32 %v1970_v52, %v1851_v8  ;;  %v1981_v11 = vmul.f32 0.70710677, %v1969_v9  ;;  %v1977_v19 = vmul.f32 0.5, %v1969_v9  ;;  %v5022_v9 = vld [vmem:[#allocation5 + $0x124] ss:$12 sps:$4 sm:$0xff]  }
0x10d1   :  { %v1972_v33 = vpop.f32.mrf.mxu0  ;;  %v5023_v52 = vld [vmem:[#allocation5 + $0x128] ss:$12 sps:$4 sm:$0xff]  }
0x10d2   :  { %v1982_v12 = vmul.f32 0.70710677, %v1971_v10  ;;  %v1973_v13 = vadd.f32 %v1972_v33, %v1847_v47  ;;  %v1978_v41 = vmul.f32 0.5, %v1971_v10  ;;  %v5016_v47 = vld [vmem:[#allocation5 + $0x138] ss:$12 sps:$4 sm:$0xff]  }
0x10d3   :  { %v1974_v14 = vpop.f32.mrf.mxu0  ;;  %2404 = vmatpush1.bf16.msra.mxu0 %v5016_v47  ;;  %v5026_v10 = vld [vmem:[#allocation5 + $0x10c] ss:$12 sps:$4 sm:$0xff]   ;;  %v5027_v33 = vld [vmem:[#allocation5 + $0x110] ss:$12 sps:$4 sm:$0xff]  }
0x10d4   :  { %5152 = verf.f32 %v1982_v12  ;;  %v1983_v15 = vmul.f32 0.70710677, %v1973_v13  ;;  %v1975_v17 = vadd.f32 %v1974_v14, %v1851_v8  ;;  %v1979_v55 = vmul.f32 0.5, %v1973_v13  ;;  %v5019_v8 = vld [vmem:[#allocation5 + $0x140] ss:$12 sps:$4 sm:$0xff]   ;;  %2405 = vmatprep.subr.bf16.mxu0 %v5022_v9 }
0x10d5   :  { %5154 = verf.f32 %v1981_v11  ;;  %v5024_v11 = vld [vmem:[#allocation5 + $0x108] ss:$12 sps:$4 sm:$0xff]   ;;  %v5028_v13 = vld [vmem:[#allocation5 + $0xf0] ss:$12 sps:$4 sm:$0xff]   ;;  %v5031_v14 = vld [vmem:[#allocation5 + $0xf8] ss:$12 sps:$4 sm:$0xff]  }
0x10d6   :  { %5156 = verf.f32 %v1983_v15  ;;  %v1984_v18 = vmul.f32 0.70710677, %v1975_v17  ;;  %v1980_v29 = vmul.f32 0.5, %v1975_v17  ;;  %v5030_v12 = vld [vmem:[#allocation5 + $0xf4] ss:$12 sps:$4 sm:$0xff]  }
0x10d7   :  { %2406 = vmatpush1.bf16.msra.mxu0 %v5020_v30  ;;  %v5034_v15 = vld [vmem:[#allocation5 + $0xdc] ss:$12 sps:$4 sm:$0xff]   ;;  %v5032_v17 = vld [vmem:[#allocation5 + $0xd8] ss:$12 sps:$4 sm:$0xff]  }
0x10d8   :  { %5158 = verf.f32 %v1984_v18  ;;  %2407 = vmatprep.subr.bf16.mxu0 %v5026_v10  ;;  %v5035_v18 = vld [vmem:[#allocation5 + $0xe0] ss:$12 sps:$4 sm:$0xff]  }
0x10db   :  { %2408 = vmatpush1.bf16.msra.mxu0 %v5024_v11 }
0x10dc   :  { %2409 = vmatprep.subr.bf16.mxu0 %v5030_v12 }
0x10df   :  { %2410 = vmatpush1.bf16.msra.mxu0 %v5028_v13 }
0x10e0   :  { %2411 = vmatprep.subr.bf16.mxu0 %v5034_v15 }
0x10e1   :  { %v5153_v20 = vpop.eup %5152 }
0x10e2   :  { %v5155_v21 = vpop.eup %5154  ;;  %v1990_v50 = vadd.f32 1.0, %v5153_v20  ;;  %v5038_v20 = vld [vmem:[#allocation5 + $0xc4] ss:$12 sps:$4 sm:$0xff]  }
0x10e3   :  { %v5157_v24 = vpop.eup %5156  ;;  %v1989_v28 = vadd.f32 1.0, %v5155_v21  ;;  %2412 = vmatpush1.bf16.msra.mxu0 %v5032_v17  ;;  %v5036_v21 = vld [vmem:[#allocation5 + $0xc0] ss:$12 sps:$4 sm:$0xff]  }
0x10e4   :  { %v1991_v5 = vadd.f32 1.0, %v5157_v24  ;;  %v1994_v32 = vmul.f32 %v1990_v50, %v1978_v41  ;;  %v5039_v24 = vld [vmem:[#allocation5 + $0xc8] ss:$12 sps:$4 sm:$0xff]   ;;  %2413 = vmatprep.subr.bf16.mxu0 %v5038_v20 }
0x10e5   :  { %v5159_v26 = vpop.eup %5158  ;;  %v1993_v35 = vmul.f32 %v1989_v28, %v1977_v19  ;;  %v4310_v19 = vld [vmem:[%s6048_s3 + $0x1] ss:$0 sm:$0xff] }
0x10e6   :  { %v1992_v31 = vadd.f32 1.0, %v5159_v26  ;;  %v1995_v51 = vmul.f32 %v1991_v5, %v1979_v55 }
0x10e7   :  { %2414 = vmatpush1.bf16.msra.mxu0 %v5036_v21 }
0x10e8   :  { %v1996_v34 = vmul.f32 %v1992_v31, %v1980_v29  ;;  %v1997_v37 = vpack.c.bf16 %v1995_v51, %v1993_v35  ;;  %4762 = vmatprep.subr.bf16.mxu0 %v5372_v36  ;;  %v4311_v35 = vld [vmem:[%s6049_s4 + $0x1] ss:$0 sm:$0xff] }
0x10ea   :  { %v1998_v38 = vpack.c.bf16 %v1996_v34, %v1994_v32 }
0x10ec   :  { %2166 = vmatprep.mubr.bf16.mxu1 %v1998_v38 }
0x10ed   :  { %2167 = vmatmul.mubr.bf16.vlgmr.msra.gmra.mxu1 %v1997_v37 }
0x10ee   :  { %4758 = vmatprep.mubr.msk.bf16.mxu1 %vm5373_vm6, %v5372_v36  ;;  %4743 = vmatpush3.bf16.msra.mxu1 %v5011_v57 }
0x10ef   :  { %4744 = vmatprep.subr.bf16.mxu1 %v5372_v36 }
0x10f2   :  { %4745 = vmatpush3.bf16.msra.mxu1 %v5015_v6 }
0x10f3   :  { %4746 = vmatprep.subr.bf16.mxu1 %v5372_v36 }
0x10f6   :  { %4747 = vmatpush3.bf16.msra.mxu1 %v5019_v8 }
0x10f7   :  { %4748 = vmatprep.subr.bf16.mxu1 %v5372_v36 }
0x10fa   :  { %4749 = vmatpush3.bf16.msra.mxu1 %v5023_v52 }
0x10fb   :  { %4750 = vmatprep.subr.bf16.mxu1 %v5372_v36 }
0x10fe   :  { %4751 = vmatpush3.bf16.msra.mxu1 %v5027_v33 }
0x10ff   :  { %4752 = vmatprep.subr.bf16.mxu1 %v5372_v36 }
0x1102   :  { %4753 = vmatpush3.bf16.msra.mxu1 %v5031_v14 }
0x1103   :  { %4754 = vmatprep.subr.bf16.mxu1 %v5372_v36 }
0x1106   :  { %4755 = vmatpush3.bf16.msra.mxu1 %v5035_v18 }
0x1107   :  { %4756 = vmatprep.subr.bf16.mxu1 %v5372_v36 }
0x110a   :  { %4757 = vmatpush3.bf16.msra.mxu1 %v5039_v24 }
0x110b   :  { %4768 = vmatprep.subr.bf16.mxu1 %v5372_v36 }
0x11ad   :  { %v4513_v39 = vpop.f32.mrf.mxu1 }
0x11af   :  { %v4514_v42 = vpop.f32.mrf.mxu1 }
0x11b0   :  { %v4515_v43 = vadd.f32 %v4514_v42, %v4513_v39  ;;  %v4312_v42 = vld [vmem:[%s6051_s6 + $0x3] sm:$0x7] }
0x11b1   :  { %v4516_v44 = vpop.f32.mrf.mxu1 }
0x11b2   :  { %v2169_v16 = vadd.f32 %v4515_v43, %v4291_v40  ;;  %v2263_v43 = vrot.slane %v4312_v42, %v5556_v25 }
0x11b3   :  { %v4517_v45 = vpop.f32.mrf.mxu1 }
0x11b4   :  { %v4518_v46 = vadd.f32 %v4517_v45, %v4516_v44  ;;  %v5781_v48 = vadd.f32 %v2169_v16, %v5753_v1 }
0x11b6   :  { %v2172_v49 = vadd.f32 %v4518_v46, %v4291_v40  ;;  %2181 = vadd.xlane.f32.xlu1 %v5781_v48 }
0x11b8   :  { %v5785_v53 = vadd.f32 %v2172_v49, %v5757_v4  ;;  %v2267_v49 = vrot.slane %v4312_v42, %v418_v27 }
0x11ba   :  { %2183 = vadd.xlane.f32.xlu0 %v5785_v53 }
0x123f   :  { %v2182_v58 = vpop.xlane.xlu1 %2181 }
0x1240   :  { %v2185_v59 = vmul.f32 0.0078125, %v2182_v58  ;;  %v2259_v58 = vrot.slane %v4312_v42, %v5550_v23 }
0x1242   :  { %v5790_v1 = vsub.f32 %v5781_v48, %v2185_v59 }
0x1243   :  { %v2184_v60 = vpop.xlane.xlu0 %2183 }
0x1244   :  { %v2186_v61 = vmul.f32 0.0078125, %v2184_v60  ;;  %v2189_v4 = vmul.f32 %v5790_v1, %v5790_v1 }
0x1246   :  { %v5795_v62 = vsub.f32 %v5785_v53, %v2186_v61  ;;  %2191 = vadd.xlane.f32.xlu1 %v2189_v4 }
0x1248   :  { %v2190_v63 = vmul.f32 %v5795_v62, %v5795_v62 }
0x124a   :  { %2193 = vadd.xlane.f32.xlu0 %v2190_v63 }
0x12cf   :  { %v2192_v50 = vpop.xlane.xlu1 %2191 }
0x12d0   :  { %v2195_v5 = vmul.f32 0.0078125, %v2192_v50 }
0x12d2   :  { %v2197_v26 = vadd.f32 1e-05, %v2195_v5 }
0x12d3   :  { %v2194_v28 = vpop.xlane.xlu0 %2193 }
0x12d4   :  { %5160 = vrsqrt.f32 %v2197_v26  ;;  %v2196_v55 = vmul.f32 0.0078125, %v2194_v28 }
0x12d6   :  { %v2198_v41 = vadd.f32 1e-05, %v2196_v55 }
0x12d8   :  { %5162 = vrsqrt.f32 %v2198_v41 }
0x12e1   :  { %v5161_v29 = vpop.eup %5160 }
0x12e2   :  { %v2201_v31 = vmul.f32 %v5161_v29, %v5790_v1 }
0x12e4   :  { %v2209_v34 = vmul.f32 %v4310_v19, %v2201_v31 }
0x12e5   :  { %v5163_v51 = vpop.eup %5162 }
0x12e6   :  { %v2202_v32 = vmul.f32 %v5163_v51, %v5795_v62  ;;  %v2217_v37 = vadd.f32 %v4311_v35, %v2209_v34 }
0x12e8   :  { %v2210_v38 = vmul.f32 %v4310_v19, %v2202_v32 }
0x12ea   :  { %v2218_v39 = vadd.f32 %v4311_v35, %v2210_v38 }
0x12ec   :  { %v2219_v40 = vpack.c.bf16 %v2218_v39, %v2217_v37 }
0x12ee   :  { %2432 = vmatmul.mubr.bf16.vlgmr.msra.gmra.mxu0 %v2219_v40  ;;  %4759 = vmatmul.mubr.bf16.vlgmr.msra.gmra.mxu1 %v2219_v40 }
0x12ef   :  { %4764 = vmatprep.mubr.msk.bf16.mxu0 %vm5373_vm6, %v5372_v36  ;;  %4770 = vmatprep.mubr.msk.bf16.mxu1 %vm5373_vm6, %v5372_v36 }
0x13ae   :  { %v2433_v44 = vpop.f32.mrf.mxu0  ;;  %v2476_v16 = vpop.f32.mrf.mxu1 }
0x13af   :  { %v2477_v61 = vadd.f32 %v2476_v16, %v2267_v49  ;;  %v2434_v63 = vadd.f32 %v2433_v44, %v2259_v58 }
0x13b0   :  { %v2435_v45 = vpop.f32.mrf.mxu0  ;;  %v4760_v46 = vpop.f32.mrf.mxu1 }
0x13b1   :  { %v2436_v54 = vadd.f32 %v2435_v45, %v2263_v43  ;;  %v5833_v22 = vpack.c.bf16 %v2477_v61, %v2477_v61  ;;  %v5837_v6 = vpack.c.bf16 %v2434_v63, %v2434_v63 }
0x13b2   :  { %v2437_v56 = vpop.f32.mrf.mxu0  ;;  %v2479_v57 = vpop.f32.mrf.mxu1 }
0x13b3   :  { %v5826_v59 = vpack.c.bf16 %v2436_v54, %v2436_v54  ;;  %v2480_v27 = vadd.f32 %v2479_v57, %v2267_v49  ;;  %v2438_v7 = vadd.f32 %v2437_v56, %v2259_v58  ;;  %v2628_v8 = vsel %vm780_vm8, %v5833_v22, 0 }
0x13b4   :  { %v2439_v1 = vpop.f32.mrf.mxu0  ;;  %v4761_v60 = vpop.f32.mrf.mxu1 }
0x13b5   :  { %v2440_v4 = vadd.f32 %v2439_v1, %v2263_v43  ;;  %v2510_v62 = vsel %vm657_vm7, %v5826_v59, 0  ;;  %v5840_v47 = vpack.c.bf16 %v2480_v27, %v2480_v27  ;;  %v5848_v30 = vpack.c.bf16 %v2438_v7, %v2438_v7 }
0x13b6   :  { %4763 = vmatpush3.bf16.xpose.msra.mxu0 %v2510_v62 }
0x13b7   :  { %v5830_v2 = vpack.c.bf16 %v2440_v4, %v2440_v4  ;;  %4774 = vmatprep.subr.bf16.mxu0 %v5372_v36  ;;  %v2674_v9 = vsel %vm780_vm8, %v5840_v47, 0 }
0x13b9   :  { %v2556_v3 = vsel %vm657_vm7, %v5830_v2, 0 }
0x13ba   :  { %4769 = vmatpush3.bf16.xpose.msra.mxu1 %v2556_v3 }
0x13bb   :  { %4780 = vmatprep.subr.bf16.mxu1 %v5372_v36 }
0x13bd   :  { %4765 = vmatmul.mubr.msk.bf16.vlgmr.msra.gmra.mxu0 %vm657_vm7, %v5837_v6 }
0x13be   :  { %4775 = vmatpush3.bf16.msra.mxu0 %v2628_v8  ;;  %4776 = vmatprep.mubr.msk.bf16.mxu0 %vm5373_vm6, %v5372_v36 }
0x13bf   :  { %4786 = vmatprep.subr.bf16.mxu0 %v5372_v36 }
0x13c1   :  { %4771 = vmatmul.mubr.msk.bf16.vlgmr.msra.gmra.mxu1 %vm657_vm7, %v5848_v30 }
0x13c2   :  { %4781 = vmatpush3.bf16.msra.mxu1 %v2674_v9  ;;  %4782 = vmatprep.mubr.msk.bf16.mxu1 %vm5373_vm6, %v5372_v36 }
0x13c3   :  { %4792 = vmatprep.subr.bf16.mxu1 %v5372_v36 }
0x147d   :  { %v2546_v52 = vpop.f32.mrf.mxu0 }
0x147e   :  { %v2598_v10 = vmul.f32 0.17677669, %v2546_v52 }
0x147f   :  { %v4766_v11 = vpop.f32.mrf.mxu0 }
0x1480   :  { %v2600_v33 = vsel %vm752_vm9, %v2598_v10, -inf }
0x1481   :  { %v2592_v12 = vpop.f32.mrf.mxu1  ;;  %2601 = vmax.xlane.f32.xlu1 %v2600_v33  ;;  %v2549_v13 = vpop.f32.mrf.mxu0 }
0x1482   :  { %v2599_v14 = vmul.f32 0.17677669, %v2592_v12 }
0x1483   :  { %v4767_v15 = vpop.f32.mrf.mxu0  ;;  %v4772_v17 = vpop.f32.mrf.mxu1 }
0x1484   :  { %v2603_v18 = vsel %vm752_vm9, %v2599_v14, -inf }
0x1485   :  { %2604 = vmax.xlane.f32.xlu0 %v2603_v18  ;;  %v2595_v20 = vpop.f32.mrf.mxu1 }
0x1487   :  { %v4773_v21 = vpop.f32.mrf.mxu1 }
0x1492   :  { %2721 = vrot.lane.b32.xlu1 %v5826_v59, %s5374_s1 }
0x150a   :  { %v2602_v24 = vpop.xlane.xlu1 %2601 }
0x150b   :  { %v2606_v50 = vsub.f32 %v2598_v10, %v2602_v24 }
0x150d   :  { %v2608_v5 = vmul.f32 1.442695, %v2606_v50 }
0x150e   :  { %v2605_v26 = vpop.xlane.xlu0 %2604  ;;  %v2722_v51 = vpop.permute.xlu1 %2721 }
0x150f   :  { %5164 = vpow2.f32 %v2608_v5  ;;  %v2607_v28 = vsub.f32 %v2599_v14, %v2605_v26  ;;  %v2727_v40 = vsel %vm657_vm7, %v2722_v51, 0 }
0x1511   :  { %v2610_v55 = vmul.f32 1.442695, %v2607_v28 }
0x1513   :  { %5166 = vpow2.f32 %v2610_v55 }
0x151c   :  { %v5165_v41 = vpop.eup %5164 }
0x151d   :  { %v2612_v29 = vsel %vm752_vm9, %v5165_v41, 0.0 }
0x151e   :  { %2613 = vadd.xlane.f32.xlu1 %v2612_v29 }
0x1520   :  { %v5167_v31 = vpop.eup %5166 }
0x1521   :  { %v2615_v19 = vsel %vm752_vm9, %v5167_v31, 0.0 }
0x1522   :  { %2616 = vadd.xlane.f32.xlu0 %v2615_v19 }
0x152f   :  { %2718 = vrot.lane.b32.xlu1 %v5837_v6, %s5374_s1 }
0x1533   :  { %2770 = vrot.lane.b32.xlu1 %v5848_v30, %s5374_s1 }
0x1538   :  { %2773 = vrot.lane.b32.xlu0 %v5830_v2, %s5374_s1 }
0x15a7   :  { %v2614_v32 = vpop.xlane.xlu1 %2613 }
0x15a8   :  { %5168 = vrcp.f32 %v2614_v32  ;;  %v5042_v32 = vld [vmem:[#allocation7 + $0x58] sm:$0xff]  }
0x15ab   :  { %v2617_v34 = vpop.xlane.xlu0 %2616  ;;  %v2719_v45 = vpop.permute.xlu1 %2718 }
0x15ac   :  { %5170 = vrcp.f32 %v2617_v34 }
0x15af   :  { %v2774_v43 = vpop.permute.xlu0 %2773  ;;  %v2771_v46 = vpop.permute.xlu1 %2770 }
0x15b0   :  { %v2779_v16 = vsel %vm657_vm7, %v2774_v43, 0 }
0x15b5   :  { %v5169_v35 = vpop.eup %5168 }
0x15b6   :  { %v2620_v38 = vmul.f32 %v5169_v35, %v5165_v41 }
0x15b8   :  { %v2622_v37 = vpack.c.bf16 %v2620_v38, %v2620_v38 }
0x15b9   :  { %v5171_v39 = vpop.eup %5170 }
0x15ba   :  { %4777 = vmatmul.mubr.msk.bf16.vlgmr.msra.gmra.mxu0 %vm752_vm9, %v2622_v37  ;;  %v2621_v42 = vmul.f32 %v5171_v39, %v5167_v31  ;;  %v5040_v37 = vld [vmem:[#allocation7 + $0x48] sm:$0xff]  }
0x15bb   :  { %4787 = vmatpush3.bf16.xpose.msra.mxu0 %v2727_v40  ;;  %4788 = vmatprep.mubr.msk.bf16.mxu0 %vm5373_vm6, %v5372_v36 }
0x15bc   :  { %v2623_v44 = vpack.c.bf16 %v2621_v42, %v2621_v42  ;;  %4798 = vmatprep.subr.bf16.mxu0 %v5372_v36  ;;  %v5041_v42 = vld [vmem:[#allocation7 + $0x40] sm:$0xff]  }
0x15be   :  { %4783 = vmatmul.mubr.msk.bf16.vlgmr.msra.gmra.mxu1 %vm752_vm9, %v2623_v44 }
0x15bf   :  { %4793 = vmatpush3.bf16.xpose.msra.mxu1 %v2779_v16  ;;  %4794 = vmatprep.mubr.msk.bf16.mxu1 %vm5373_vm6, %v5372_v36 }
0x15c0   :  { %4804 = vmatprep.subr.bf16.mxu1 %v5372_v36 }
0x15c2   :  { %4789 = vmatmul.mubr.msk.bf16.vlgmr.msra.gmra.mxu0 %vm657_vm7, %v2719_v45  ;;  %v5043_v45 = vld [vmem:[#allocation7 + $0x50] sm:$0xff]  }
0x15c3   :  { %4800 = vmatprep.mubr.msk.bf16.mxu0 %vm5373_vm6, %v5372_v36 }
0x15c6   :  { %4795 = vmatmul.mubr.msk.bf16.vlgmr.msra.gmra.mxu1 %vm657_vm7, %v2771_v46 }
0x15c7   :  { %4806 = vmatprep.mubr.msk.bf16.mxu1 %vm5373_vm6, %v5372_v36 }
0x167a   :  { %v5886_v49 = vpop.f32.mrf.mxu0 }
0x167c   :  { %v4778_v54 = vpop.f32.mrf.mxu0 }
0x167e   :  { %v2667_v56 = vpop.f32.mrf.mxu0  ;;  %v5888_v57 = vpop.f32.mrf.mxu1 }
0x167f   :  { %v2716_v58 = vpack.c.bf16 %v5888_v57, %v5886_v49 }
0x1680   :  { %v4779_v1 = vpop.f32.mrf.mxu0  ;;  %v4784_v60 = vpop.f32.mrf.mxu1 }
0x1682   :  { %v2713_v61 = vpop.f32.mrf.mxu1  ;;  %v2763_v4 = vpop.f32.mrf.mxu0 }
0x1683   :  { %v2821_v62 = vmul.f32 0.17677669, %v2763_v4 }
0x1684   :  { %v4785_v63 = vpop.f32.mrf.mxu1  ;;  %v4790_v27 = vpop.f32.mrf.mxu0 }
0x1685   :  { %v2823_v3 = vsel %vm752_vm9, %v2821_v62, -inf }
0x1686   :  { %v2815_v7 = vpop.f32.mrf.mxu1  ;;  %2824 = vmax.xlane.f32.xlu0 %v2823_v3  ;;  %v2766_v8 = vpop.f32.mrf.mxu0 }
0x1687   :  { %v2822_v9 = vmul.f32 0.17677669, %v2815_v7 }
0x1688   :  { %v4791_v52 = vpop.f32.mrf.mxu0  ;;  %v4796_v10 = vpop.f32.mrf.mxu1 }
0x1689   :  { %v2826_v11 = vsel %vm752_vm9, %v2822_v9, -inf }
0x168a   :  { %2827 = vmax.xlane.f32.xlu1 %v2826_v11  ;;  %v2818_v33 = vpop.f32.mrf.mxu1 }
0x168c   :  { %v4797_v12 = vpop.f32.mrf.mxu1 }
0x169b   :  { %2848 = vrot.lane.b32.xlu1 %v5833_v22, %s5374_s1 }
0x169f   :  { %3060 = vrot.lane.b32.xlu1 %v5826_v59, %s5365_s22 }
0x16a3   :  { %3110 = vrot.lane.b32.xlu1 %v5830_v2, %s5365_s22 }
0x16a7   :  { %3108 = vrot.lane.b32.xlu1 %v5848_v30, %s5365_s22 }
0x170f   :  { %v2825_v13 = vpop.xlane.xlu0 %2824 }
0x1710   :  { %v2829_v14 = vsub.f32 %v2821_v62, %v2825_v13 }
0x1712   :  { %v2831_v15 = vmul.f32 1.442695, %v2829_v14 }
0x1713   :  { %v2828_v17 = vpop.xlane.xlu1 %2827 }
0x1714   :  { %5172 = vpow2.f32 %v2831_v15  ;;  %v2830_v18 = vsub.f32 %v2822_v9, %v2828_v17 }
0x1716   :  { %v2833_v20 = vmul.f32 1.442695, %v2830_v18 }
0x1717   :  { %v2849_v21 = vpop.permute.xlu1 %2848 }
0x1718   :  { %5174 = vpow2.f32 %v2833_v20  ;;  %v2854_v24 = vsel %vm780_vm8, %v2849_v21, 0 }
0x1719   :  { %4799 = vmatpush3.bf16.msra.mxu0 %v2854_v24 }
0x171a   :  { %4810 = vmatprep.subr.bf16.mxu0 %v5372_v36 }
0x171b   :  { %v3061_v40 = vpop.permute.xlu1 %3060 }
0x171c   :  { %v3066_v60 = vsel %vm657_vm7, %v3061_v40, 0 }
0x171f   :  { %v3111_v43 = vpop.permute.xlu1 %3110 }
0x1720   :  { %v3116_v44 = vsel %vm657_vm7, %v3111_v43, 0 }
0x1721   :  { %v5173_v50 = vpop.eup %5172 }
0x1722   :  { %v2835_v5 = vsel %vm752_vm9, %v5173_v50, 0.0 }
0x1723   :  { %2836 = vadd.xlane.f32.xlu0 %v2835_v5  ;;  %v3109_v16 = vpop.permute.xlu1 %3108 }
0x1725   :  { %v5175_v26 = vpop.eup %5174 }
0x1726   :  { %v2838_v28 = vsel %vm752_vm9, %v5175_v26, 0.0 }
0x1727   :  { %2839 = vadd.xlane.f32.xlu0 %v2838_v28 }
0x173d   :  { %2897 = vrot.lane.b32.xlu0 %v5840_v47, %s5374_s1  ;;  %s4179_s1 = sshll.u32 %s5376_s18, 4  ;;  %s4180_s1 = int_to_ptr.vmem [resolvable:$true] %s4179_s1 }
0x173e   :  { %p5333_p3 = scmp.lt.s32.totalorder %s4180_s1, %s4180_s1 }
0x1741   :  { %3058 = vrot.lane.b32.xlu0 %v5837_v6, %s5365_s22 }
0x17ac   :  { %v2837_v55 = vpop.xlane.xlu0 %2836 }
0x17ad   :  { %5176 = vrcp.f32 %v2837_v55 }
0x17b0   :  { %v2840_v41 = vpop.xlane.xlu0 %2839 }
0x17b1   :  { %5178 = vrcp.f32 %v2840_v41 }
0x17b4   :  { %v2898_v29 = vpop.permute.xlu0 %2897 }
0x17b5   :  { %v2903_v31 = vsel %vm780_vm8, %v2898_v29, 0 }
0x17b6   :  { %4805 = vmatpush3.bf16.msra.mxu1 %v2903_v31 }
0x17b7   :  { %4818 = vmatprep.subr.bf16.mxu1 %v5372_v36 }
0x17b8   :  { %v3059_v63 = vpop.permute.xlu0 %3058 }
0x17ba   :  { %v5177_v19 = vpop.eup %5176 }
0x17bb   :  { %v2843_v51 = vmul.f32 %v5177_v19, %v5173_v50 }
0x17bd   :  { %v2845_v34 = vpack.c.bf16 %v2843_v51, %v2843_v51 }
0x17be   :  { %v5179_v35 = vpop.eup %5178 }
0x17bf   :  { %4801 = vmatmul.mubr.msk.bf16.vlgmr.msra.gmra.mxu0 %vm752_vm9, %v2845_v34  ;;  %v2844_v38 = vmul.f32 %v5179_v35, %v5175_v26 }
0x17c0   :  { %4811 = vmatpush3.bf16.msra.mxu0 %v5042_v32  ;;  %4814 = vmatprep.mubr.msk.bf16.mxu0 %vm5373_vm6, %v5372_v36 }
0x17c1   :  { %v2846_v39 = vpack.c.bf16 %v2844_v38, %v2844_v38  ;;  %4812 = vmatprep.subr.bf16.mxu0 %v5372_v36 }
0x17c3   :  { %4807 = vmatmul.mubr.msk.bf16.vlgmr.msra.gmra.mxu1 %vm752_vm9, %v2846_v39 }
0x17c4   :  { %4819 = vmatpush3.bf16.msra.mxu1 %v5040_v37  ;;  %4822 = vmatprep.mubr.msk.bf16.mxu1 %vm5373_vm6, %v5372_v36 }
0x17c5   :  { %4820 = vmatprep.subr.bf16.mxu1 %v5372_v36  ;;  %4813 = vmatpush3.bf16.msra.mxu0 %v5043_v45 }
0x17c6   :  { %4826 = vmatprep.subr.bf16.mxu0 %v5372_v36 }
0x17c8   :  { %4821 = vmatpush3.bf16.msra.mxu1 %v5041_v42 }
0x17c9   :  { %4832 = vmatprep.subr.bf16.mxu1 %v5372_v36 }
0x17cb   :  { %4823 = vmatmul.mubr.msk.bf16.vlgmr.msra.gmra.mxu1 %vm657_vm7, %v2716_v58 }
0x17cc   :  { %4833 = vmatpush3.bf16.xpose.msra.mxu1 %v3116_v44  ;;  %4834 = vmatprep.mubr.msk.bf16.mxu1 %vm5373_vm6, %v5372_v36 }
0x17cd   :  { %4844 = vmatprep.subr.bf16.mxu1 %v5372_v36 }
0x17d3   :  { %4835 = vmatmul.mubr.msk.bf16.vlgmr.msra.gmra.mxu1 %vm657_vm7, %v3109_v16 }
0x17d4   :  { %4846 = vmatprep.mubr.msk.bf16.mxu1 %vm5373_vm6, %v5372_v36 }
0x187f   :  { %v2890_v46 = vpop.f32.mrf.mxu0 }
0x1881   :  { %v4802_v49 = vpop.f32.mrf.mxu0 }
0x1882   :  { %v5045_v49 = vld [vmem:[#allocation7 + $0x60] sm:$0xff]  }
0x1883   :  { %v2893_v54 = vpop.f32.mrf.mxu0  ;;  %v2939_v56 = vpop.f32.mrf.mxu1 }
0x1884   :  { %v2945_v57 = vpack.c.bf16 %v2939_v56, %v2890_v46  ;;  %v5044_v46 = vld [vmem:[#allocation7 + $0x68] sm:$0xff]  }
0x1885   :  { %v4803_v58 = vpop.f32.mrf.mxu0  ;;  %v4808_v1 = vpop.f32.mrf.mxu1 }
0x1886   :  { %4815 = vmatmul.mubr.msk.bf16.vlgmr.msra.gmra.mxu0 %vm657_vm7, %v2945_v57 }
0x1887   :  { %4827 = vmatpush3.bf16.xpose.msra.mxu0 %v3066_v60  ;;  %v2942_v61 = vpop.f32.mrf.mxu1  ;;  %4828 = vmatprep.mubr.msk.bf16.mxu0 %vm5373_vm6, %v5372_v36 }
0x1888   :  { %4838 = vmatprep.subr.bf16.mxu0 %v5372_v36 }
0x1889   :  { %v4809_v4 = vpop.f32.mrf.mxu1 }
0x188b   :  { %v5938_v62 = vpop.f32.mrf.mxu1 }
0x188d   :  { %v4824_v27 = vpop.f32.mrf.mxu1 }
0x188e   :  { %4829 = vmatmul.mubr.msk.bf16.vlgmr.msra.gmra.mxu0 %vm657_vm7, %v3059_v63 }
0x188f   :  { %v5941_v3 = vpop.f32.mrf.mxu1  ;;  %4840 = vmatprep.mubr.msk.bf16.mxu0 %vm5373_vm6, %v5372_v36 }
0x1891   :  { %v4825_v7 = vpop.f32.mrf.mxu1 }
0x1893   :  { %v3152_v8 = vpop.f32.mrf.mxu1 }
0x1894   :  { %v3159_v9 = vmul.f32 0.17677669, %v3152_v8 }
0x1895   :  { %v4836_v52 = vpop.f32.mrf.mxu1 }
0x1896   :  { %v3163_v10 = vsel %vm752_vm9, %v3159_v9, -inf }
0x1897   :  { %3164 = vmax.xlane.f32.xlu1 %v3163_v10  ;;  %v3155_v11 = vpop.f32.mrf.mxu1 }
0x1899   :  { %v4837_v33 = vpop.f32.mrf.mxu1 }
0x18a8   :  { %3184 = vrot.lane.b32.xlu1 %v5833_v22, %s5365_s22 }
0x18ac   :  { %3341 = vrot.lane.b32.xlu1 %v5826_v59, %s5375_s19 }
0x18b0   :  { %3391 = vrot.lane.b32.xlu1 %v5830_v2, %s5375_s19 }
0x18b4   :  { %3389 = vrot.lane.b32.xlu1 %v5848_v30, %s5375_s19 }
0x1920   :  { %v3165_v12 = vpop.xlane.xlu1 %3164 }
0x1921   :  { %v3167_v15 = vsub.f32 %v3159_v9, %v3165_v12 }
0x1923   :  { %v3170_v17 = vmul.f32 1.442695, %v3167_v15 }
0x1924   :  { %v3185_v13 = vpop.permute.xlu1 %3184 }
0x1925   :  { %v3190_v14 = vsel %vm780_vm8, %v3185_v13, 0  ;;  %5180 = vpow2.f32 %v3170_v17 }
0x1926   :  { %4839 = vmatpush3.bf16.msra.mxu0 %v3190_v14 }
0x1927   :  { %4850 = vmatprep.subr.bf16.mxu0 %v5372_v36 }
0x1928   :  { %v3342_v40 = vpop.permute.xlu1 %3341 }
0x1929   :  { %v3347_v43 = vsel %vm657_vm7, %v3342_v40, 0  ;;  %v5046_v40 = vld [vmem:[#allocation7 + $0x78] sm:$0xff]  }
0x192c   :  { %v3392_v60 = vpop.permute.xlu1 %3391 }
0x192d   :  { %v3397_v52 = vsel %vm657_vm7, %v3392_v60, 0 }
0x1930   :  { %v3390_v12 = vpop.permute.xlu1 %3389 }
0x1932   :  { %v5181_v5 = vpop.eup %5180 }
0x1933   :  { %v3175_v55 = vsel %vm752_vm9, %v5181_v5, 0.0 }
0x1946   :  { %v5956_v18 = vpop.f32.mrf.mxu0 }
0x1948   :  { %v4816_v20 = vpop.f32.mrf.mxu0 }
0x194a   :  { %v5958_v59 = vpop.f32.mrf.mxu0 }
0x194c   :  { %v4817_v21 = vpop.f32.mrf.mxu0 }
0x194d   :  { %v3052_v21 = vadd.f32 %v5938_v62, %v5956_v18 }
0x194e   :  { %v3102_v2 = vpop.f32.mrf.mxu0 }
0x194f   :  { %v3158_v24 = vmul.f32 0.17677669, %v3102_v2 }
0x1950   :  { %v4830_v50 = vpop.f32.mrf.mxu0 }
0x1951   :  { %v3160_v30 = vsel %vm752_vm9, %v3158_v24, -inf }
0x1952   :  { %3161 = vmax.xlane.f32.xlu0 %v3160_v30  ;;  %v3105_v26 = vpop.f32.mrf.mxu0  ;;  %v3055_v30 = vadd.f32 %v5941_v3, %v5958_v59 }
0x1954   :  { %v4831_v28 = vpop.f32.mrf.mxu0 }
0x1956   :  { %3176 = vadd.xlane.f32.xlu0 %v3175_v55 }
0x19db   :  { %v3162_v41 = vpop.xlane.xlu0 %3161 }
0x19dc   :  { %v3166_v29 = vsub.f32 %v3158_v24, %v3162_v41 }
0x19de   :  { %v3168_v31 = vmul.f32 1.442695, %v3166_v29 }
0x19df   :  { %v3177_v32 = vpop.xlane.xlu0 %3176 }
0x19e0   :  { %5182 = vpow2.f32 %v3168_v31 }
0x19e1   :  { %5184 = vrcp.f32 %v3177_v32 }
0x19ed   :  { %v5183_v19 = vpop.eup %5182 }
0x19ee   :  { %v3172_v51 = vsel %vm752_vm9, %v5183_v19, 0.0  ;;  %v5185_v34 = vpop.eup %5184 }
0x19ef   :  { %3173 = vadd.xlane.f32.xlu0 %v3172_v51  ;;  %v3181_v38 = vmul.f32 %v5185_v34, %v5181_v5 }
0x19f1   :  { %v3183_v42 = vpack.c.bf16 %v3181_v38, %v3181_v38 }
0x1a05   :  { %3232 = vrot.lane.b32.xlu0 %v5840_v47, %s5365_s22 }
0x1a09   :  { %3339 = vrot.lane.b32.xlu0 %v5837_v6, %s5375_s19 }
0x1a78   :  { %v3174_v35 = vpop.xlane.xlu0 %3173 }
0x1a79   :  { %5186 = vrcp.f32 %v3174_v35 }
0x1a7c   :  { %v3233_v37 = vpop.permute.xlu0 %3232 }
0x1a7d   :  { %v3238_v39 = vsel %vm780_vm8, %v3233_v37, 0 }
0x1a7e   :  { %4845 = vmatpush3.bf16.msra.mxu1 %v3238_v39 }
0x1a7f   :  { %4858 = vmatprep.subr.bf16.mxu1 %v5372_v36 }
0x1a80   :  { %v3340_v16 = vpop.permute.xlu0 %3339 }
0x1a81   :  { %4847 = vmatmul.mubr.msk.bf16.vlgmr.msra.gmra.mxu1 %vm752_vm9, %v3183_v42 }
0x1a82   :  { %4859 = vmatpush3.bf16.xpose.msra.mxu1 %v3347_v43  ;;  %4860 = vmatprep.mubr.msk.bf16.mxu1 %vm5373_vm6, %v5372_v36 }
0x1a83   :  { %4870 = vmatprep.subr.bf16.mxu1 %v5372_v36 }
0x1a86   :  { %v5187_v6 = vpop.eup %5186 }
0x1a87   :  { %v3180_v44 = vmul.f32 %v5187_v6, %v5183_v19 }
0x1a89   :  { %4861 = vmatmul.mubr.msk.bf16.vlgmr.msra.gmra.mxu1 %vm657_vm7, %v3340_v16  ;;  %v3182_v45 = vpack.c.bf16 %v3180_v44, %v3180_v44 }
0x1a8a   :  { %4872 = vmatprep.mubr.msk.bf16.mxu1 %vm5373_vm6, %v5372_v36 }
0x1a8b   :  { %4841 = vmatmul.mubr.msk.bf16.vlgmr.msra.gmra.mxu0 %vm752_vm9, %v3182_v45 }
0x1a8c   :  { %4854 = vmatprep.mubr.msk.bf16.mxu0 %vm5373_vm6, %v5372_v36  ;;  %4851 = vmatpush3.bf16.msra.mxu0 %v5044_v46 }
0x1a8d   :  { %4852 = vmatprep.subr.bf16.mxu0 %v5372_v36 }
0x1a90   :  { %4853 = vmatpush3.bf16.msra.mxu0 %v5045_v49 }
0x1a91   :  { %4864 = vmatprep.subr.bf16.mxu0 %v5372_v36 }
0x1b41   :  { %v3274_v54 = vpop.f32.mrf.mxu1 }
0x1b43   :  { %v4848_v56 = vpop.f32.mrf.mxu1 }
0x1b44   :  { %v5047_v56 = vld [vmem:[#allocation7 + $0x70] sm:$0xff]  }
0x1b45   :  { %v3277_v57 = vpop.f32.mrf.mxu1 }
0x1b47   :  { %v4849_v58 = vpop.f32.mrf.mxu1 }
0x1b49   :  { %v3383_v1 = vpop.f32.mrf.mxu1 }
0x1b4a   :  { %v3439_v61 = vmul.f32 0.17677669, %v3383_v1 }
0x1b4b   :  { %v3226_v4 = vpop.f32.mrf.mxu0  ;;  %v4862_v63 = vpop.f32.mrf.mxu1 }
0x1b4c   :  { %v3280_v27 = vpack.c.bf16 %v3274_v54, %v3226_v4  ;;  %v3441_v7 = vsel %vm752_vm9, %v3439_v61, -inf }
0x1b4d   :  { %3442 = vmax.xlane.f32.xlu0 %v3441_v7  ;;  %v4842_v8 = vpop.f32.mrf.mxu0  ;;  %v3386_v9 = vpop.f32.mrf.mxu1 }
0x1b4e   :  { %4855 = vmatmul.mubr.msk.bf16.vlgmr.msra.gmra.mxu0 %vm657_vm7, %v3280_v27  ;;  %v4366_v27 = vld [vmem:[%s6053_s8 + $0x1] ss:$0 sm:$0xff] }
0x1b4f   :  { %4865 = vmatpush3.bf16.xpose.msra.mxu0 %v3397_v52  ;;  %v3229_v10 = vpop.f32.mrf.mxu0  ;;  %v4863_v11 = vpop.f32.mrf.mxu1  ;;  %4866 = vmatprep.mubr.msk.bf16.mxu0 %vm5373_vm6, %v5372_v36 }
0x1b50   :  { %4876 = vmatprep.subr.bf16.mxu0 %v5372_v36 }
0x1b51   :  { %v4843_v33 = vpop.f32.mrf.mxu0 }
0x1b56   :  { %4867 = vmatmul.mubr.msk.bf16.vlgmr.msra.gmra.mxu0 %vm657_vm7, %v3390_v12  ;;  %v5048_v12 = vld [vmem:[#allocation8 + $0xf0] ss:$8 sps:$4 sm:$0xff]  }
0x1b57   :  { %4878 = vmatprep.mubr.msk.bf16.mxu0 %vm5373_vm6, %v5372_v36 }
0x1bd6   :  { %v3443_v13 = vpop.xlane.xlu0 %3442 }
0x1bd7   :  { %v3447_v14 = vsub.f32 %v3439_v61, %v3443_v13  ;;  %v5050_v13 = vld [vmem:[#allocation8 + $0xf4] ss:$8 sps:$4 sm:$0xff]  }
0x1bd9   :  { %v3449_v15 = vmul.f32 1.442695, %v3447_v14 }
0x1bdb   :  { %5188 = vpow2.f32 %v3449_v15 }
0x1be8   :  { %v5189_v17 = vpop.eup %5188 }
0x1be9   :  { %v3453_v20 = vsel %vm752_vm9, %v5189_v17, 0.0 }
0x1bea   :  { %3454 = vadd.xlane.f32.xlu0 %v3453_v20 }
0x1c0e   :  { %v3330_v2 = vpop.f32.mrf.mxu0 }
0x1c0f   :  { %v3337_v24 = vadd.f32 %v3330_v2, %v3052_v21 }
0x1c10   :  { %v4856_v50 = vpop.f32.mrf.mxu0 }
0x1c11   :  { %v5051_v50 = vld [vmem:[#allocation8 + $0xe0] ss:$8 sps:$4 sm:$0xff]  }
0x1c12   :  { %v3333_v5 = vpop.f32.mrf.mxu0 }
0x1c13   :  { %v3338_v26 = vadd.f32 %v3333_v5, %v3055_v30  ;;  %v5056_v30 = vld [vmem:[#allocation8 + $0xd4] ss:$8 sps:$4 sm:$0xff]   ;;  %v5054_v5 = vld [vmem:[#allocation8 + $0xd0] ss:$8 sps:$4 sm:$0xff]  }
0x1c14   :  { %v4857_v28 = vpop.f32.mrf.mxu0 }
0x1c15   :  { %v5059_v28 = vld [vmem:[#allocation8 + $0xc4] ss:$8 sps:$4 sm:$0xff]  }
0x1c16   :  { %v3433_v55 = vpop.f32.mrf.mxu0 }
0x1c17   :  { %v3440_v41 = vmul.f32 0.17677669, %v3433_v55  ;;  %v5062_v55 = vld [vmem:[#allocation8 + $0xb4] ss:$8 sps:$4 sm:$0xff]  }
0x1c18   :  { %v4868_v29 = vpop.f32.mrf.mxu0 }
0x1c19   :  { %v3444_v31 = vsel %vm752_vm9, %v3440_v41, -inf  ;;  %v5065_v29 = vld [vmem:[#allocation8 + $0xa4] ss:$8 sps:$4 sm:$0xff]  }
0x1c1a   :  { %3445 = vmax.xlane.f32.xlu1 %v3444_v31  ;;  %v3436_v19 = vpop.f32.mrf.mxu0  ;;  %v5063_v31 = vld [vmem:[#allocation8 + $0xa0] ss:$8 sps:$4 sm:$0xff]  }
0x1c1b   :  { %v5068_v19 = vld [vmem:[#allocation8 + $0x94] ss:$8 sps:$4 sm:$0xff]  }
0x1c1c   :  { %v4869_v51 = vpop.f32.mrf.mxu0 }
0x1c1d   :  { %v5066_v51 = vld [vmem:[#allocation8 + $0x90] ss:$8 sps:$4 sm:$0xff]  }
0x1c2b   :  { %3465 = vrot.lane.b32.xlu1 %v5833_v22, %s5375_s19 }
0x1c73   :  { %v3455_v62 = vpop.xlane.xlu0 %3454 }
0x1c74   :  { %5190 = vrcp.f32 %v3455_v62  ;;  %v5071_v62 = vld [vmem:[#allocation8 + $0x84] ss:$8 sps:$4 sm:$0xff]  }
0x1c81   :  { %v5191_v18 = vpop.eup %5190 }
0x1c82   :  { %v3461_v59 = vmul.f32 %v5191_v18, %v5189_v17  ;;  %v5069_v18 = vld [vmem:[#allocation8 + $0x80] ss:$8 sps:$4 sm:$0xff]  }
0x1c84   :  { %v3463_v37 = vpack.c.bf16 %v3461_v59, %v3461_v59 }
0x1ca3   :  { %v3446_v32 = vpop.xlane.xlu1 %3445 }
0x1ca4   :  { %v3448_v34 = vsub.f32 %v3440_v41, %v3446_v32  ;;  %v5060_v41 = vld [vmem:[#allocation8 + $0xb0] ss:$8 sps:$4 sm:$0xff]  }
0x1ca6   :  { %v3451_v3 = vmul.f32 1.442695, %v3448_v34 }
0x1ca7   :  { %v3466_v35 = vpop.permute.xlu1 %3465 }
0x1ca8   :  { %5192 = vpow2.f32 %v3451_v3  ;;  %v3471_v38 = vsel %vm780_vm8, %v3466_v35, 0 }
0x1ca9   :  { %4871 = vmatpush3.bf16.msra.mxu1 %v3471_v38 }
0x1caa   :  { %4882 = vmatprep.subr.bf16.mxu1 %v5372_v36 }
0x1cac   :  { %4873 = vmatmul.mubr.msk.bf16.vlgmr.msra.gmra.mxu1 %vm752_vm9, %v3463_v37 }
0x1cad   :  { %4886 = vmatprep.mubr.msk.bf16.mxu1 %vm5373_vm6, %v5372_v36  ;;  %4883 = vmatpush3.bf16.msra.mxu1 %v5046_v40 }
0x1cae   :  { %4884 = vmatprep.subr.bf16.mxu1 %v5372_v36 }
0x1cb1   :  { %4885 = vmatpush3.bf16.msra.mxu1 %v5047_v56  ;;  %v5075_v56 = vld [vmem:[#allocation10 + $0xb0] sm:$0xff]  }
0x1cb5   :  { %v5193_v22 = vpop.eup %5192 }
0x1cb6   :  { %v3456_v39 = vsel %vm752_vm9, %v5193_v22, 0.0 }
0x1cb7   :  { %3457 = vadd.xlane.f32.xlu0 %v3456_v39  ;;  %v4369_v39 = vld [vmem:[%s6054_s9 + $0x1] ss:$0 sm:$0xff] }
0x1ccd   :  { %3513 = vrot.lane.b32.xlu0 %v5840_v47, %s5375_s19 }
0x1d40   :  { %v3458_v42 = vpop.xlane.xlu0 %3457 }
0x1d41   :  { %5194 = vrcp.f32 %v3458_v42 }
0x1d44   :  { %v3514_v43 = vpop.permute.xlu0 %3513 }
0x1d45   :  { %v3519_v6 = vsel %vm780_vm8, %v3514_v43, 0 }
0x1d46   :  { %4877 = vmatpush3.bf16.msra.mxu0 %v3519_v6  ;;  %v4370_v6 = vld [vmem:[%s6055_s10 + $0x1] ss:$0 sm:$0xff] }
0x1d47   :  { %3785 = vmatprep.subr.bf16.mxu0 %v5050_v13  ;;  %v5096_v13 = vld [vmem:[#allocation11 + $0x54] ss:$8 sps:$4 sm:$0xff]  }
0x1d4e   :  { %v5195_v44 = vpop.eup %5194 }
0x1d4f   :  { %v3462_v16 = vmul.f32 %v5195_v44, %v5193_v22 }
0x1d51   :  { %v3464_v45 = vpack.c.bf16 %v3462_v16, %v3462_v16 }
0x1d53   :  { %4879 = vmatmul.mubr.msk.bf16.vlgmr.msra.gmra.mxu0 %vm752_vm9, %v3464_v45 }
0x1d54   :  { %3817 = vmatprep.mubr.bf16.mxu0 %v5370_v0  ;;  %3786 = vmatpush1.bf16.msra.mxu0 %v5048_v12  ;;  %v5091_v12 = vld [vmem:[#allocation11 + $0x60] ss:$8 sps:$4 sm:$0xff]  }
0x1d6c   :  { %v3507_v46 = vpop.f32.mrf.mxu1 }
0x1d6e   :  { %v4874_v49 = vpop.f32.mrf.mxu1 }
0x1d6f   :  { %v5072_v49 = vld [vmem:[#allocation10 + $0xf8] sm:$0xff]  }
0x1d70   :  { %v3510_v47 = vpop.f32.mrf.mxu1  ;;  %4572 = vmatprep.subr.bf16.mxu1 %v5072_v49  ;;  %v5106_v49 = vld [vmem:[#allocation11 + $0x10] ss:$8 sps:$4 sm:$0xff]  }
0x1d71   :  { %v5073_v47 = vld [vmem:[#allocation10 + $0xb8] sm:$0xff]  }
0x1d72   :  { %v4875_v54 = vpop.f32.mrf.mxu1 }
0x1d73   :  { %v5074_v54 = vld [vmem:[#allocation10 + $0xf0] sm:$0xff]  }
0x1e13   :  { %v3555_v36 = vpop.f32.mrf.mxu0 }
0x1e14   :  { %v3561_v57 = vpack.c.bf16 %v3555_v36, %v3507_v46  ;;  %v5076_v36 = vld [vmem:[#allocation10 + $0xe8] sm:$0xff]  }
0x1e15   :  { %v4880_v58 = vpop.f32.mrf.mxu0 }
0x1e16   :  { %4887 = vmatmul.mubr.msk.bf16.vlgmr.msra.gmra.mxu1 %vm657_vm7, %v3561_v57  ;;  %v5077_v57 = vld [vmem:[#allocation10 + $0xa8] sm:$0xff]   ;;  %v5078_v58 = vld [vmem:[#allocation10 + $0xe0] sm:$0xff]  }
0x1e17   :  { %v3558_v1 = vpop.f32.mrf.mxu0  ;;  %4573 = vmatpush3.bf16.msra.mxu1 %v5073_v47  ;;  %v5111_v47 = vld [vmem:[#allocation11 + $0x4] ss:$8 sps:$4 sm:$0xff]  }
0x1e18   :  { %4574 = vmatprep.subr.bf16.mxu1 %v5074_v54  ;;  %v5079_v1 = vld [vmem:[#allocation10 + $0xa0] sm:$0xff]  }
0x1e19   :  { %v4881_v60 = vpop.f32.mrf.mxu0  ;;  %v5109_v54 = vld [vmem:[#allocation11] ss:$8 sps:$4 sm:$0xff]  }
0x1e1a   :  { %v5080_v60 = vld [vmem:[#allocation10 + $0xd8] sm:$0xff]  }
0x1e1b   :  { %4575 = vmatpush3.bf16.msra.mxu1 %v5075_v56 }
0x1e1c   :  { %4576 = vmatprep.subr.bf16.mxu1 %v5076_v36 }
0x1e1f   :  { %4577 = vmatpush3.bf16.msra.mxu1 %v5077_v57 }
0x1e20   :  { %4578 = vmatprep.subr.bf16.mxu1 %v5078_v58  ;;  %v4389_v58 = vld [vmem:[%s6059_s14 + $0x1] ss:$0 sm:$0xff]  ;;  %s5328_s14 = scalar_lea.vmem %s4180_s1, 512 }
0x1e21   :  { %p5329_p2 = scmp.ne.s32.totalorder %s4180_s1, %s5328_s14  ;;  %p5334_p4 = scmp.lt.s32.totalorder %s5328_s14, %s5328_s14 }
0x1e23   :  { %4579 = vmatpush3.bf16.msra.mxu1 %v5079_v1  ;;  %p5335_p5 = por %p5334_p4, %p5333_p3 }
0x1e24   :  { %4580 = vmatprep.subr.bf16.mxu1 %v5080_v60 }
0x1e25   :  { %p5336_p6 = pnand %p5335_p5, %p5329_p2 }
0x1ed6   :  { %v3611_v61 = vpop.f32.mrf.mxu1 }
0x1ed7   :  { %v3618_v4 = vadd.f32 %v3611_v61, %v3337_v24  ;;  %v5053_v24 = vld [vmem:[#allocation8 + $0xe4] ss:$8 sps:$4 sm:$0xff]   ;;  %v5081_v61 = vld [vmem:[#allocation10 + $0x98] sm:$0xff]  }
0x1ed8   :  { %v4888_v63 = vpop.f32.mrf.mxu1  ;;  %3787 = vmatprep.subr.bf16.mxu0 %v5053_v24  ;;  %4581 = vmatpush3.bf16.msra.mxu1 %v5081_v61 }
0x1ed9   :  { %v3620_v7 = vadd.f32 %v3618_v4, %v5781_v48  ;;  %3788 = vmatpush1.bf16.msra.mxu0 %v5051_v50  ;;  %v5083_v4 = vld [vmem:[#allocation10 + $0x90] sm:$0xff]   ;;  %v5084_v63 = vld [vmem:[#allocation10 + $0xc8] sm:$0xff]  }
0x1eda   :  { %v3614_v8 = vpop.f32.mrf.mxu1  ;;  %3789 = vmatprep.subr.bf16.mxu0 %v5056_v30 }
0x1edb   :  { %v3619_v9 = vadd.f32 %v3614_v8, %v3338_v26  ;;  %v6016_v52 = vadd.f32 %v4366_v27, %v3620_v7  ;;  %v5057_v26 = vld [vmem:[#allocation8 + $0xc0] ss:$8 sps:$4 sm:$0xff]  }
0x1edc   :  { %v4889_v10 = vpop.f32.mrf.mxu1  ;;  %v5086_v7 = vld [vmem:[#allocation10 + $0xc0] sm:$0xff]  }
0x1edd   :  { %v3621_v11 = vadd.f32 %v3619_v9, %v5785_v53  ;;  %3636 = vadd.xlane.f32.xlu1 %v6016_v52  ;;  %3790 = vmatpush1.bf16.msra.mxu0 %v5054_v5  ;;  %v5087_v8 = vld [vmem:[#allocation10 + $0x80] sm:$0xff]   ;;  %v5088_v9 = vld [vmem:[#allocation11 + $0x70] ss:$8 sps:$4 sm:$0xff]   ;;  %v5090_v10 = vld [vmem:[#allocation11 + $0x74] ss:$8 sps:$4 sm:$0xff]  }
0x1ede   :  { %3791 = vmatprep.subr.bf16.mxu0 %v5059_v28 }
0x1edf   :  { %v6020_v33 = vadd.f32 %v4366_v27, %v3621_v11  ;;  %v5085_v27 = vld [vmem:[#allocation10 + $0x88] sm:$0xff]  }
0x1ee0   :  { %v5093_v11 = vld [vmem:[#allocation11 + $0x64] ss:$8 sps:$4 sm:$0xff]  }
0x1ee1   :  { %3638 = vadd.xlane.f32.xlu0 %v6020_v33  ;;  %3792 = vmatpush1.bf16.msra.mxu0 %v5057_v26 }
0x1ee2   :  { %3793 = vmatprep.subr.bf16.mxu0 %v5062_v55 }
0x1ee5   :  { %3794 = vmatpush1.bf16.msra.mxu0 %v5060_v41 }
0x1ee6   :  { %3795 = vmatprep.subr.bf16.mxu0 %v5065_v29 }
0x1ee9   :  { %3796 = vmatpush1.bf16.msra.mxu0 %v5063_v31 }
0x1eea   :  { %3797 = vmatprep.subr.bf16.mxu0 %v5068_v19 }
0x1eed   :  { %3798 = vmatpush1.bf16.msra.mxu0 %v5066_v51 }
0x1eee   :  { %3799 = vmatprep.subr.bf16.mxu0 %v5071_v62 }
0x1ef1   :  { %3800 = vmatpush1.bf16.msra.mxu0 %v5069_v18 }
0x1ef2   :  { %4127 = vmatprep.subr.bf16.mxu0 %v5090_v10 }
0x1f66   :  { %v3637_v14 = vpop.xlane.xlu1 %3636 }
0x1f67   :  { %v3640_v15 = vmul.f32 0.0078125, %v3637_v14  ;;  %v5094_v14 = vld [vmem:[#allocation11 + $0x50] ss:$8 sps:$4 sm:$0xff]  }
0x1f69   :  { %v3642_v48 = vsub.f32 %v6016_v52, %v3640_v15  ;;  %v5099_v15 = vld [vmem:[#allocation11 + $0x44] ss:$8 sps:$4 sm:$0xff]  }
0x1f6a   :  { %v3639_v17 = vpop.xlane.xlu0 %3638 }
0x1f6b   :  { %v3641_v20 = vmul.f32 0.0078125, %v3639_v17  ;;  %v3644_v21 = vmul.f32 %v3642_v48, %v3642_v48  ;;  %v5102_v17 = vld [vmem:[#allocation11 + $0x34] ss:$8 sps:$4 sm:$0xff]  }
0x1f6d   :  { %v3643_v2 = vsub.f32 %v6020_v33, %v3641_v20  ;;  %3646 = vadd.xlane.f32.xlu1 %v3644_v21  ;;  %v5100_v20 = vld [vmem:[#allocation11 + $0x30] ss:$8 sps:$4 sm:$0xff]   ;;  %v4371_v21 = vld [vmem:[%s6057_s12 + $0x2] sm:$0x3] }
0x1f6f   :  { %v3645_v53 = vmul.f32 %v3643_v2, %v3643_v2 }
0x1f71   :  { %3648 = vadd.xlane.f32.xlu0 %v3645_v53  ;;  %v3702_v53 = vrot.slane %v4371_v21, %v5556_v25 }
0x1ff6   :  { %v3647_v32 = vpop.xlane.xlu1 %3646 }
0x1ff7   :  { %v3650_v34 = vmul.f32 0.0078125, %v3647_v32 }
0x1ff9   :  { %v3652_v3 = vadd.f32 1e-05, %v3650_v34 }
0x1ffa   :  { %v3649_v59 = vpop.xlane.xlu0 %3648 }
0x1ffb   :  { %5196 = vrsqrt.f32 %v3652_v3  ;;  %v3651_v35 = vmul.f32 0.0078125, %v3649_v59 }
0x1ffd   :  { %v3653_v38 = vadd.f32 1e-05, %v3651_v35 }
0x1fff   :  { %5198 = vrsqrt.f32 %v3653_v38 }
0x2008   :  { %v5197_v37 = vpop.eup %5196 }
0x2009   :  { %v3656_v22 = vmul.f32 %v5197_v37, %v3642_v48  ;;  %v5097_v48 = vld [vmem:[#allocation11 + $0x40] ss:$8 sps:$4 sm:$0xff]  }
0x200b   :  { %v3664_v43 = vmul.f32 %v4369_v39, %v3656_v22 }
0x200c   :  { %v5199_v40 = vpop.eup %5198 }
0x200d   :  { %v3657_v42 = vmul.f32 %v5199_v40, %v3643_v2  ;;  %v3672_v16 = vadd.f32 %v4370_v6, %v3664_v43  ;;  %v3698_v2 = vrot.slane %v4371_v21, %v5550_v23 }
0x200f   :  { %v3665_v44 = vmul.f32 %v4369_v39, %v3657_v42 }
0x2011   :  { %v3673_v45 = vadd.f32 %v4370_v6, %v3665_v44 }
0x2013   :  { %v3674_v46 = vpack.c.bf16 %v3673_v45, %v3672_v16  ;;  %v5105_v16 = vld [vmem:[#allocation11 + $0x24] ss:$8 sps:$4 sm:$0xff]   ;;  %v5103_v45 = vld [vmem:[#allocation11 + $0x20] ss:$8 sps:$4 sm:$0xff]  }
0x2015   :  { %3818 = vmatmul.mubr.bf16.vlgmr.msra.gmra.mxu0 %v3674_v46  ;;  %v5108_v46 = vld [vmem:[#allocation11 + $0x14] ss:$8 sps:$4 sm:$0xff]  }
0x2016   :  { %4159 = vmatprep.mubr.bf16.mxu0 %v5370_v0  ;;  %v5082_v0 = vld [vmem:[#allocation10 + $0xd0] sm:$0xff]   ;;  %4128 = vmatpush1.bf16.msra.mxu0 %v5088_v9 }
0x2017   :  { %4582 = vmatprep.subr.bf16.mxu1 %v5082_v0  ;;  %4129 = vmatprep.subr.bf16.mxu0 %v5093_v11 }
0x2018   :  { %4583 = vmatpush3.bf16.msra.mxu1 %v5083_v4 }
0x2019   :  { %4584 = vmatprep.subr.bf16.mxu1 %v5084_v63 }
0x201a   :  { %4130 = vmatpush1.bf16.msra.mxu0 %v5091_v12 }
0x201b   :  { %4131 = vmatprep.subr.bf16.mxu0 %v5096_v13 }
0x201c   :  { %4585 = vmatpush3.bf16.msra.mxu1 %v5085_v27 }
0x201d   :  { %4586 = vmatprep.subr.bf16.mxu1 %v5086_v7 }
0x201e   :  { %4132 = vmatpush1.bf16.msra.mxu0 %v5094_v14 }
0x201f   :  { %4133 = vmatprep.subr.bf16.mxu0 %v5099_v15 }
0x2020   :  { %4587 = vmatpush3.bf16.msra.mxu1 %v5087_v8 }
0x2022   :  { %4134 = vmatpush1.bf16.msra.mxu0 %v5097_v48 }
0x2023   :  { %4135 = vmatprep.subr.bf16.mxu0 %v5102_v17 }
0x2026   :  { %4136 = vmatpush1.bf16.msra.mxu0 %v5100_v20 }
0x2027   :  { %4137 = vmatprep.subr.bf16.mxu0 %v5105_v16 }
0x202a   :  { %4138 = vmatpush1.bf16.msra.mxu0 %v5103_v45 }
0x202b   :  { %4139 = vmatprep.subr.bf16.mxu0 %v5108_v46 }
0x202e   :  { %4140 = vmatpush1.bf16.msra.mxu0 %v5106_v49 }
0x202f   :  { %4141 = vmatprep.subr.bf16.mxu0 %v5111_v47 }
0x2032   :  { %4142 = vmatpush1.bf16.msra.mxu0 %v5109_v54 }
0x20d5   :  { %v3819_v24 = vpop.f32.mrf.mxu0 }
0x20d6   :  { %v3820_v50 = vadd.f32 %v3819_v24, %v3698_v2 }
0x20d7   :  { %v3821_v30 = vpop.f32.mrf.mxu0 }
0x20d8   :  { %v3822_v5 = vadd.f32 %v3821_v30, %v3702_v53  ;;  %v3832_v26 = vmul.f32 0.70710677, %v3820_v50  ;;  %v3828_v22 = vmul.f32 0.5, %v3820_v50 }
0x20d9   :  { %v3823_v28 = vpop.f32.mrf.mxu0 }
0x20da   :  { %v3833_v55 = vmul.f32 0.70710677, %v3822_v5  ;;  %v3824_v41 = vadd.f32 %v3823_v28, %v3698_v2  ;;  %v3829_v35 = vmul.f32 0.5, %v3822_v5 }
0x20db   :  { %v3825_v29 = vpop.f32.mrf.mxu0 }
0x20dc   :  { %5200 = verf.f32 %v3833_v55  ;;  %v3834_v31 = vmul.f32 0.70710677, %v3824_v41  ;;  %v3826_v19 = vadd.f32 %v3825_v29, %v3702_v53  ;;  %v3830_v59 = vmul.f32 0.5, %v3824_v41 }
0x20dd   :  { %5202 = verf.f32 %v3832_v26 }
0x20de   :  { %5204 = verf.f32 %v3834_v31  ;;  %v3835_v51 = vmul.f32 0.70710677, %v3826_v19  ;;  %v3831_v38 = vmul.f32 0.5, %v3826_v19 }
0x20e0   :  { %5206 = verf.f32 %v3835_v51 }
0x20e9   :  { %v5201_v62 = vpop.eup %5200 }
0x20ea   :  { %v5203_v23 = vpop.eup %5202  ;;  %v3841_v25 = vadd.f32 1.0, %v5201_v62 }
0x20eb   :  { %v5205_v18 = vpop.eup %5204  ;;  %v3840_v3 = vadd.f32 1.0, %v5203_v23 }
0x20ec   :  { %v3842_v32 = vadd.f32 1.0, %v5205_v18  ;;  %v3845_v40 = vmul.f32 %v3841_v25, %v3829_v35 }
0x20ed   :  { %v5207_v34 = vpop.eup %5206  ;;  %v3844_v43 = vmul.f32 %v3840_v3, %v3828_v22 }
0x20ee   :  { %v3843_v37 = vadd.f32 1.0, %v5207_v34  ;;  %v3846_v39 = vmul.f32 %v3842_v32, %v3830_v59 }
0x20f0   :  { %v3847_v42 = vmul.f32 %v3843_v37, %v3831_v38  ;;  %v3848_v44 = vpack.c.bf16 %v3846_v39, %v3844_v43 }
0x20f2   :  { %v3849_v6 = vpack.c.bf16 %v3847_v42, %v3845_v40 }
0x20f4   :  { %4019 = vmatprep.mubr.bf16.mxu1 %v3849_v6 }
0x20f5   :  { %4020 = vmatmul.mubr.bf16.vlgmr.msra.gmra.mxu1 %v3848_v44 }
0x21b5   :  { %v4588_v56 = vpop.f32.mrf.mxu1 }
0x21b7   :  { %v4589_v36 = vpop.f32.mrf.mxu1 }
0x21b8   :  { %v4590_v57 = vadd.f32 %v4589_v36, %v4588_v56 }
0x21b9   :  { %v4591_v1 = vpop.f32.mrf.mxu1 }
0x21ba   :  { %v4022_v61 = vadd.f32 %v4590_v57, %v4389_v58 }
0x21bb   :  { %v4592_v60 = vpop.f32.mrf.mxu1 }
0x21bc   :  { %v4593_v0 = vadd.f32 %v4592_v60, %v4591_v1  ;;  %v4028_v63 = vadd.f32 %v4022_v61, %v6016_v52 }
0x21be   :  { %v4025_v4 = vadd.f32 %v4593_v0, %v4389_v58 }
0x21c0   :  { %v4029_v27 = vadd.f32 %v4025_v4, %v6020_v33 }
0x21c2   :  { %v4030_v7 = vpack.c.bf16 %v4029_v27, %v4028_v63 }
0x21c4   :  { %4160 = vmatmul.mubr.bf16.vlgmr.msra.gmra.mxu0 %v4030_v7 }
0x2284   :  { %v4161_v8 = vpop.f32.mrf.mxu0 }
0x2285   :  { %4170 = vst [vmem:[#allocation13] sm:$0xff] %v4161_v8 }
0x2286   :  { %v4163_v9 = vpop.f32.mrf.mxu0 }
0x2287   :  { %4171 = vst [vmem:[#allocation13 + $0x8] sm:$0xff] %v4163_v9 }
0x2288   :  { %v4165_v10 = vpop.f32.mrf.mxu0 }
0x2289   :  { %4172 = vst [vmem:[#allocation13 + $0x10] sm:$0xff] %v4165_v10 }
0x228a   :  { %v4167_v11 = vpop.f32.mrf.mxu0 }
0x228b   :  { %4173 = vst [vmem:[#allocation13 + $0x18] sm:$0xff] %v4167_v11 }
0x228c   :  { %5339 = shalt.err (!%p5336_p6)
}
0x228d   :  { %s5377_s19 = smov 256   ;;  %s5378_s5 = smov 16  }
0x228e   :  { %4185 = dma.vmem_to_hbm [thread:$0]  %s4180_s1, 512, %s6061_s16, [#allocation4], %s5377_s19, %s5377_s19, %s5378_s5  }
0x228f   :  { %5356 = dma.done.wait [#allocation4], 512  }
0x2290   :  { %5357 = vsyncadd [#allocation4], 4294966784 }
0x2291   :  { %4189 = vsyncpa [#allocation3], 1 }
0x2292   :  { %4190 = vsyncpa [#allocation6], 1 }
0x2293   :  { %4191 = vsyncpa [#allocation9], 1 }
0x2294   :  { %4192 = vsyncpa [#allocation12], 1 }
0x2295   :  { %4193 = vsyncpa [#allocation4], 1 }

</bundles_post_ra>
